<compile_context>
chip_gen: v5e
topology: v5e:2x2
jax: 0.10.0
libtpu: 0.0.40
codegen_flags: <defaults>
</compile_context>

<pallas_src>
import jax
import jax.numpy as jnp
from jax.experimental import pallas as pl
from jax.experimental.pallas import tpu as pltpu  # noqa: F401  (TPU backend)

# ----------------------------- small CLIP config -----------------------------
B = 2           # batch
C = 4           # num_channels
IMG = 16        # image_size
PATCH = 8       # patch_size
D = 32          # hidden_size
H = 4           # num_attention_heads
HD = D // H     # head_dim
FF = 64         # intermediate_size
LAYERS = 2      # num_hidden_layers
EPS = 1e-5      # layer_norm_eps
NUM_PATCHES = (IMG // PATCH) ** 2
SEQ = NUM_PATCHES + 1
# hidden_act = quick_gelu (CLIP default): x * sigmoid(1.702 * x)
# attention_dropout = 0.0 (inference)


def _ln(x, g, b):
    # one-pass stats: E[x] and E[x^2] are independent reductions (shorter
    # serial XLU chain than mean -> mean((x-m)^2)).
    m = jnp.mean(x, axis=-1, keepdims=True)
    ms = jnp.mean(x * x, axis=-1, keepdims=True)
    v = ms - m * m
    return (x - m) * jax.lax.rsqrt(v + EPS) * g + b


# ------------------------- single fused forward kernel ------------------------
def _clip_forward_kernel(patches_ref,   # (B*SEQ, C*P*P) bf16, CLS rows are zeros
                         w_patch_ref,   # (C*P*P, D)     bf16
                         emb_ref,       # (B*SEQ, D)     f32  cls+pos, pre-tiled over B
                         gln_ref,       # (4, D)         f32  [pre_g, pre_b, post_g, post_b]
                         lln_ref,       # (LAYERS, 4, D) f32  [ln1_g, ln1_b, ln2_g, ln2_b]
                         w_qkv_ref,     # (LAYERS, D, 3D)   bf16 (attn scale folded in Wq)
                         b_qkv_ref,     # (LAYERS, 1, 3D)   f32
                         wo_ref,        # (LAYERS, H, HD, D) bf16 (out_proj, head-major rows)
                         w1_ref,        # (LAYERS, D, FF)   bf16
                         w2_ref,        # (LAYERS, FF, D)   bf16
                         b_out_ref,     # (LAYERS, 2, D)    f32  [out_proj bias, fc2 bias]
                         b1_ref,        # (LAYERS, 1, FF)   f32  fc1 bias
                         hidden_ref,    # out (B, SEQ, D)   f32
                         pooled_ref):   # out (B, D)        f32
    f32 = jnp.float32
    bf16 = jnp.bfloat16

    # ---- CLIPVisionEmbeddings: bias-free patch conv == one matmul; CLS row is
    # a zero input row, class embedding already folded into emb row 0. ----
    pe = jnp.dot(patches_ref[...], w_patch_ref[...],
                 preferred_element_type=f32)                       # (B*SEQ, D)
    x = pe + emb_ref[...]                                          # + cls/pos emb

    x = _ln(x, gln_ref[0], gln_ref[1])                             # pre_layrnorm

    # ---- CLIPEncoder: static unroll over layers, activation stays in VMEM ----
    for li in range(LAYERS):
        ln_p = lln_ref[li]            # (4, D)  static per-layer slice
        bo = b_out_ref[li]            # (2, D)

        # --- CLIPAttention (pre-LN residual block) ---
        h = _ln(x, ln_p[0], ln_p[1])
        qkv = jnp.dot(h.astype(bf16), w_qkv_ref[li],
                      preferred_element_type=f32) + b_qkv_ref[li]  # (B*SEQ, 3D)

        # head-stacked (H*B, SEQ, HD) operands: all heads batched into single
        # contractions (no per-head matmul loop).
        qs = jnp.concatenate(
            [qkv[:, hh * HD:(hh + 1) * HD].reshape(B, SEQ, HD) for hh in range(H)],
            axis=0)
        ks = jnp.concatenate(
            [qkv[:, D + hh * HD:D + (hh + 1) * HD].reshape(B, SEQ, HD) for hh in range(H)],
            axis=0)
        vs = jnp.concatenate(
            [qkv[:, 2 * D + hh * HD:2 * D + (hh + 1) * HD].reshape(B, SEQ, HD) for hh in range(H)],
            axis=0)

        # scale already folded into Wq/bq at init
        s = jnp.einsum('bqd,bkd->bqk', qs, ks,
                       preferred_element_type=f32)                 # (H*B, SEQ, SEQ)
        s = s - jnp.max(s, axis=-1, keepdims=True)
        p = jnp.exp(s)
        p = p * pl.reciprocal(jnp.sum(p, axis=-1, keepdims=True), approx=True)
        ctx = jnp.einsum('bqk,bkd->bqd', p, vs,
                         preferred_element_type=f32)               # (H*B, SEQ, HD)

        # out-projection with the head recombination folded in: one head-batched
        # contraction against wo stored as (H, HD, D), then a cheap sum over H.
        ctx = ctx.reshape(H, B * SEQ, HD).astype(bf16)
        attn = jnp.einsum('hnd,hdk->hnk', ctx, wo_ref[li],
                          preferred_element_type=f32)              # (H, B*SEQ, D)
        x = x + jnp.sum(attn, axis=0) + bo[0]

        # --- CLIPMLP (pre-LN residual block), quick_gelu ---
        h2 = _ln(x, ln_p[2], ln_p[3])
        h2 = jnp.dot(h2.astype(bf16), w1_ref[li],
                     preferred_element_type=f32) + b1_ref[li]
        h2 = h2 * jax.nn.sigmoid(1.702 * h2)
        h2 = jnp.dot(h2.astype(bf16), w2_ref[li],
                     preferred_element_type=f32) + bo[1]
        x = x + h2

    xr = x.reshape(B, SEQ, D)
    hidden_ref[...] = xr
    # post_layernorm on the CLS-token pooled output
    pooled_ref[...] = _ln(xr[:, 0, :], gln_ref[2], gln_ref[3])


# ----------------------------- parameter init --------------------------------
def init_params(key):
    keys = jax.random.split(key, 3 + LAYERS)

    def nrm(k, shape, scale=0.02):
        return scale * jax.random.normal(k, shape, dtype=jnp.float32)

    attn_scale = 1.0 / (HD ** 0.5)

    # class embedding folded into row 0 of the position embedding (the CLS slot
    # of the patch slab is a zero row and the patch conv has no bias).
    cls_emb = jax.random.normal(keys[1], (D,), dtype=jnp.float32)
    pos_emb = nrm(keys[2], (SEQ, D))
    emb = pos_emb.at[0].add(cls_emb)
    emb = jnp.tile(emb, (B, 1))                      # (B*SEQ, D), pre-tiled over batch

    params = {
        # Conv2d(C, D, kernel=patch, stride=patch, bias=False) weight, stored
        # pre-flattened/transposed as (C*p*p, D) with (C, ph, pw) order.
        "w_patch": nrm(keys[0], (C * PATCH * PATCH, D)).astype(jnp.bfloat16),
        "emb": emb,
        # [pre_ln_g, pre_ln_b, post_ln_g, post_ln_b]
        "global_ln": jnp.stack([jnp.ones(D), jnp.zeros(D),
                                jnp.ones(D), jnp.zeros(D)]).astype(jnp.float32),
    }

    lln, wqkv, bqkv, wo, w1, w2, bout, b1 = [], [], [], [], [], [], [], []
    for li in range(LAYERS):
        lk = jax.random.split(keys[3 + li], 6)
        wq = nrm(lk[0], (D, D))
        wk = nrm(lk[1], (D, D))
        wv = nrm(lk[2], (D, D))
        bq = jnp.zeros((D,), jnp.float32)
        bk = jnp.zeros((D,), jnp.float32)
        bv = jnp.zeros((D,), jnp.float32)
        # fold the 1/sqrt(head_dim) attention scale into Wq / bq (init time only)
        wqkv.append(jnp.concatenate([wq * attn_scale, wk, wv], axis=1)
                    .astype(jnp.bfloat16))                          # (D, 3D)
        bqkv.append(jnp.concatenate([bq * attn_scale, bk, bv])[None, :])  # (1, 3D)
        # out_proj weight stored head-major as (H, HD, D)
        wo.append(nrm(lk[3], (D, D)).reshape(H, HD, D).astype(jnp.bfloat16))
        w1.append(nrm(lk[4], (D, FF)).astype(jnp.bfloat16))
        w2.append(nrm(lk[5], (FF, D)).astype(jnp.bfloat16))
        lln.append(jnp.stack([jnp.ones(D), jnp.zeros(D),
                              jnp.ones(D), jnp.zeros(D)]).astype(jnp.float32))
        bout.append(jnp.zeros((2, D), jnp.float32))   # [out_proj bias, fc2 bias]
        b1.append(jnp.zeros((1, FF), jnp.float32))    # fc1 bias

    params["layer_ln"] = jnp.stack(lln)    # (LAYERS, 4, D)
    params["w_qkv"] = jnp.stack(wqkv)      # (LAYERS, D, 3D)
    params["b_qkv"] = jnp.stack(bqkv)      # (LAYERS, 1, 3D)
    params["wo"] = jnp.stack(wo)           # (LAYERS, H, HD, D)
    params["w1"] = jnp.stack(w1)           # (LAYERS, D, FF)
    params["w2"] = jnp.stack(w2)           # (LAYERS, FF, D)
    params["b_out"] = jnp.stack(bout)      # (LAYERS, 2, D)
    params["b1"] = jnp.stack(b1)           # (LAYERS, 1, FF)
    return params


# ------------------------------ forward pass ----------------------------------
@jax.jit
def clip_vision_transformer(pixel_values, params):
    """pixel_values: (B, C, IMG, IMG) NCHW float32.
    Returns (last_hidden_state (B, SEQ, D), pooled_output (B, D))."""
    gp = IMG // PATCH

    # Patch extraction glue (pure layout): (B,C,gp,p,gp,p) -> (B, NP, C*p*p)
    x = pixel_values.reshape(B, C, gp, PATCH, gp, PATCH)
    x = jnp.transpose(x, (0, 2, 4, 1, 3, 5))
    patches = x.reshape(B, NUM_PATCHES, C * PATCH * PATCH)
    # zero row per batch at the CLS position (bias-free conv(0) == 0), so the
    # in-kernel patch matmul directly yields the (B*SEQ, D) embedding slab.
    patches = jnp.pad(patches, ((0, 0), (1, 0), (0, 0)))
    patches = patches.reshape(B * SEQ, C * PATCH * PATCH).astype(jnp.bfloat16)

    hidden, pooled = pl.pallas_call(
        _clip_forward_kernel,
        out_shape=(jax.ShapeDtypeStruct((B, SEQ, D), jnp.float32),
                   jax.ShapeDtypeStruct((B, D), jnp.float32)),
    )(patches, params["w_patch"], params["emb"], params["global_ln"],
      params["layer_ln"], params["w_qkv"], params["b_qkv"], params["wo"],
      params["w1"], params["w2"], params["b_out"], params["b1"])
    return hidden, pooled

# TODO(synk): attention_mask / causal_attention_mask (None in this config),
# attention dropout (p>0), output_attentions, gradient checkpointing and the
# position-embedding backward hook are training/introspection features with no
# forward-pass Pallas equivalent here.


if __name__ == "__main__":
    key = jax.random.PRNGKey(0)
    pk, ik = jax.random.split(key)
    params = init_params(pk)
    pixel_values = jax.random.normal(ik, (B, C, IMG, IMG), dtype=jnp.float32)

    last_hidden, pooled = clip_vision_transformer(pixel_values, params)
    jax.block_until_ready((last_hidden, pooled))

    assert last_hidden.shape == (B, SEQ, D)
    assert pooled.shape == (B, D)
    assert bool(jnp.all(jnp.isfinite(last_hidden))) and bool(jnp.all(jnp.isfinite(pooled)))
    print("KERNEL_OK")
</pallas_src>

<mosaic_0001>
module attributes {stable_mosaic.version = 11 : i64} {
  func.func @_clip_forward_kernel(%arg0: memref<10x256xbf16, #tpu.memory_space<vmem>>, %arg1: memref<256x32xbf16, #tpu.memory_space<vmem>>, %arg2: memref<10x32xf32, #tpu.memory_space<vmem>>, %arg3: memref<4x32xf32, #tpu.memory_space<vmem>>, %arg4: memref<2x4x32xf32, #tpu.memory_space<vmem>>, %arg5: memref<2x32x96xbf16, #tpu.memory_space<vmem>>, %arg6: memref<2x1x96xf32, #tpu.memory_space<vmem>>, %arg7: memref<2x4x8x32xbf16, #tpu.memory_space<vmem>>, %arg8: memref<2x32x64xbf16, #tpu.memory_space<vmem>>, %arg9: memref<2x64x32xbf16, #tpu.memory_space<vmem>>, %arg10: memref<2x2x32xf32, #tpu.memory_space<vmem>>, %arg11: memref<2x1x64xf32, #tpu.memory_space<vmem>>, %arg12: memref<2x5x32xf32, #tpu.memory_space<vmem>>, %arg13: memref<2x32xf32, #tpu.memory_space<vmem>>) attributes {dimension_semantics = [], scalar_prefetch = 0 : i64, scratch_operands = 0 : i64, tpu.core_type = #tpu.core_type<tc>} {
    %c0 = arith.constant 0 : index
    %c0_0 = arith.constant 0 : index
    %0 = vector.load %arg0[%c0, %c0_0] : memref<10x256xbf16, #tpu.memory_space<vmem>>, vector<10x256xbf16>
    %c0_1 = arith.constant 0 : index
    %c0_2 = arith.constant 0 : index
    %1 = vector.load %arg1[%c0_1, %c0_2] : memref<256x32xbf16, #tpu.memory_space<vmem>>, vector<256x32xbf16>
    %cst = arith.constant dense<0.000000e+00> : vector<10x32xf32>
    %2 = tpu.matmul %0, %1, %cst {dimension_numbers = #tpu.dot_dimension_numbers<[1], [0], [0], [1], [0, 0, 1, 1], [], []>} : vector<10x256xbf16>, vector<256x32xbf16>, vector<10x32xf32> -> vector<10x32xf32>
    %c0_3 = arith.constant 0 : index
    %c0_4 = arith.constant 0 : index
    %3 = vector.load %arg2[%c0_3, %c0_4] : memref<10x32xf32, #tpu.memory_space<vmem>>, vector<10x32xf32>
    %4 = arith.addf %2, %3 : vector<10x32xf32>
    %c0_5 = arith.constant 0 : index
    %c0_6 = arith.constant 0 : index
    %5 = vector.load %arg3[%c0_5, %c0_6] : memref<4x32xf32, #tpu.memory_space<vmem>>, vector<1x32xf32>
    %6 = vector.shape_cast %5 : vector<1x32xf32> to vector<32xf32>
    %c1 = arith.constant 1 : index
    %c0_7 = arith.constant 0 : index
    %7 = vector.load %arg3[%c1, %c0_7] : memref<4x32xf32, #tpu.memory_space<vmem>>, vector<1x32xf32>
    %8 = vector.shape_cast %7 : vector<1x32xf32> to vector<32xf32>
    %cst_8 = arith.constant dense<0.000000e+00> : vector<10xf32>
    %9 = vector.multi_reduction <add>, %4, %cst_8 [1] : vector<10x32xf32> to vector<10xf32>
    %10 = vector.shape_cast %9 : vector<10xf32> to vector<10x1xf32>
    %cst_9 = arith.constant 3.200000e+01 : f32
    %11 = vector.broadcast %cst_9 : f32 to vector<10x1xf32>
    %12 = arith.divf %10, %11 : vector<10x1xf32>
    %13 = arith.mulf %4, %4 : vector<10x32xf32>
    %cst_10 = arith.constant dense<0.000000e+00> : vector<10xf32>
    %14 = vector.multi_reduction <add>, %13, %cst_10 [1] : vector<10x32xf32> to vector<10xf32>
    %15 = vector.shape_cast %14 : vector<10xf32> to vector<10x1xf32>
    %cst_11 = arith.constant 3.200000e+01 : f32
    %16 = vector.broadcast %cst_11 : f32 to vector<10x1xf32>
    %17 = arith.divf %15, %16 : vector<10x1xf32>
    %18 = arith.mulf %12, %12 : vector<10x1xf32>
    %19 = arith.subf %17, %18 : vector<10x1xf32>
    %20 = vector.broadcast %12 : vector<10x1xf32> to vector<10x32xf32>
    %21 = arith.subf %4, %20 : vector<10x32xf32>
    %cst_12 = arith.constant 9.99999974E-6 : f32
    %22 = vector.broadcast %cst_12 : f32 to vector<10x1xf32>
    %23 = arith.addf %19, %22 : vector<10x1xf32>
    %24 = math.rsqrt %23 : vector<10x1xf32>
    %25 = vector.broadcast %24 : vector<10x1xf32> to vector<10x32xf32>
    %26 = arith.mulf %21, %25 : vector<10x32xf32>
    %27 = vector.shape_cast %6 : vector<32xf32> to vector<1x32xf32>
    %28 = vector.broadcast %27 : vector<1x32xf32> to vector<10x32xf32>
    %29 = arith.mulf %26, %28 : vector<10x32xf32>
    %30 = vector.shape_cast %8 : vector<32xf32> to vector<1x32xf32>
    %31 = vector.broadcast %30 : vector<1x32xf32> to vector<10x32xf32>
    %32 = arith.addf %29, %31 : vector<10x32xf32>
    %c0_13 = arith.constant 0 : index
    %c0_14 = arith.constant 0 : index
    %c0_15 = arith.constant 0 : index
    %33 = vector.load %arg4[%c0_13, %c0_14, %c0_15] : memref<2x4x32xf32, #tpu.memory_space<vmem>>, vector<1x4x32xf32>
    %34 = vector.shape_cast %33 : vector<1x4x32xf32> to vector<4x32xf32>
    %c0_16 = arith.constant 0 : index
    %c0_17 = arith.constant 0 : index
    %c0_18 = arith.constant 0 : index
    %35 = vector.load %arg10[%c0_16, %c0_17, %c0_18] : memref<2x2x32xf32, #tpu.memory_space<vmem>>, vector<1x2x32xf32>
    %36 = vector.shape_cast %35 : vector<1x2x32xf32> to vector<2x32xf32>
    %37 = vector.extract_strided_slice %34 {offsets = [0, 0], sizes = [1, 32], strides = [1, 1]} : vector<4x32xf32> to vector<1x32xf32>
    %38 = vector.shape_cast %37 : vector<1x32xf32> to vector<32xf32>
    %39 = vector.extract_strided_slice %34 {offsets = [1, 0], sizes = [1, 32], strides = [1, 1]} : vector<4x32xf32> to vector<1x32xf32>
    %40 = vector.shape_cast %39 : vector<1x32xf32> to vector<32xf32>
    %cst_19 = arith.constant dense<0.000000e+00> : vector<10xf32>
    %41 = vector.multi_reduction <add>, %32, %cst_19 [1] : vector<10x32xf32> to vector<10xf32>
    %42 = vector.shape_cast %41 : vector<10xf32> to vector<10x1xf32>
    %cst_20 = arith.constant 3.200000e+01 : f32
    %43 = vector.broadcast %cst_20 : f32 to vector<10x1xf32>
    %44 = arith.divf %42, %43 : vector<10x1xf32>
    %45 = arith.mulf %32, %32 : vector<10x32xf32>
    %cst_21 = arith.constant dense<0.000000e+00> : vector<10xf32>
    %46 = vector.multi_reduction <add>, %45, %cst_21 [1] : vector<10x32xf32> to vector<10xf32>
    %47 = vector.shape_cast %46 : vector<10xf32> to vector<10x1xf32>
    %cst_22 = arith.constant 3.200000e+01 : f32
    %48 = vector.broadcast %cst_22 : f32 to vector<10x1xf32>
    %49 = arith.divf %47, %48 : vector<10x1xf32>
    %50 = arith.mulf %44, %44 : vector<10x1xf32>
    %51 = arith.subf %49, %50 : vector<10x1xf32>
    %52 = vector.broadcast %44 : vector<10x1xf32> to vector<10x32xf32>
    %53 = arith.subf %32, %52 : vector<10x32xf32>
    %cst_23 = arith.constant 9.99999974E-6 : f32
    %54 = vector.broadcast %cst_23 : f32 to vector<10x1xf32>
    %55 = arith.addf %51, %54 : vector<10x1xf32>
    %56 = math.rsqrt %55 : vector<10x1xf32>
    %57 = vector.broadcast %56 : vector<10x1xf32> to vector<10x32xf32>
    %58 = arith.mulf %53, %57 : vector<10x32xf32>
    %59 = vector.shape_cast %38 : vector<32xf32> to vector<1x32xf32>
    %60 = vector.broadcast %59 : vector<1x32xf32> to vector<10x32xf32>
    %61 = arith.mulf %58, %60 : vector<10x32xf32>
    %62 = vector.shape_cast %40 : vector<32xf32> to vector<1x32xf32>
    %63 = vector.broadcast %62 : vector<1x32xf32> to vector<10x32xf32>
    %64 = arith.addf %61, %63 : vector<10x32xf32>
    %65 = arith.truncf %64 : vector<10x32xf32> to vector<10x32xbf16>
    %c0_24 = arith.constant 0 : index
    %c0_25 = arith.constant 0 : index
    %c0_26 = arith.constant 0 : index
    %66 = vector.load %arg5[%c0_24, %c0_25, %c0_26] : memref<2x32x96xbf16, #tpu.memory_space<vmem>>, vector<1x32x96xbf16>
    %67 = vector.shape_cast %66 : vector<1x32x96xbf16> to vector<32x96xbf16>
    %cst_27 = arith.constant dense<0.000000e+00> : vector<10x96xf32>
    %68 = tpu.matmul %65, %67, %cst_27 {dimension_numbers = #tpu.dot_dimension_numbers<[1], [0], [0], [1], [0, 0, 1, 1], [], []>} : vector<10x32xbf16>, vector<32x96xbf16>, vector<10x96xf32> -> vector<10x96xf32>
    %c0_28 = arith.constant 0 : index
    %c0_29 = arith.constant 0 : index
    %c0_30 = arith.constant 0 : index
    %69 = vector.load %arg6[%c0_28, %c0_29, %c0_30] : memref<2x1x96xf32, #tpu.memory_space<vmem>>, vector<1x1x96xf32>
    %70 = vector.shape_cast %69 : vector<1x1x96xf32> to vector<1x96xf32>
    %71 = vector.broadcast %70 : vector<1x96xf32> to vector<10x96xf32>
    %72 = arith.addf %68, %71 : vector<10x96xf32>
    %73 = vector.extract_strided_slice %72 {offsets = [0, 0], sizes = [10, 8], strides = [1, 1]} : vector<10x96xf32> to vector<10x8xf32>
    %74 = vector.shape_cast %73 : vector<10x8xf32> to vector<2x5x8xf32>
    %75 = vector.extract_strided_slice %72 {offsets = [0, 8], sizes = [10, 8], strides = [1, 1]} : vector<10x96xf32> to vector<10x8xf32>
    %76 = vector.shape_cast %75 : vector<10x8xf32> to vector<2x5x8xf32>
    %77 = vector.extract_strided_slice %72 {offsets = [0, 16], sizes = [10, 8], strides = [1, 1]} : vector<10x96xf32> to vector<10x8xf32>
    %78 = vector.shape_cast %77 : vector<10x8xf32> to vector<2x5x8xf32>
    %79 = vector.extract_strided_slice %72 {offsets = [0, 24], sizes = [10, 8], strides = [1, 1]} : vector<10x96xf32> to vector<10x8xf32>
    %80 = vector.shape_cast %79 : vector<10x8xf32> to vector<2x5x8xf32>
    %81 = tpu.concatenate %74, %76, %78, %80 in 0 : vector<2x5x8xf32>, vector<2x5x8xf32>, vector<2x5x8xf32>, vector<2x5x8xf32> -> vector<8x5x8xf32>
    %82 = vector.extract_strided_slice %72 {offsets = [0, 32], sizes = [10, 8], strides = [1, 1]} : vector<10x96xf32> to vector<10x8xf32>
    %83 = vector.shape_cast %82 : vector<10x8xf32> to vector<2x5x8xf32>
    %84 = vector.extract_strided_slice %72 {offsets = [0, 40], sizes = [10, 8], strides = [1, 1]} : vector<10x96xf32> to vector<10x8xf32>
    %85 = vector.shape_cast %84 : vector<10x8xf32> to vector<2x5x8xf32>
    %86 = vector.extract_strided_slice %72 {offsets = [0, 48], sizes = [10, 8], strides = [1, 1]} : vector<10x96xf32> to vector<10x8xf32>
    %87 = vector.shape_cast %86 : vector<10x8xf32> to vector<2x5x8xf32>
    %88 = vector.extract_strided_slice %72 {offsets = [0, 56], sizes = [10, 8], strides = [1, 1]} : vector<10x96xf32> to vector<10x8xf32>
    %89 = vector.shape_cast %88 : vector<10x8xf32> to vector<2x5x8xf32>
    %90 = tpu.concatenate %83, %85, %87, %89 in 0 : vector<2x5x8xf32>, vector<2x5x8xf32>, vector<2x5x8xf32>, vector<2x5x8xf32> -> vector<8x5x8xf32>
    %91 = vector.extract_strided_slice %72 {offsets = [0, 64], sizes = [10, 8], strides = [1, 1]} : vector<10x96xf32> to vector<10x8xf32>
    %92 = vector.shape_cast %91 : vector<10x8xf32> to vector<2x5x8xf32>
    %93 = vector.extract_strided_slice %72 {offsets = [0, 72], sizes = [10, 8], strides = [1, 1]} : vector<10x96xf32> to vector<10x8xf32>
    %94 = vector.shape_cast %93 : vector<10x8xf32> to vector<2x5x8xf32>
    %95 = vector.extract_strided_slice %72 {offsets = [0, 80], sizes = [10, 8], strides = [1, 1]} : vector<10x96xf32> to vector<10x8xf32>
    %96 = vector.shape_cast %95 : vector<10x8xf32> to vector<2x5x8xf32>
    %97 = vector.extract_strided_slice %72 {offsets = [0, 88], sizes = [10, 8], strides = [1, 1]} : vector<10x96xf32> to vector<10x8xf32>
    %98 = vector.shape_cast %97 : vector<10x8xf32> to vector<2x5x8xf32>
    %99 = tpu.concatenate %92, %94, %96, %98 in 0 : vector<2x5x8xf32>, vector<2x5x8xf32>, vector<2x5x8xf32>, vector<2x5x8xf32> -> vector<8x5x8xf32>
    "tpu.trace_start"() <{level = 10 : i32, message = "bqd,bkd->bqk"}> : () -> ()
    %cst_31 = arith.constant dense<0.000000e+00> : vector<8x5x5xf32>
    %100 = tpu.matmul %81, %90, %cst_31 {dimension_numbers = #tpu.dot_dimension_numbers<[2], [2], [1], [1], [0, 0, 0, 1, 1, 1], [0], [0]>} : vector<8x5x8xf32>, vector<8x5x8xf32>, vector<8x5x5xf32> -> vector<8x5x5xf32>
    "tpu.trace_stop"() : () -> ()
    %cst_32 = arith.constant dense<0xFF800000> : vector<8x5xf32>
    %101 = vector.multi_reduction <maximumf>, %100, %cst_32 [2] : vector<8x5x5xf32> to vector<8x5xf32>
    %102 = vector.shape_cast %101 : vector<8x5xf32> to vector<8x5x1xf32>
    %103 = vector.broadcast %102 : vector<8x5x1xf32> to vector<8x5x5xf32>
    %104 = arith.subf %100, %103 : vector<8x5x5xf32>
    %105 = math.exp %104 : vector<8x5x5xf32>
    %cst_33 = arith.constant dense<0.000000e+00> : vector<8x5xf32>
    %106 = vector.multi_reduction <add>, %105, %cst_33 [2] : vector<8x5x5xf32> to vector<8x5xf32>
    %107 = vector.shape_cast %106 : vector<8x5xf32> to vector<8x5x1xf32>
    %108 = tpu.reciprocal %107 {approx = true} : vector<8x5x1xf32> -> vector<8x5x1xf32>
    %109 = vector.broadcast %108 : vector<8x5x1xf32> to vector<8x5x5xf32>
    %110 = arith.mulf %105, %109 : vector<8x5x5xf32>
    "tpu.trace_start"() <{level = 10 : i32, message = "bqk,bkd->bqd"}> : () -> ()
    %cst_34 = arith.constant dense<0.000000e+00> : vector<8x5x8xf32>
    %111 = tpu.matmul %110, %99, %cst_34 {dimension_numbers = #tpu.dot_dimension_numbers<[2], [1], [1], [2], [0, 0, 0, 1, 1, 2], [0], [0]>} : vector<8x5x5xf32>, vector<8x5x8xf32>, vector<8x5x8xf32> -> vector<8x5x8xf32>
    "tpu.trace_stop"() : () -> ()
    %112 = vector.shape_cast %111 : vector<8x5x8xf32> to vector<4x10x8xf32>
    %113 = arith.truncf %112 : vector<4x10x8xf32> to vector<4x10x8xbf16>
    %c0_35 = arith.constant 0 : index
    %c0_36 = arith.constant 0 : index
    %c0_37 = arith.constant 0 : index
    %c0_38 = arith.constant 0 : index
    %114 = vector.load %arg7[%c0_35, %c0_36, %c0_37, %c0_38] : memref<2x4x8x32xbf16, #tpu.memory_space<vmem>>, vector<1x4x8x32xbf16>
    %115 = vector.shape_cast %114 : vector<1x4x8x32xbf16> to vector<4x8x32xbf16>
    "tpu.trace_start"() <{level = 10 : i32, message = "hnd,hdk->hnk"}> : () -> ()
    %cst_39 = arith.constant dense<0.000000e+00> : vector<4x10x32xf32>
    %116 = tpu.matmul %113, %115, %cst_39 {dimension_numbers = #tpu.dot_dimension_numbers<[2], [1], [1], [2], [0, 0, 0, 1, 1, 2], [0], [0]>} : vector<4x10x8xbf16>, vector<4x8x32xbf16>, vector<4x10x32xf32> -> vector<4x10x32xf32>
    "tpu.trace_stop"() : () -> ()
    %cst_40 = arith.constant dense<0.000000e+00> : vector<10x32xf32>
    %117 = vector.multi_reduction <add>, %116, %cst_40 [0] : vector<4x10x32xf32> to vector<10x32xf32>
    %118 = arith.addf %32, %117 : vector<10x32xf32>
    %119 = vector.extract_strided_slice %36 {offsets = [0, 0], sizes = [1, 32], strides = [1, 1]} : vector<2x32xf32> to vector<1x32xf32>
    %120 = vector.shape_cast %119 : vector<1x32xf32> to vector<32xf32>
    %121 = vector.shape_cast %120 : vector<32xf32> to vector<1x32xf32>
    %122 = vector.broadcast %121 : vector<1x32xf32> to vector<10x32xf32>
    %123 = arith.addf %118, %122 : vector<10x32xf32>
    %124 = vector.extract_strided_slice %34 {offsets = [2, 0], sizes = [1, 32], strides = [1, 1]} : vector<4x32xf32> to vector<1x32xf32>
    %125 = vector.shape_cast %124 : vector<1x32xf32> to vector<32xf32>
    %126 = vector.extract_strided_slice %34 {offsets = [3, 0], sizes = [1, 32], strides = [1, 1]} : vector<4x32xf32> to vector<1x32xf32>
    %127 = vector.shape_cast %126 : vector<1x32xf32> to vector<32xf32>
    %cst_41 = arith.constant dense<0.000000e+00> : vector<10xf32>
    %128 = vector.multi_reduction <add>, %123, %cst_41 [1] : vector<10x32xf32> to vector<10xf32>
    %129 = vector.shape_cast %128 : vector<10xf32> to vector<10x1xf32>
    %cst_42 = arith.constant 3.200000e+01 : f32
    %130 = vector.broadcast %cst_42 : f32 to vector<10x1xf32>
    %131 = arith.divf %129, %130 : vector<10x1xf32>
    %132 = arith.mulf %123, %123 : vector<10x32xf32>
    %cst_43 = arith.constant dense<0.000000e+00> : vector<10xf32>
    %133 = vector.multi_reduction <add>, %132, %cst_43 [1] : vector<10x32xf32> to vector<10xf32>
    %134 = vector.shape_cast %133 : vector<10xf32> to vector<10x1xf32>
    %cst_44 = arith.constant 3.200000e+01 : f32
    %135 = vector.broadcast %cst_44 : f32 to vector<10x1xf32>
    %136 = arith.divf %134, %135 : vector<10x1xf32>
    %137 = arith.mulf %131, %131 : vector<10x1xf32>
    %138 = arith.subf %136, %137 : vector<10x1xf32>
    %139 = vector.broadcast %131 : vector<10x1xf32> to vector<10x32xf32>
    %140 = arith.subf %123, %139 : vector<10x32xf32>
    %cst_45 = arith.constant 9.99999974E-6 : f32
    %141 = vector.broadcast %cst_45 : f32 to vector<10x1xf32>
    %142 = arith.addf %138, %141 : vector<10x1xf32>
    %143 = math.rsqrt %142 : vector<10x1xf32>
    %144 = vector.broadcast %143 : vector<10x1xf32> to vector<10x32xf32>
    %145 = arith.mulf %140, %144 : vector<10x32xf32>
    %146 = vector.shape_cast %125 : vector<32xf32> to vector<1x32xf32>
    %147 = vector.broadcast %146 : vector<1x32xf32> to vector<10x32xf32>
    %148 = arith.mulf %145, %147 : vector<10x32xf32>
    %149 = vector.shape_cast %127 : vector<32xf32> to vector<1x32xf32>
    %150 = vector.broadcast %149 : vector<1x32xf32> to vector<10x32xf32>
    %151 = arith.addf %148, %150 : vector<10x32xf32>
    %152 = arith.truncf %151 : vector<10x32xf32> to vector<10x32xbf16>
    %c0_46 = arith.constant 0 : index
    %c0_47 = arith.constant 0 : index
    %c0_48 = arith.constant 0 : index
    %153 = vector.load %arg8[%c0_46, %c0_47, %c0_48] : memref<2x32x64xbf16, #tpu.memory_space<vmem>>, vector<1x32x64xbf16>
    %154 = vector.shape_cast %153 : vector<1x32x64xbf16> to vector<32x64xbf16>
    %cst_49 = arith.constant dense<0.000000e+00> : vector<10x64xf32>
    %155 = tpu.matmul %152, %154, %cst_49 {dimension_numbers = #tpu.dot_dimension_numbers<[1], [0], [0], [1], [0, 0, 1, 1], [], []>} : vector<10x32xbf16>, vector<32x64xbf16>, vector<10x64xf32> -> vector<10x64xf32>
    %c0_50 = arith.constant 0 : index
    %c0_51 = arith.constant 0 : index
    %c0_52 = arith.constant 0 : index
    %156 = vector.load %arg11[%c0_50, %c0_51, %c0_52] : memref<2x1x64xf32, #tpu.memory_space<vmem>>, vector<1x1x64xf32>
    %157 = vector.shape_cast %156 : vector<1x1x64xf32> to vector<1x64xf32>
    %158 = vector.broadcast %157 : vector<1x64xf32> to vector<10x64xf32>
    %159 = arith.addf %155, %158 : vector<10x64xf32>
    %cst_53 = arith.constant 1.702000e+00 : f32
    %160 = vector.broadcast %cst_53 : f32 to vector<10x64xf32>
    %161 = arith.mulf %160, %159 : vector<10x64xf32>
    %162 = arith.negf %161 : vector<10x64xf32>
    %163 = math.exp %162 : vector<10x64xf32>
    %cst_54 = arith.constant 1.000000e+00 : f32
    %164 = vector.broadcast %cst_54 : f32 to vector<10x64xf32>
    %165 = arith.addf %164, %163 : vector<10x64xf32>
    %166 = arith.divf %164, %165 : vector<10x64xf32>
    %167 = arith.mulf %159, %166 : vector<10x64xf32>
    %168 = arith.truncf %167 : vector<10x64xf32> to vector<10x64xbf16>
    %c0_55 = arith.constant 0 : index
    %c0_56 = arith.constant 0 : index
    %c0_57 = arith.constant 0 : index
    %169 = vector.load %arg9[%c0_55, %c0_56, %c0_57] : memref<2x64x32xbf16, #tpu.memory_space<vmem>>, vector<1x64x32xbf16>
    %170 = vector.shape_cast %169 : vector<1x64x32xbf16> to vector<64x32xbf16>
    %cst_58 = arith.constant dense<0.000000e+00> : vector<10x32xf32>
    %171 = tpu.matmul %168, %170, %cst_58 {dimension_numbers = #tpu.dot_dimension_numbers<[1], [0], [0], [1], [0, 0, 1, 1], [], []>} : vector<10x64xbf16>, vector<64x32xbf16>, vector<10x32xf32> -> vector<10x32xf32>
    %172 = vector.extract_strided_slice %36 {offsets = [1, 0], sizes = [1, 32], strides = [1, 1]} : vector<2x32xf32> to vector<1x32xf32>
    %173 = vector.shape_cast %172 : vector<1x32xf32> to vector<32xf32>
    %174 = vector.shape_cast %173 : vector<32xf32> to vector<1x32xf32>
    %175 = vector.broadcast %174 : vector<1x32xf32> to vector<10x32xf32>
    %176 = arith.addf %171, %175 : vector<10x32xf32>
    %177 = arith.addf %123, %176 : vector<10x32xf32>
    %c1_59 = arith.constant 1 : index
    %c0_60 = arith.constant 0 : index
    %c0_61 = arith.constant 0 : index
    %178 = vector.load %arg4[%c1_59, %c0_60, %c0_61] : memref<2x4x32xf32, #tpu.memory_space<vmem>>, vector<1x4x32xf32>
    %179 = vector.shape_cast %178 : vector<1x4x32xf32> to vector<4x32xf32>
    %c1_62 = arith.constant 1 : index
    %c0_63 = arith.constant 0 : index
    %c0_64 = arith.constant 0 : index
    %180 = vector.load %arg10[%c1_62, %c0_63, %c0_64] : memref<2x2x32xf32, #tpu.memory_space<vmem>>, vector<1x2x32xf32>
    %181 = vector.shape_cast %180 : vector<1x2x32xf32> to vector<2x32xf32>
    %182 = vector.extract_strided_slice %179 {offsets = [0, 0], sizes = [1, 32], strides = [1, 1]} : vector<4x32xf32> to vector<1x32xf32>
    %183 = vector.shape_cast %182 : vector<1x32xf32> to vector<32xf32>
    %184 = vector.extract_strided_slice %179 {offsets = [1, 0], sizes = [1, 32], strides = [1, 1]} : vector<4x32xf32> to vector<1x32xf32>
    %185 = vector.shape_cast %184 : vector<1x32xf32> to vector<32xf32>
    %cst_65 = arith.constant dense<0.000000e+00> : vector<10xf32>
    %186 = vector.multi_reduction <add>, %177, %cst_65 [1] : vector<10x32xf32> to vector<10xf32>
    %187 = vector.shape_cast %186 : vector<10xf32> to vector<10x1xf32>
    %cst_66 = arith.constant 3.200000e+01 : f32
    %188 = vector.broadcast %cst_66 : f32 to vector<10x1xf32>
    %189 = arith.divf %187, %188 : vector<10x1xf32>
    %190 = arith.mulf %177, %177 : vector<10x32xf32>
    %cst_67 = arith.constant dense<0.000000e+00> : vector<10xf32>
    %191 = vector.multi_reduction <add>, %190, %cst_67 [1] : vector<10x32xf32> to vector<10xf32>
    %192 = vector.shape_cast %191 : vector<10xf32> to vector<10x1xf32>
    %cst_68 = arith.constant 3.200000e+01 : f32
    %193 = vector.broadcast %cst_68 : f32 to vector<10x1xf32>
    %194 = arith.divf %192, %193 : vector<10x1xf32>
    %195 = arith.mulf %189, %189 : vector<10x1xf32>
    %196 = arith.subf %194, %195 : vector<10x1xf32>
    %197 = vector.broadcast %189 : vector<10x1xf32> to vector<10x32xf32>
    %198 = arith.subf %177, %197 : vector<10x32xf32>
    %cst_69 = arith.constant 9.99999974E-6 : f32
    %199 = vector.broadcast %cst_69 : f32 to vector<10x1xf32>
    %200 = arith.addf %196, %199 : vector<10x1xf32>
    %201 = math.rsqrt %200 : vector<10x1xf32>
    %202 = vector.broadcast %201 : vector<10x1xf32> to vector<10x32xf32>
    %203 = arith.mulf %198, %202 : vector<10x32xf32>
    %204 = vector.shape_cast %183 : vector<32xf32> to vector<1x32xf32>
    %205 = vector.broadcast %204 : vector<1x32xf32> to vector<10x32xf32>
    %206 = arith.mulf %203, %205 : vector<10x32xf32>
    %207 = vector.shape_cast %185 : vector<32xf32> to vector<1x32xf32>
    %208 = vector.broadcast %207 : vector<1x32xf32> to vector<10x32xf32>
    %209 = arith.addf %206, %208 : vector<10x32xf32>
    %210 = arith.truncf %209 : vector<10x32xf32> to vector<10x32xbf16>
    %c1_70 = arith.constant 1 : index
    %c0_71 = arith.constant 0 : index
    %c0_72 = arith.constant 0 : index
    %211 = vector.load %arg5[%c1_70, %c0_71, %c0_72] : memref<2x32x96xbf16, #tpu.memory_space<vmem>>, vector<1x32x96xbf16>
    %212 = vector.shape_cast %211 : vector<1x32x96xbf16> to vector<32x96xbf16>
    %cst_73 = arith.constant dense<0.000000e+00> : vector<10x96xf32>
    %213 = tpu.matmul %210, %212, %cst_73 {dimension_numbers = #tpu.dot_dimension_numbers<[1], [0], [0], [1], [0, 0, 1, 1], [], []>} : vector<10x32xbf16>, vector<32x96xbf16>, vector<10x96xf32> -> vector<10x96xf32>
    %c1_74 = arith.constant 1 : index
    %c0_75 = arith.constant 0 : index
    %c0_76 = arith.constant 0 : index
    %214 = vector.load %arg6[%c1_74, %c0_75, %c0_76] : memref<2x1x96xf32, #tpu.memory_space<vmem>>, vector<1x1x96xf32>
    %215 = vector.shape_cast %214 : vector<1x1x96xf32> to vector<1x96xf32>
    %216 = vector.broadcast %215 : vector<1x96xf32> to vector<10x96xf32>
    %217 = arith.addf %213, %216 : vector<10x96xf32>
    %218 = vector.extract_strided_slice %217 {offsets = [0, 0], sizes = [10, 8], strides = [1, 1]} : vector<10x96xf32> to vector<10x8xf32>
    %219 = vector.shape_cast %218 : vector<10x8xf32> to vector<2x5x8xf32>
    %220 = vector.extract_strided_slice %217 {offsets = [0, 8], sizes = [10, 8], strides = [1, 1]} : vector<10x96xf32> to vector<10x8xf32>
    %221 = vector.shape_cast %220 : vector<10x8xf32> to vector<2x5x8xf32>
    %222 = vector.extract_strided_slice %217 {offsets = [0, 16], sizes = [10, 8], strides = [1, 1]} : vector<10x96xf32> to vector<10x8xf32>
    %223 = vector.shape_cast %222 : vector<10x8xf32> to vector<2x5x8xf32>
    %224 = vector.extract_strided_slice %217 {offsets = [0, 24], sizes = [10, 8], strides = [1, 1]} : vector<10x96xf32> to vector<10x8xf32>
    %225 = vector.shape_cast %224 : vector<10x8xf32> to vector<2x5x8xf32>
    %226 = tpu.concatenate %219, %221, %223, %225 in 0 : vector<2x5x8xf32>, vector<2x5x8xf32>, vector<2x5x8xf32>, vector<2x5x8xf32> -> vector<8x5x8xf32>
    %227 = vector.extract_strided_slice %217 {offsets = [0, 32], sizes = [10, 8], strides = [1, 1]} : vector<10x96xf32> to vector<10x8xf32>
    %228 = vector.shape_cast %227 : vector<10x8xf32> to vector<2x5x8xf32>
    %229 = vector.extract_strided_slice %217 {offsets = [0, 40], sizes = [10, 8], strides = [1, 1]} : vector<10x96xf32> to vector<10x8xf32>
    %230 = vector.shape_cast %229 : vector<10x8xf32> to vector<2x5x8xf32>
    %231 = vector.extract_strided_slice %217 {offsets = [0, 48], sizes = [10, 8], strides = [1, 1]} : vector<10x96xf32> to vector<10x8xf32>
    %232 = vector.shape_cast %231 : vector<10x8xf32> to vector<2x5x8xf32>
    %233 = vector.extract_strided_slice %217 {offsets = [0, 56], sizes = [10, 8], strides = [1, 1]} : vector<10x96xf32> to vector<10x8xf32>
    %234 = vector.shape_cast %233 : vector<10x8xf32> to vector<2x5x8xf32>
    %235 = tpu.concatenate %228, %230, %232, %234 in 0 : vector<2x5x8xf32>, vector<2x5x8xf32>, vector<2x5x8xf32>, vector<2x5x8xf32> -> vector<8x5x8xf32>
    %236 = vector.extract_strided_slice %217 {offsets = [0, 64], sizes = [10, 8], strides = [1, 1]} : vector<10x96xf32> to vector<10x8xf32>
    %237 = vector.shape_cast %236 : vector<10x8xf32> to vector<2x5x8xf32>
    %238 = vector.extract_strided_slice %217 {offsets = [0, 72], sizes = [10, 8], strides = [1, 1]} : vector<10x96xf32> to vector<10x8xf32>
    %239 = vector.shape_cast %238 : vector<10x8xf32> to vector<2x5x8xf32>
    %240 = vector.extract_strided_slice %217 {offsets = [0, 80], sizes = [10, 8], strides = [1, 1]} : vector<10x96xf32> to vector<10x8xf32>
    %241 = vector.shape_cast %240 : vector<10x8xf32> to vector<2x5x8xf32>
    %242 = vector.extract_strided_slice %217 {offsets = [0, 88], sizes = [10, 8], strides = [1, 1]} : vector<10x96xf32> to vector<10x8xf32>
    %243 = vector.shape_cast %242 : vector<10x8xf32> to vector<2x5x8xf32>
    %244 = tpu.concatenate %237, %239, %241, %243 in 0 : vector<2x5x8xf32>, vector<2x5x8xf32>, vector<2x5x8xf32>, vector<2x5x8xf32> -> vector<8x5x8xf32>
    "tpu.trace_start"() <{level = 10 : i32, message = "bqd,bkd->bqk"}> : () -> ()
    %cst_77 = arith.constant dense<0.000000e+00> : vector<8x5x5xf32>
    %245 = tpu.matmul %226, %235, %cst_77 {dimension_numbers = #tpu.dot_dimension_numbers<[2], [2], [1], [1], [0, 0, 0, 1, 1, 1], [0], [0]>} : vector<8x5x8xf32>, vector<8x5x8xf32>, vector<8x5x5xf32> -> vector<8x5x5xf32>
    "tpu.trace_stop"() : () -> ()
    %cst_78 = arith.constant dense<0xFF800000> : vector<8x5xf32>
    %246 = vector.multi_reduction <maximumf>, %245, %cst_78 [2] : vector<8x5x5xf32> to vector<8x5xf32>
    %247 = vector.shape_cast %246 : vector<8x5xf32> to vector<8x5x1xf32>
    %248 = vector.broadcast %247 : vector<8x5x1xf32> to vector<8x5x5xf32>
    %249 = arith.subf %245, %248 : vector<8x5x5xf32>
    %250 = math.exp %249 : vector<8x5x5xf32>
    %cst_79 = arith.constant dense<0.000000e+00> : vector<8x5xf32>
    %251 = vector.multi_reduction <add>, %250, %cst_79 [2] : vector<8x5x5xf32> to vector<8x5xf32>
    %252 = vector.shape_cast %251 : vector<8x5xf32> to vector<8x5x1xf32>
    %253 = tpu.reciprocal %252 {approx = true} : vector<8x5x1xf32> -> vector<8x5x1xf32>
    %254 = vector.broadcast %253 : vector<8x5x1xf32> to vector<8x5x5xf32>
    %255 = arith.mulf %250, %254 : vector<8x5x5xf32>
    "tpu.trace_start"() <{level = 10 : i32, message = "bqk,bkd->bqd"}> : () -> ()
    %cst_80 = arith.constant dense<0.000000e+00> : vector<8x5x8xf32>
    %256 = tpu.matmul %255, %244, %cst_80 {dimension_numbers = #tpu.dot_dimension_numbers<[2], [1], [1], [2], [0, 0, 0, 1, 1, 2], [0], [0]>} : vector<8x5x5xf32>, vector<8x5x8xf32>, vector<8x5x8xf32> -> vector<8x5x8xf32>
    "tpu.trace_stop"() : () -> ()
    %257 = vector.shape_cast %256 : vector<8x5x8xf32> to vector<4x10x8xf32>
    %258 = arith.truncf %257 : vector<4x10x8xf32> to vector<4x10x8xbf16>
    %c1_81 = arith.constant 1 : index
    %c0_82 = arith.constant 0 : index
    %c0_83 = arith.constant 0 : index
    %c0_84 = arith.constant 0 : index
    %259 = vector.load %arg7[%c1_81, %c0_82, %c0_83, %c0_84] : memref<2x4x8x32xbf16, #tpu.memory_space<vmem>>, vector<1x4x8x32xbf16>
    %260 = vector.shape_cast %259 : vector<1x4x8x32xbf16> to vector<4x8x32xbf16>
    "tpu.trace_start"() <{level = 10 : i32, message = "hnd,hdk->hnk"}> : () -> ()
    %cst_85 = arith.constant dense<0.000000e+00> : vector<4x10x32xf32>
    %261 = tpu.matmul %258, %260, %cst_85 {dimension_numbers = #tpu.dot_dimension_numbers<[2], [1], [1], [2], [0, 0, 0, 1, 1, 2], [0], [0]>} : vector<4x10x8xbf16>, vector<4x8x32xbf16>, vector<4x10x32xf32> -> vector<4x10x32xf32>
    "tpu.trace_stop"() : () -> ()
    %cst_86 = arith.constant dense<0.000000e+00> : vector<10x32xf32>
    %262 = vector.multi_reduction <add>, %261, %cst_86 [0] : vector<4x10x32xf32> to vector<10x32xf32>
    %263 = arith.addf %177, %262 : vector<10x32xf32>
    %264 = vector.extract_strided_slice %181 {offsets = [0, 0], sizes = [1, 32], strides = [1, 1]} : vector<2x32xf32> to vector<1x32xf32>
    %265 = vector.shape_cast %264 : vector<1x32xf32> to vector<32xf32>
    %266 = vector.shape_cast %265 : vector<32xf32> to vector<1x32xf32>
    %267 = vector.broadcast %266 : vector<1x32xf32> to vector<10x32xf32>
    %268 = arith.addf %263, %267 : vector<10x32xf32>
    %269 = vector.extract_strided_slice %179 {offsets = [2, 0], sizes = [1, 32], strides = [1, 1]} : vector<4x32xf32> to vector<1x32xf32>
    %270 = vector.shape_cast %269 : vector<1x32xf32> to vector<32xf32>
    %271 = vector.extract_strided_slice %179 {offsets = [3, 0], sizes = [1, 32], strides = [1, 1]} : vector<4x32xf32> to vector<1x32xf32>
    %272 = vector.shape_cast %271 : vector<1x32xf32> to vector<32xf32>
    %cst_87 = arith.constant dense<0.000000e+00> : vector<10xf32>
    %273 = vector.multi_reduction <add>, %268, %cst_87 [1] : vector<10x32xf32> to vector<10xf32>
    %274 = vector.shape_cast %273 : vector<10xf32> to vector<10x1xf32>
    %cst_88 = arith.constant 3.200000e+01 : f32
    %275 = vector.broadcast %cst_88 : f32 to vector<10x1xf32>
    %276 = arith.divf %274, %275 : vector<10x1xf32>
    %277 = arith.mulf %268, %268 : vector<10x32xf32>
    %cst_89 = arith.constant dense<0.000000e+00> : vector<10xf32>
    %278 = vector.multi_reduction <add>, %277, %cst_89 [1] : vector<10x32xf32> to vector<10xf32>
    %279 = vector.shape_cast %278 : vector<10xf32> to vector<10x1xf32>
    %cst_90 = arith.constant 3.200000e+01 : f32
    %280 = vector.broadcast %cst_90 : f32 to vector<10x1xf32>
    %281 = arith.divf %279, %280 : vector<10x1xf32>
    %282 = arith.mulf %276, %276 : vector<10x1xf32>
    %283 = arith.subf %281, %282 : vector<10x1xf32>
    %284 = vector.broadcast %276 : vector<10x1xf32> to vector<10x32xf32>
    %285 = arith.subf %268, %284 : vector<10x32xf32>
    %cst_91 = arith.constant 9.99999974E-6 : f32
    %286 = vector.broadcast %cst_91 : f32 to vector<10x1xf32>
    %287 = arith.addf %283, %286 : vector<10x1xf32>
    %288 = math.rsqrt %287 : vector<10x1xf32>
    %289 = vector.broadcast %288 : vector<10x1xf32> to vector<10x32xf32>
    %290 = arith.mulf %285, %289 : vector<10x32xf32>
    %291 = vector.shape_cast %270 : vector<32xf32> to vector<1x32xf32>
    %292 = vector.broadcast %291 : vector<1x32xf32> to vector<10x32xf32>
    %293 = arith.mulf %290, %292 : vector<10x32xf32>
    %294 = vector.shape_cast %272 : vector<32xf32> to vector<1x32xf32>
    %295 = vector.broadcast %294 : vector<1x32xf32> to vector<10x32xf32>
    %296 = arith.addf %293, %295 : vector<10x32xf32>
    %297 = arith.truncf %296 : vector<10x32xf32> to vector<10x32xbf16>
    %c1_92 = arith.constant 1 : index
    %c0_93 = arith.constant 0 : index
    %c0_94 = arith.constant 0 : index
    %298 = vector.load %arg8[%c1_92, %c0_93, %c0_94] : memref<2x32x64xbf16, #tpu.memory_space<vmem>>, vector<1x32x64xbf16>
    %299 = vector.shape_cast %298 : vector<1x32x64xbf16> to vector<32x64xbf16>
    %cst_95 = arith.constant dense<0.000000e+00> : vector<10x64xf32>
    %300 = tpu.matmul %297, %299, %cst_95 {dimension_numbers = #tpu.dot_dimension_numbers<[1], [0], [0], [1], [0, 0, 1, 1], [], []>} : vector<10x32xbf16>, vector<32x64xbf16>, vector<10x64xf32> -> vector<10x64xf32>
    %c1_96 = arith.constant 1 : index
    %c0_97 = arith.constant 0 : index
    %c0_98 = arith.constant 0 : index
    %301 = vector.load %arg11[%c1_96, %c0_97, %c0_98] : memref<2x1x64xf32, #tpu.memory_space<vmem>>, vector<1x1x64xf32>
    %302 = vector.shape_cast %301 : vector<1x1x64xf32> to vector<1x64xf32>
    %303 = vector.broadcast %302 : vector<1x64xf32> to vector<10x64xf32>
    %304 = arith.addf %300, %303 : vector<10x64xf32>
    %cst_99 = arith.constant 1.702000e+00 : f32
    %305 = vector.broadcast %cst_99 : f32 to vector<10x64xf32>
    %306 = arith.mulf %305, %304 : vector<10x64xf32>
    %307 = arith.negf %306 : vector<10x64xf32>
    %308 = math.exp %307 : vector<10x64xf32>
    %cst_100 = arith.constant 1.000000e+00 : f32
    %309 = vector.broadcast %cst_100 : f32 to vector<10x64xf32>
    %310 = arith.addf %309, %308 : vector<10x64xf32>
    %311 = arith.divf %309, %310 : vector<10x64xf32>
    %312 = arith.mulf %304, %311 : vector<10x64xf32>
    %313 = arith.truncf %312 : vector<10x64xf32> to vector<10x64xbf16>
    %c1_101 = arith.constant 1 : index
    %c0_102 = arith.constant 0 : index
    %c0_103 = arith.constant 0 : index
    %314 = vector.load %arg9[%c1_101, %c0_102, %c0_103] : memref<2x64x32xbf16, #tpu.memory_space<vmem>>, vector<1x64x32xbf16>
    %315 = vector.shape_cast %314 : vector<1x64x32xbf16> to vector<64x32xbf16>
    %cst_104 = arith.constant dense<0.000000e+00> : vector<10x32xf32>
    %316 = tpu.matmul %313, %315, %cst_104 {dimension_numbers = #tpu.dot_dimension_numbers<[1], [0], [0], [1], [0, 0, 1, 1], [], []>} : vector<10x64xbf16>, vector<64x32xbf16>, vector<10x32xf32> -> vector<10x32xf32>
    %317 = vector.extract_strided_slice %181 {offsets = [1, 0], sizes = [1, 32], strides = [1, 1]} : vector<2x32xf32> to vector<1x32xf32>
    %318 = vector.shape_cast %317 : vector<1x32xf32> to vector<32xf32>
    %319 = vector.shape_cast %318 : vector<32xf32> to vector<1x32xf32>
    %320 = vector.broadcast %319 : vector<1x32xf32> to vector<10x32xf32>
    %321 = arith.addf %316, %320 : vector<10x32xf32>
    %322 = arith.addf %268, %321 : vector<10x32xf32>
    %323 = vector.shape_cast %322 : vector<10x32xf32> to vector<2x5x32xf32>
    %c0_105 = arith.constant 0 : index
    %c0_106 = arith.constant 0 : index
    %c0_107 = arith.constant 0 : index
    %324 = vector.load %arg12[%c0_105, %c0_106, %c0_107] : memref<2x5x32xf32, #tpu.memory_space<vmem>>, vector<2x5x32xf32>
    tpu.vector_store %arg12[%c0_105, %c0_106, %c0_107], %323 {strides = array<i32>} : memref<2x5x32xf32, #tpu.memory_space<vmem>>, vector<2x5x32xf32>,
    %325 = vector.extract_strided_slice %323 {offsets = [0, 0, 0], sizes = [2, 1, 32], strides = [1, 1, 1]} : vector<2x5x32xf32> to vector<2x1x32xf32>
    %326 = vector.shape_cast %325 : vector<2x1x32xf32> to vector<2x32xf32>
    %c2 = arith.constant 2 : index
    %c0_108 = arith.constant 0 : index
    %327 = vector.load %arg3[%c2, %c0_108] : memref<4x32xf32, #tpu.memory_space<vmem>>, vector<1x32xf32>
    %328 = vector.shape_cast %327 : vector<1x32xf32> to vector<32xf32>
    %c3 = arith.constant 3 : index
    %c0_109 = arith.constant 0 : index
    %329 = vector.load %arg3[%c3, %c0_109] : memref<4x32xf32, #tpu.memory_space<vmem>>, vector<1x32xf32>
    %330 = vector.shape_cast %329 : vector<1x32xf32> to vector<32xf32>
    %cst_110 = arith.constant dense<0.000000e+00> : vector<2xf32>
    %331 = vector.multi_reduction <add>, %326, %cst_110 [1] : vector<2x32xf32> to vector<2xf32>
    %332 = vector.shape_cast %331 : vector<2xf32> to vector<2x1xf32>
    %cst_111 = arith.constant 3.200000e+01 : f32
    %333 = vector.broadcast %cst_111 : f32 to vector<2x1xf32>
    %334 = arith.divf %332, %333 : vector<2x1xf32>
    %335 = arith.mulf %326, %326 : vector<2x32xf32>
    %cst_112 = arith.constant dense<0.000000e+00> : vector<2xf32>
    %336 = vector.multi_reduction <add>, %335, %cst_112 [1] : vector<2x32xf32> to vector<2xf32>
    %337 = vector.shape_cast %336 : vector<2xf32> to vector<2x1xf32>
    %cst_113 = arith.constant 3.200000e+01 : f32
    %338 = vector.broadcast %cst_113 : f32 to vector<2x1xf32>
    %339 = arith.divf %337, %338 : vector<2x1xf32>
    %340 = arith.mulf %334, %334 : vector<2x1xf32>
    %341 = arith.subf %339, %340 : vector<2x1xf32>
    %342 = vector.broadcast %334 : vector<2x1xf32> to vector<2x32xf32>
    %343 = arith.subf %326, %342 : vector<2x32xf32>
    %cst_114 = arith.constant 9.99999974E-6 : f32
    %344 = vector.broadcast %cst_114 : f32 to vector<2x1xf32>
    %345 = arith.addf %341, %344 : vector<2x1xf32>
    %346 = math.rsqrt %345 : vector<2x1xf32>
    %347 = vector.broadcast %346 : vector<2x1xf32> to vector<2x32xf32>
    %348 = arith.mulf %343, %347 : vector<2x32xf32>
    %349 = vector.shape_cast %328 : vector<32xf32> to vector<1x32xf32>
    %350 = vector.broadcast %349 : vector<1x32xf32> to vector<2x32xf32>
    %351 = arith.mulf %348, %350 : vector<2x32xf32>
    %352 = vector.shape_cast %330 : vector<32xf32> to vector<1x32xf32>
    %353 = vector.broadcast %352 : vector<1x32xf32> to vector<2x32xf32>
    %354 = arith.addf %351, %353 : vector<2x32xf32>
    %c0_115 = arith.constant 0 : index
    %c0_116 = arith.constant 0 : index
    %355 = vector.load %arg13[%c0_115, %c0_116] : memref<2x32xf32, #tpu.memory_space<vmem>>, vector<2x32xf32>
    tpu.vector_store %arg13[%c0_115, %c0_116], %354 {strides = array<i32>} : memref<2x32xf32, #tpu.memory_space<vmem>>, vector<2x32xf32>,
    return
  }
}

</mosaic_0001>

<bundles_post_ra>
// kernel: clip_vision_transformer.1
= control target key start
LH: loop header
LB: loop body
LE: loop exit
PB: predicated region body
PF: predicated region fallthrough
CT: control target
= control target key end

     0   :  { %s4704_s0 = inlined_call_operand.vmem [shape: bf16[10,256], index: 0, kind: input, shape index: {}]   ;;  %s4705_s1 = inlined_call_operand.vmem [shape: bf16[256,32], index: 1, kind: input, shape index: {}]   ;;  %s4706_s2 = inlined_call_operand.vmem [shape: f32[10,32], index: 2, kind: input, shape index: {}]   ;;  %s4707_s3 = inlined_call_operand.vmem [shape: f32[4,32], index: 3, kind: input, shape index: {}]   ;;  %s4708_s4 = inlined_call_operand.vmem [shape: f32[2,4,32], index: 4, kind: input, shape index: {}]   ;;  %s4709_s5 = inlined_call_operand.vmem [shape: bf16[2,32,96], index: 5, kind: input, shape index: {}]   ;;  %s4710_s6 = inlined_call_operand.vmem [shape: f32[2,1,96], index: 6, kind: input, shape index: {}]   ;;  %s4711_s7 = inlined_call_operand.vmem [shape: bf16[2,4,8,32], index: 7, kind: input, shape index: {}]   ;;  %s4712_s8 = inlined_call_operand.vmem [shape: bf16[2,32,64], index: 8, kind: input, shape index: {}]   ;;  %s4713_s9 = inlined_call_operand.vmem [shape: bf16[2,64,32], index: 9, kind: input, shape index: {}]   ;;  %s4714_s10 = inlined_call_operand.vmem [shape: f32[2,2,32], index: 10, kind: input, shape index: {}]   ;;  %s4715_s11 = inlined_call_operand.vmem [shape: f32[2,1,64], index: 11, kind: input, shape index: {}]   ;;  %s4716_s12 = inlined_call_operand.vmem [shape: f32[2,5,32], index: 12, kind: output, shape index: {0}]   ;;  %s4717_s13 = inlined_call_operand.hbm [shape: f32[2,32], index: 13, kind: output, shape index: {1}]  }
   0x1   :  { %v3342_v0 = vld [vmem:[%s4705_s1 + $0x38] sm:$0xff]  ;;  %v3341_v2 = vld [vmem:[%s4705_s1 + $0x30] sm:$0xff]  ;;  %v3340_v4 = vld [vmem:[%s4705_s1 + $0x28] sm:$0xff] }
   0x2   :  { %v3350_v1 = vld [vmem:[%s4705_s1 + $0x78] sm:$0xff]  ;;  %187 = vmatpush.bf16.msra.mxu0 %v3342_v0  ;;  %v3349_v3 = vld [vmem:[%s4705_s1 + $0x70] sm:$0xff]  ;;  %v3348_v5 = vld [vmem:[%s4705_s1 + $0x68] sm:$0xff] }
   0x3   :  { %201 = vmatpush.bf16.msra.mxu1 %v3350_v1 }
   0x6   :  { %188 = vmatpush.bf16.msra.mxu0 %v3341_v2 }
   0x7   :  { %202 = vmatpush.bf16.msra.mxu1 %v3349_v3 }
   0x8   :  { %19 = vsyncpa [#allocation3], 0  ;;  %v3339_v6 = vld [vmem:[%s4705_s1 + $0x20] sm:$0xff]  ;;  %v3338_v8 = vld [vmem:[%s4705_s1 + $0x18] sm:$0xff]  ;;  %vm217_vm0 = vcmask 261120   ;;  %vm221_vm1 = vcmask 254976  }
   0x9   :  { %v3347_v7 = vld [vmem:[%s4705_s1 + $0x60] sm:$0xff]  ;;  %v3346_v9 = vld [vmem:[%s4705_s1 + $0x58] sm:$0xff]  ;;  %v3337_v10 = vld [vmem:[%s4705_s1 + $0x10] sm:$0xff]  ;;  %v3514_v38 = vmov 32.0   ;;  %s3515_s27 = smov 120   ;;  %s3516_s28 = smov 112  }
   0xa   :  { %189 = vmatpush.bf16.msra.mxu0 %v3340_v4  ;;  %v3345_v11 = vld [vmem:[%s4705_s1 + $0x50] sm:$0xff]  ;;  %v3336_v12 = vld [vmem:[%s4705_s1 + $0x8] sm:$0xff]  ;;  %v3335_v14 = vld [vmem:[%s4705_s1] sm:$0xff]  ;;  %3382 = vrcp.f32 %v3514_v38  ;;  %s3517_s29 = smov 104   ;;  %s3518_s30 = smov 96   ;;  %vm466_vm15 = vcmask 64512  }
   0xb   :  { %203 = vmatpush.bf16.msra.mxu1 %v3348_v5  ;;  %v3344_v13 = vld [vmem:[%s4705_s1 + $0x48] sm:$0xff]  ;;  %v3343_v15 = vld [vmem:[%s4705_s1 + $0x40] sm:$0xff]  ;;  %s3519_s1 = smov 64  }
   0xc   :  { %v3093_v16 = vld [vmem:[%s4704_s0] sm:$0xf]  ;;  %v3334_v17 = vld [vmem:[%s4704_s0 + $0x4] sm:$0x10]  ;;  %v3333_v18 = vld [vmem:[%s4704_s0 + $0x4] sm:$0xf] }
   0xd   :  { %v3095_v19 = vld [vmem:[%s4704_s0 + $0x8] sm:$0x10]  ;;  %v3094_v20 = vor.u32 %v3334_v17, %v3093_v16  ;;  %v79_v22 = vld [vmem:[%s4706_s2] sm:$0xff]  ;;  %v80_v29 = vld [vmem:[%s4706_s2 + $0x8] sm:$0x3] }
   0xe   :  { %190 = vmatpush.bf16.msra.mxu0 %v3339_v6  ;;  %v3098_v21 = vor.u32 %v3333_v18, %v3095_v19  ;;  %v3374_v4 = vld [vmem:[%s4707_s3] ss:$0 sm:$0xff] }
   0xf   :  { %204 = vmatpush.bf16.msra.mxu1 %v3347_v7 }
  0x10   :  { %v3383_v39 = vpop.eup %3382 }
  0x11   :  { %v226_v40 = vmul.f32 32.0, %v3383_v39  ;;  %vm230_vm2 = vweird.f32 %v3383_v39 }
  0x12   :  { %191 = vmatpush.bf16.msra.mxu0 %v3338_v8  ;;  %v3375_v8 = vld [vmem:[%s4707_s3 + $0x1] ss:$0 sm:$0xff] }
  0x13   :  { %205 = vmatpush.bf16.msra.mxu1 %v3346_v9  ;;  %v227_v41 = vsub.f32 1.0, %v226_v40 }
  0x15   :  { %v228_v42 = vmul.f32 %v3383_v39, %v227_v41 }
  0x16   :  { %192 = vmatpush.bf16.msra.mxu0 %v3337_v10 }
  0x17   :  { %206 = vmatpush.bf16.msra.mxu1 %v3345_v11  ;;  %v229_v43 = vadd.f32 %v3383_v39, %v228_v42 }
  0x19   :  { %v3661_v44 = vsel %vm230_vm2, %v3383_v39, %v229_v43  ;;  %vm813_vm2 = vcmask 36864  }
  0x1a   :  { %193 = vmatpush.bf16.msra.mxu0 %v3336_v12 }
  0x1b   :  { %207 = vmatpush.bf16.msra.mxu1 %v3344_v13 }
  0x1e   :  { %194 = vmatpush.bf16.msra.mxu0 %v3335_v14 }
  0x1f   :  { %208 = vmatpush.bf16.msra.mxu1 %v3343_v15 }
  0x21   :  { %195 = vmatmul.bf16.vlgmr.msra.gmra.mxu0 %v3094_v20 }
  0x22   :  { %209 = vmatmul.bf16.vlgmr.msra.gmra.mxu1 %v3098_v21 }
  0x9e   :  { %v196_v23 = vpop.f32.mrf.mxu0 }
  0x9f   :  { %v210_v24 = vpop.f32.mrf.mxu1  ;;  %v197_v25 = vadd.f32 %v196_v23, %v79_v22 }
  0xa1   :  { %v211_v26 = vadd.f32 %v210_v24, %v197_v25 }
  0xa3   :  { %v218_v27 = vsel %vm217_vm0, %v211_v26, 0.0  ;;  %v234_v28 = vmul.f32 %v211_v26, %v211_v26 }
  0xa4   :  { %219 = vadd.xlane.f32.xlu0 %v218_v27 }
  0xa5   :  { %v236_v30 = vsel %vm217_vm0, %v234_v28, 0.0  ;;  %v3352_v28 = vld [vmem:[%s4709_s5 + $0x8] sm:$0xff] }
  0xa6   :  { %v198_v31 = vpop.f32.mrf.mxu0  ;;  %237 = vadd.xlane.f32.xlu1 %v236_v30  ;;  %366 = vmatpush.bf16.msra.mxu2 %v3352_v28 }
  0xa7   :  { %v199_v32 = vadd.f32 %v198_v31, %v80_v29  ;;  %v212_v33 = vpop.f32.mrf.mxu1  ;;  %v3351_v31 = vld [vmem:[%s4709_s5] sm:$0xff] }
  0xa9   :  { %v213_v34 = vadd.f32 %v212_v33, %v199_v32 }
  0xaa   :  { %367 = vmatpush.bf16.msra.mxu2 %v3351_v31 }
  0xab   :  { %v222_v35 = vsel %vm221_vm1, %v213_v34, 0.0  ;;  %v235_v36 = vmul.f32 %v213_v34, %v213_v34 }
  0xac   :  { %223 = vadd.xlane.f32.xlu0 %v222_v35 }
  0xad   :  { %v239_v37 = vsel %vm221_vm1, %v235_v36, 0.0 }
  0xae   :  { %240 = vadd.xlane.f32.xlu1 %v239_v37 }
 0x117   :  { %v220_v45 = vpop.xlane.xlu0 %219 }
 0x118   :  { %v232_v46 = vmul.f32 %v3661_v44, %v220_v45 }
 0x119   :  { %v238_v47 = vpop.xlane.xlu1 %237 }
 0x11a   :  { %v244_v48 = vmul.f32 %v232_v46, %v232_v46  ;;  %v242_v49 = vmul.f32 %v238_v47, %v3661_v44  ;;  %v248_v3 = vsub.f32 %v211_v26, %v232_v46 }
 0x11c   :  { %v246_v50 = vsub.f32 %v242_v49, %v244_v48 }
 0x11e   :  { %v250_v51 = vadd.f32 1e-05, %v246_v50 }
 0x11f   :  { %v224_v52 = vpop.xlane.xlu0 %223 }
 0x120   :  { %3384 = vrsqrt.f32 %v250_v51  ;;  %v233_v53 = vmul.f32 %v3661_v44, %v224_v52  ;;  %vm258_vm4 = vweird.f32 %v250_v51 }
 0x121   :  { %v241_v54 = vpop.xlane.xlu1 %240 }
 0x122   :  { %v245_v55 = vmul.f32 %v233_v53, %v233_v53  ;;  %v243_v56 = vmul.f32 %v241_v54, %v3661_v44  ;;  %v249_v14 = vsub.f32 %v213_v34, %v233_v53  ;;  %v280_v53 = vld [vmem:[%s4708_s4] sm:$0xf] }
 0x124   :  { %v247_v57 = vsub.f32 %v243_v56, %v245_v55 }
 0x126   :  { %v3385_v58 = vpop.eup %3384  ;;  %v251_v59 = vadd.f32 1e-05, %v247_v57  ;;  %v330_v57 = vperm.slane %v280_v53, 0 }
 0x127   :  { %v253_v60 = vmul.f32 %v3385_v58, %v250_v51  ;;  %vm259_vm3 = vweird.f32 %v3385_v58 }
 0x128   :  { %3386 = vrsqrt.f32 %v251_v59  ;;  %vm260_vm5 = vmor %vm258_vm4, %vm259_vm3  ;;  %vm268_vm7 = vweird.f32 %v251_v59  ;;  %vm918_vm3 = vcmask 1044480   ;;  %vm914_vm4 = vcmask 39936  }
 0x129   :  { %v254_v61 = vmul.f32 %v3385_v58, %v253_v60 }
 0x12b   :  { %v255_v62 = vmul.f32 0.5, %v254_v61 }
 0x12d   :  { %v256_v63 = vsub.f32 1.5, %v255_v62 }
 0x12e   :  { %v3387_v0 = vpop.eup %3386 }
 0x12f   :  { %v257_v1 = vmul.f32 %v3385_v58, %v256_v63  ;;  %v263_v2 = vmul.f32 %v3387_v0, %v251_v59  ;;  %vm269_vm6 = vweird.f32 %v3387_v0  ;;  %v333_v63 = vperm.slane %v280_v53, 1 }
 0x130   :  { %vm270_vm8 = vmor %vm268_vm7, %vm269_vm6 }
 0x131   :  { %v261_v5 = vsel %vm260_vm5, %v3385_v58, %v257_v1  ;;  %v264_v6 = vmul.f32 %v3387_v0, %v263_v2  ;;  %vm1323_vm5 = vcmask 1043456  }
 0x132   :  { %v272_v7 = vmul.f32 %v261_v5, %v248_v3 }
 0x133   :  { %v265_v9 = vmul.f32 0.5, %v264_v6 }
 0x134   :  { %v275_v10 = vmul.f32 %v3374_v4, %v272_v7 }
 0x135   :  { %v266_v11 = vsub.f32 1.5, %v265_v9 }
 0x136   :  { %v3673_v12 = vadd.f32 %v3375_v8, %v275_v10 }
 0x137   :  { %v267_v13 = vmul.f32 %v3387_v0, %v266_v11 }
 0x138   :  { %v282_v15 = vsel %vm217_vm0, %v3673_v12, 0.0  ;;  %v290_v16 = vmul.f32 %v3673_v12, %v3673_v12 }
 0x139   :  { %v271_v17 = vsel %vm270_vm8, %v3387_v0, %v267_v13  ;;  %283 = vadd.xlane.f32.xlu2 %v282_v15 }
 0x13a   :  { %v273_v18 = vmul.f32 %v271_v17, %v249_v14  ;;  %v292_v19 = vsel %vm217_vm0, %v290_v16, 0.0 }
 0x13b   :  { %293 = vadd.xlane.f32.xlu0 %v292_v19 }
 0x13c   :  { %v276_v20 = vmul.f32 %v3374_v4, %v273_v18  ;;  %v3376_v4 = vld [vmem:[%s4710_s6] ss:$0 sm:$0xff] }
 0x13e   :  { %v3680_v21 = vadd.f32 %v3375_v8, %v276_v20 }
 0x140   :  { %v285_v22 = vsel %vm221_vm1, %v3680_v21, 0.0  ;;  %v291_v23 = vmul.f32 %v3680_v21, %v3680_v21 }
 0x141   :  { %286 = vadd.xlane.f32.xlu2 %v285_v22 }
 0x142   :  { %v295_v24 = vsel %vm221_vm1, %v291_v23, 0.0 }
 0x143   :  { %296 = vadd.xlane.f32.xlu1 %v295_v24 }
 0x1ac   :  { %v284_v25 = vpop.xlane.xlu2 %283 }
 0x1ad   :  { %v288_v26 = vmul.f32 %v284_v25, %v3661_v44 }
 0x1ae   :  { %v294_v27 = vpop.xlane.xlu0 %293 }
 0x1af   :  { %v300_v29 = vmul.f32 %v288_v26, %v288_v26  ;;  %v298_v30 = vmul.f32 %v294_v27, %v3661_v44  ;;  %v304_v54 = vsub.f32 %v3673_v12, %v288_v26 }
 0x1b1   :  { %v302_v32 = vsub.f32 %v298_v30, %v300_v29 }
 0x1b3   :  { %v306_v33 = vadd.f32 1e-05, %v302_v32 }
 0x1b4   :  { %v287_v34 = vpop.xlane.xlu2 %286 }
 0x1b5   :  { %3388 = vrsqrt.f32 %v306_v33  ;;  %v289_v35 = vmul.f32 %v287_v34, %v3661_v44  ;;  %vm314_vm10 = vweird.f32 %v306_v33 }
 0x1b6   :  { %v297_v36 = vpop.xlane.xlu1 %296 }
 0x1b7   :  { %v301_v37 = vmul.f32 %v289_v35, %v289_v35  ;;  %v299_v38 = vmul.f32 %v297_v36, %v3661_v44  ;;  %v305_v59 = vsub.f32 %v3680_v21, %v289_v35 }
 0x1b9   :  { %v303_v39 = vsub.f32 %v299_v38, %v301_v37 }
 0x1bb   :  { %v3389_v40 = vpop.eup %3388  ;;  %v307_v41 = vadd.f32 1e-05, %v303_v39 }
 0x1bc   :  { %v309_v42 = vmul.f32 %v3389_v40, %v306_v33  ;;  %vm315_vm9 = vweird.f32 %v3389_v40 }
 0x1bd   :  { %3390 = vrsqrt.f32 %v307_v41  ;;  %vm316_vm11 = vmor %vm314_vm10, %vm315_vm9  ;;  %vm324_vm13 = vweird.f32 %v307_v41 }
 0x1be   :  { %v310_v43 = vmul.f32 %v3389_v40, %v309_v42 }
 0x1c0   :  { %v311_v45 = vmul.f32 0.5, %v310_v43 }
 0x1c2   :  { %v312_v46 = vsub.f32 1.5, %v311_v45 }
 0x1c3   :  { %v3391_v47 = vpop.eup %3390 }
 0x1c4   :  { %v313_v48 = vmul.f32 %v3389_v40, %v312_v46  ;;  %v319_v49 = vmul.f32 %v3391_v47, %v307_v41  ;;  %vm325_vm12 = vweird.f32 %v3391_v47 }
 0x1c5   :  { %vm326_vm14 = vmor %vm324_vm13, %vm325_vm12 }
 0x1c6   :  { %v320_v50 = vmul.f32 %v3391_v47, %v319_v49  ;;  %v317_v51 = vsel %vm316_vm11, %v3389_v40, %v313_v48 }
 0x1c7   :  { %v328_v56 = vmul.f32 %v317_v51, %v304_v54 }
 0x1c8   :  { %v321_v52 = vmul.f32 0.5, %v320_v50 }
 0x1c9   :  { %v331_v62 = vmul.f32 %v330_v57, %v328_v56 }
 0x1ca   :  { %v322_v55 = vsub.f32 1.5, %v321_v52 }
 0x1cb   :  { %v334_v1 = vadd.f32 %v333_v63, %v331_v62 }
 0x1cc   :  { %v323_v58 = vmul.f32 %v3391_v47, %v322_v55 }
 0x1ce   :  { %v327_v60 = vsel %vm326_vm14, %v3391_v47, %v323_v58 }
 0x1cf   :  { %v329_v61 = vmul.f32 %v327_v60, %v305_v59 }
 0x1d1   :  { %v332_v0 = vmul.f32 %v330_v57, %v329_v61 }
 0x1d3   :  { %v335_v2 = vadd.f32 %v333_v63, %v332_v0 }
 0x1d5   :  { %v336_v3 = vpack.c.bf16 %v335_v2, %v334_v1 }
 0x1d7   :  { %3171 = vmatmul.msk.bf16.vlgmr.msra.gmra.mxu2 %vm217_vm0, %v336_v3 }
 0x25a   :  { %v369_v5 = vpop.f32.mrf.mxu2 }
 0x25b   :  { %v3706_v6 = vadd.f32 %v3376_v4, %v369_v5 }
 0x25d   :  { %444 = vst [vmem:[#allocation1] ss:$9 sm:$0xff] %v3706_v6  ;;  %384 = vrot.lane.b32.xlu2 %v3706_v6, %s3515_s27  ;;  %v3712_v7 = vrot.slane %v3706_v6, 2  ;;  %v3715_v8 = vrot.slane %v3706_v6, 3  ;;  %v3718_v9 = vrot.slane %v3706_v6, 4  ;;  %v3721_v10 = vrot.slane %v3706_v6, 1 }
 0x25e   :  { %v3732_v11 = vrot.slane %v3706_v6, 6  ;;  %v3747_v16 = vrot.slane %v3706_v6, 5  ;;  %v3752_v17 = vrot.slane %v3706_v6, 7 }
 0x25f   :  { %450 = vst [vmem:[#allocation1 + $0x3] ss:$9 sm:$0xff] %v3715_v8  ;;  %388 = vrot.lane.b32.xlu1 %v3712_v7, %s3515_s27  ;;  %386 = vrot.lane.b32.xlu0 %v3721_v10, %s3515_s27 }
 0x260   :  { %452 = vst [vmem:[#allocation1 + $0x4] ss:$9 sm:$0xff] %v3718_v9 }
 0x261   :  { %446 = vst [vmem:[#allocation1 + $0x1] ss:$9 sm:$0xff] %v3721_v10 }
 0x262   :  { %448 = vst [vmem:[#allocation1 + $0x2] ss:$9 sm:$0xff] %v3712_v7  ;;  %v371_v13 = vpop.f32.mrf.mxu2 }
 0x263   :  { %v3742_v15 = vadd.f32 %v3376_v4, %v371_v13 }
 0x265   :  { %390 = vrot.lane.b32.xlu2 %v3715_v8, %s3515_s27  ;;  %v3755_v18 = vrot.slane %v3742_v15, 1 }
 0x267   :  { %396 = vrot.lane.b32.xlu1 %v3732_v11, %s3515_s27  ;;  %392 = vrot.lane.b32.xlu0 %v3718_v9, %s3515_s27 }
 0x269   :  { %v3740_v14 = vld [vmem:[#allocation1] sm:$0xff] }
 0x26a   :  { %458 = vst [vmem:[#allocation1 + $0x2] ss:$9 sm:$0xff] %v3712_v7 }
 0x26b   :  { %454 = vst [vmem:[#allocation1] ss:$9 sm:$0xff] %v3706_v6 }
 0x26c   :  { %456 = vst [vmem:[#allocation1 + $0x1] ss:$9 sm:$0xff] %v3721_v10 }
 0x26d   :  { %460 = vst [vmem:[#allocation1 + $0x3] ss:$9 sm:$0xff] %v3715_v8  ;;  %394 = vrot.lane.b32.xlu2 %v3747_v16, %s3515_s27 }
 0x26e   :  { %462 = vst [vmem:[#allocation1 + $0x4] ss:$9 sm:$0xff] %v3718_v9 }
 0x26f   :  { %402 = vrot.lane.b32.xlu1 %v3755_v18, %s3515_s27  ;;  %398 = vrot.lane.b32.xlu0 %v3752_v17, %s3515_s27 }
 0x275   :  { %v463_v19 = vld [vmem:[#allocation1] sm:$0xff]  ;;  %400 = vrot.lane.b32.xlu2 %v3742_v15, %s3515_s27 }
 0x276   :  { %491 = vst [vmem:[#allocation1] ss:$9 sm:$0xff] %v3747_v16 }
 0x277   :  { %493 = vst [vmem:[#allocation1 + $0x1] ss:$9 sm:$0xff] %v3732_v11  ;;  %408 = vrot.lane.b32.xlu1 %v3712_v7, %s3516_s28  ;;  %404 = vrot.lane.b32.xlu0 %v3706_v6, %s3516_s28 }
 0x278   :  { %495 = vst [vmem:[#allocation1 + $0x2] ss:$9 sm:$0xff] %v3752_v17 }
 0x279   :  { %497 = vst [vmem:[#allocation1 + $0x3] ss:$9 sm:$0xff] %v3742_v15 }
 0x27a   :  { %499 = vst [vmem:[#allocation1 + $0x4] ss:$9 sm:$0xff] %v3755_v18 }
 0x27d   :  { %406 = vrot.lane.b32.xlu2 %v3721_v10, %s3516_s28 }
 0x27f   :  { %414 = vrot.lane.b32.xlu1 %v3747_v16, %s3516_s28  ;;  %410 = vrot.lane.b32.xlu0 %v3715_v8, %s3516_s28 }
 0x281   :  { %v3781_v20 = vld [vmem:[#allocation1] sm:$0xff] }
 0x282   :  { %507 = vst [vmem:[#allocation1 + $0x3] ss:$9 sm:$0xff] %v3742_v15 }
 0x283   :  { %501 = vst [vmem:[#allocation1] ss:$9 sm:$0xff] %v3747_v16 }
 0x284   :  { %503 = vst [vmem:[#allocation1 + $0x1] ss:$9 sm:$0xff] %v3732_v11 }
 0x285   :  { %505 = vst [vmem:[#allocation1 + $0x2] ss:$9 sm:$0xff] %v3752_v17  ;;  %412 = vrot.lane.b32.xlu2 %v3718_v9, %s3516_s28 }
 0x286   :  { %509 = vst [vmem:[#allocation1 + $0x4] ss:$9 sm:$0xff] %v3755_v18 }
 0x287   :  { %420 = vrot.lane.b32.xlu1 %v3742_v15, %s3516_s28  ;;  %416 = vrot.lane.b32.xlu0 %v3732_v11, %s3516_s28 }
 0x28d   :  { %418 = vrot.lane.b32.xlu2 %v3752_v17, %s3516_s28  ;;  %v510_v22 = vld [vmem:[#allocation1] sm:$0xff] }
 0x28f   :  { %426 = vrot.lane.b32.xlu1 %v3721_v10, %s3517_s29  ;;  %422 = vrot.lane.b32.xlu0 %v3755_v18, %s3516_s28 }
 0x295   :  { %424 = vrot.lane.b32.xlu2 %v3706_v6, %s3517_s29 }
 0x297   :  { %432 = vrot.lane.b32.xlu1 %v3718_v9, %s3517_s29  ;;  %428 = vrot.lane.b32.xlu0 %v3712_v7, %s3517_s29 }
 0x29d   :  { %430 = vrot.lane.b32.xlu2 %v3715_v8, %s3517_s29 }
 0x29f   :  { %438 = vrot.lane.b32.xlu1 %v3752_v17, %s3517_s29  ;;  %434 = vrot.lane.b32.xlu0 %v3747_v16, %s3517_s29 }
 0x2a5   :  { %436 = vrot.lane.b32.xlu2 %v3732_v11, %s3517_s29 }
 0x2a7   :  { %440 = vrot.lane.b32.xlu0 %v3742_v15, %s3517_s29  ;;  %464 = vrot.lane.b32.xlu1 %v463_v19, %s3518_s30 }
 0x2ad   :  { %442 = vrot.lane.b32.xlu2 %v3755_v18, %s3517_s29 }
 0x2af   :  { %511 = vrot.lane.b32.xlu0 %v510_v22, %s3518_s30 }
 0x2b7   :  { %v3820_v23 = vpop.permute.xlu2 %384 }
 0x2b8   :  { %537 = vst [vmem:[#allocation1] ss:$9 sm:$0xff] %v3820_v23 }
 0x2bf   :  { %v3823_v24 = vpop.permute.xlu2 %390 }
 0x2c0   :  { %543 = vst [vmem:[#allocation1 + $0x3] ss:$9 sm:$0xff] %v3823_v24 }
 0x2c7   :  { %v3840_v29 = vpop.permute.xlu2 %394 }
 0x2cf   :  { %v3848_v32 = vpop.permute.xlu2 %400 }
 0x2d1   :  { %v3826_v25 = vpop.permute.xlu1 %388  ;;  %v3828_v26 = vpop.permute.xlu0 %386 }
 0x2d2   :  { %541 = vst [vmem:[#allocation1 + $0x2] ss:$9 sm:$0xff] %v3826_v25 }
 0x2d3   :  { %539 = vst [vmem:[#allocation1 + $0x1] ss:$9 sm:$0xff] %v3828_v26 }
 0x2d7   :  { %v3862_v36 = vpop.permute.xlu2 %406 }
 0x2d9   :  { %v3832_v27 = vpop.permute.xlu0 %392  ;;  %v3843_v30 = vpop.permute.xlu1 %396 }
 0x2da   :  { %545 = vst [vmem:[#allocation1 + $0x4] ss:$9 sm:$0xff] %v3832_v27 }
 0x2df   :  { %v3869_v39 = vpop.permute.xlu2 %412 }
 0x2e1   :  { %v3835_v28 = vld [vmem:[#allocation1] sm:$0xff]  ;;  %v3852_v33 = vpop.permute.xlu1 %402  ;;  %v3855_v34 = vpop.permute.xlu0 %398 }
 0x2e2   :  { %547 = vst [vmem:[#allocation1] ss:$9 sm:$0xff] %v3820_v23 }
 0x2e3   :  { %549 = vst [vmem:[#allocation1 + $0x1] ss:$9 sm:$0xff] %v3828_v26 }
 0x2e4   :  { %551 = vst [vmem:[#allocation1 + $0x2] ss:$9 sm:$0xff] %v3826_v25 }
 0x2e5   :  { %553 = vst [vmem:[#allocation1 + $0x3] ss:$9 sm:$0xff] %v3823_v24 }
 0x2e6   :  { %555 = vst [vmem:[#allocation1 + $0x4] ss:$9 sm:$0xff] %v3832_v27 }
 0x2e7   :  { %v3894_v48 = vpop.permute.xlu2 %418 }
 0x2e9   :  { %v3867_v37 = vpop.permute.xlu0 %404  ;;  %v3874_v40 = vpop.permute.xlu1 %408 }
 0x2ed   :  { %v556_v31 = vld [vmem:[#allocation1] sm:$0xff] }
 0x2ee   :  { %583 = vst [vmem:[#allocation1] ss:$9 sm:$0xff] %v3840_v29  ;;  %557 = vrot.lane.b32.xlu2 %v556_v31, %s3518_s30 }
 0x2ef   :  { %585 = vst [vmem:[#allocation1 + $0x1] ss:$9 sm:$0xff] %v3843_v30  ;;  %v3911_v52 = vpop.permute.xlu2 %424 }
 0x2f0   :  { %589 = vst [vmem:[#allocation1 + $0x3] ss:$9 sm:$0xff] %v3848_v32 }
 0x2f1   :  { %591 = vst [vmem:[#allocation1 + $0x4] ss:$9 sm:$0xff] %v3852_v33  ;;  %v3878_v41 = vpop.permute.xlu0 %410  ;;  %v3884_v43 = vpop.permute.xlu1 %414 }
 0x2f2   :  { %587 = vst [vmem:[#allocation1 + $0x2] ss:$9 sm:$0xff] %v3855_v34 }
 0x2f7   :  { %v3921_v56 = vpop.permute.xlu2 %430 }
 0x2f9   :  { %v3858_v35 = vld [vmem:[#allocation1] sm:$0xff]  ;;  %v3890_v45 = vpop.permute.xlu0 %416  ;;  %v3892_v47 = vpop.permute.xlu1 %420 }
 0x2fa   :  { %593 = vst [vmem:[#allocation1] ss:$9 sm:$0xff] %v3840_v29 }
 0x2fb   :  { %595 = vst [vmem:[#allocation1 + $0x1] ss:$9 sm:$0xff] %v3843_v30 }
 0x2fc   :  { %597 = vst [vmem:[#allocation1 + $0x2] ss:$9 sm:$0xff] %v3855_v34 }
 0x2fd   :  { %599 = vst [vmem:[#allocation1 + $0x3] ss:$9 sm:$0xff] %v3848_v32 }
 0x2fe   :  { %601 = vst [vmem:[#allocation1 + $0x4] ss:$9 sm:$0xff] %v3852_v33 }
 0x2ff   :  { %v3937_v61 = vpop.permute.xlu2 %436 }
 0x301   :  { %v3901_v49 = vpop.permute.xlu0 %422  ;;  %v3904_v50 = vpop.permute.xlu1 %426 }
 0x305   :  { %v602_v38 = vld [vmem:[#allocation1] sm:$0xff] }
 0x306   :  { %631 = vst [vmem:[#allocation1 + $0x1] ss:$9 sm:$0xff] %v3862_v36  ;;  %603 = vrot.lane.b32.xlu1 %v602_v38, %s3518_s30 }
 0x307   :  { %637 = vst [vmem:[#allocation1 + $0x4] ss:$9 sm:$0xff] %v3869_v39  ;;  %v3945_v1 = vpop.permute.xlu2 %442 }
 0x308   :  { %633 = vst [vmem:[#allocation1 + $0x2] ss:$9 sm:$0xff] %v3874_v40 }
 0x309   :  { %629 = vst [vmem:[#allocation1] ss:$9 sm:$0xff] %v3867_v37  ;;  %v3915_v53 = vpop.permute.xlu0 %428  ;;  %v3917_v54 = vpop.permute.xlu1 %432 }
 0x30a   :  { %635 = vst [vmem:[#allocation1 + $0x3] ss:$9 sm:$0xff] %v3878_v41 }
 0x311   :  { %v3881_v42 = vld [vmem:[#allocation1] sm:$0xff]  ;;  %v3926_v57 = vpop.permute.xlu0 %434  ;;  %v3929_v58 = vpop.permute.xlu1 %438 }
 0x312   :  { %639 = vst [vmem:[#allocation1] ss:$9 sm:$0xff] %v3867_v37 }
 0x313   :  { %641 = vst [vmem:[#allocation1 + $0x1] ss:$9 sm:$0xff] %v3862_v36 }
 0x314   :  { %643 = vst [vmem:[#allocation1 + $0x2] ss:$9 sm:$0xff] %v3874_v40 }
 0x315   :  { %645 = vst [vmem:[#allocation1 + $0x3] ss:$9 sm:$0xff] %v3878_v41 }
 0x316   :  { %647 = vst [vmem:[#allocation1 + $0x4] ss:$9 sm:$0xff] %v3869_v39 }
 0x319   :  { %v3935_v60 = vpop.permute.xlu0 %440  ;;  %v465_v62 = vpop.permute.xlu1 %464 }
 0x31a   :  { %3172 = vmatpush.xpose.msk.msra.mxu3 %vm466_vm15, %v465_v62 }
 0x31d   :  { %v648_v46 = vld [vmem:[#allocation1] sm:$0xff]  ;;  %3173 = vmatmul.msk.f32.vlgmr.msra.gmra.mxu3 %vm466_vm15, %v3740_v14 }
 0x31e   :  { %675 = vst [vmem:[#allocation1] ss:$9 sm:$0xff] %v3884_v43  ;;  %649 = vrot.lane.b32.xlu0 %v648_v46, %s3518_s30 }
 0x31f   :  { %679 = vst [vmem:[#allocation1 + $0x2] ss:$9 sm:$0xff] %v3894_v48 }
 0x320   :  { %681 = vst [vmem:[#allocation1 + $0x3] ss:$9 sm:$0xff] %v3892_v47 }
 0x321   :  { %677 = vst [vmem:[#allocation1 + $0x1] ss:$9 sm:$0xff] %v3890_v45  ;;  %v512_v0 = vpop.permute.xlu0 %511 }
 0x322   :  { %683 = vst [vmem:[#allocation1 + $0x4] ss:$9 sm:$0xff] %v3901_v49  ;;  %3174 = vmatpush.xpose.msk.msrb.mxu3 %vm466_vm15, %v512_v0 }
 0x325   :  { %3175 = vmatmul.msk.f32.vlgmr.msrb.gmra.mxu3 %vm466_vm15, %v3781_v20 }
 0x329   :  { %v3906_v51 = vld [vmem:[#allocation1] sm:$0xff] }
 0x32a   :  { %685 = vst [vmem:[#allocation1] ss:$9 sm:$0xff] %v3884_v43 }
 0x32b   :  { %687 = vst [vmem:[#allocation1 + $0x1] ss:$9 sm:$0xff] %v3890_v45 }
 0x32c   :  { %689 = vst [vmem:[#allocation1 + $0x2] ss:$9 sm:$0xff] %v3894_v48 }
 0x32d   :  { %691 = vst [vmem:[#allocation1 + $0x3] ss:$9 sm:$0xff] %v3892_v47 }
 0x32e   :  { %693 = vst [vmem:[#allocation1 + $0x4] ss:$9 sm:$0xff] %v3901_v49 }
 0x335   :  { %v694_v55 = vld [vmem:[#allocation1] sm:$0xff] }
 0x336   :  { %721 = vst [vmem:[#allocation1] ss:$9 sm:$0xff] %v3911_v52  ;;  %695 = vrot.lane.b32.xlu2 %v694_v55, %s3518_s30 }
 0x337   :  { %723 = vst [vmem:[#allocation1 + $0x1] ss:$9 sm:$0xff] %v3904_v50 }
 0x338   :  { %727 = vst [vmem:[#allocation1 + $0x3] ss:$9 sm:$0xff] %v3921_v56 }
 0x339   :  { %729 = vst [vmem:[#allocation1 + $0x4] ss:$9 sm:$0xff] %v3917_v54 }
 0x33a   :  { %725 = vst [vmem:[#allocation1 + $0x2] ss:$9 sm:$0xff] %v3915_v53 }
 0x341   :  { %v3931_v59 = vld [vmem:[#allocation1] sm:$0xff] }
 0x342   :  { %731 = vst [vmem:[#allocation1] ss:$9 sm:$0xff] %v3911_v52 }
 0x343   :  { %733 = vst [vmem:[#allocation1 + $0x1] ss:$9 sm:$0xff] %v3904_v50 }
 0x344   :  { %735 = vst [vmem:[#allocation1 + $0x2] ss:$9 sm:$0xff] %v3915_v53 }
 0x345   :  { %737 = vst [vmem:[#allocation1 + $0x3] ss:$9 sm:$0xff] %v3921_v56 }
 0x346   :  { %739 = vst [vmem:[#allocation1 + $0x4] ss:$9 sm:$0xff] %v3917_v54 }
 0x348   :  { %v558_v4 = vpop.permute.xlu2 %557 }
 0x349   :  { %3176 = vmatpush.xpose.msk.msra.mxu3 %vm466_vm15, %v558_v4 }
 0x34c   :  { %3177 = vmatmul.msk.f32.vlgmr.msra.gmra.mxu3 %vm466_vm15, %v3835_v28 }
 0x34d   :  { %v740_v63 = vld [vmem:[#allocation1] sm:$0xff] }
 0x34e   :  { %769 = vst [vmem:[#allocation1 + $0x1] ss:$9 sm:$0xff] %v3937_v61  ;;  %741 = vrot.lane.b32.xlu0 %v740_v63, %s3518_s30 }
 0x34f   :  { %775 = vst [vmem:[#allocation1 + $0x4] ss:$9 sm:$0xff] %v3945_v1 }
 0x350   :  { %771 = vst [vmem:[#allocation1 + $0x2] ss:$9 sm:$0xff] %v3929_v58 }
 0x351   :  { %767 = vst [vmem:[#allocation1] ss:$9 sm:$0xff] %v3926_v57 }
 0x352   :  { %773 = vst [vmem:[#allocation1 + $0x3] ss:$9 sm:$0xff] %v3935_v60 }
 0x359   :  { %v3956_v2 = vld [vmem:[#allocation1] sm:$0xff] }
 0x35a   :  { %777 = vst [vmem:[#allocation1] ss:$9 sm:$0xff] %v3926_v57 }
 0x35b   :  { %779 = vst [vmem:[#allocation1 + $0x1] ss:$9 sm:$0xff] %v3937_v61 }
 0x35c   :  { %781 = vst [vmem:[#allocation1 + $0x2] ss:$9 sm:$0xff] %v3929_v58 }
 0x35d   :  { %783 = vst [vmem:[#allocation1 + $0x3] ss:$9 sm:$0xff] %v3935_v60 }
 0x35e   :  { %785 = vst [vmem:[#allocation1 + $0x4] ss:$9 sm:$0xff] %v3945_v1 }
 0x365   :  { %v786_v3 = vld [vmem:[#allocation1] sm:$0xff] }
 0x366   :  { %902 = vst [vmem:[#allocation1] ss:$9 sm:$0xff] %v3706_v6  ;;  %787 = vrot.lane.b32.xlu1 %v786_v3, %s3518_s30 }
 0x367   :  { %904 = vst [vmem:[#allocation1 + $0x1] ss:$9 sm:$0xff] %v3721_v10 }
 0x368   :  { %906 = vst [vmem:[#allocation1 + $0x2] ss:$9 sm:$0xff] %v3712_v7 }
 0x369   :  { %908 = vst [vmem:[#allocation1 + $0x3] ss:$9 sm:$0xff] %v3715_v8 }
 0x36a   :  { %910 = vst [vmem:[#allocation1 + $0x4] ss:$9 sm:$0xff] %v3718_v9 }
 0x371   :  { %v3969_v5 = vld [vmem:[#allocation1] sm:$0xff] }
 0x372   :  { %941 = vst [vmem:[#allocation1] ss:$9 sm:$0xff] %v3747_v16 }
 0x373   :  { %943 = vst [vmem:[#allocation1 + $0x1] ss:$9 sm:$0xff] %v3732_v11 }
 0x374   :  { %945 = vst [vmem:[#allocation1 + $0x2] ss:$9 sm:$0xff] %v3752_v17 }
 0x375   :  { %947 = vst [vmem:[#allocation1 + $0x3] ss:$9 sm:$0xff] %v3742_v15 }
 0x376   :  { %949 = vst [vmem:[#allocation1 + $0x4] ss:$9 sm:$0xff] %v3755_v18 }
 0x378   :  { %v604_v9 = vpop.permute.xlu1 %603 }
 0x379   :  { %3178 = vmatpush.xpose.msk.msrb.mxu2 %vm466_vm15, %v604_v9 }
 0x37c   :  { %3179 = vmatmul.msk.f32.vlgmr.msrb.gmra.mxu2 %vm466_vm15, %v3858_v35 }
 0x37d   :  { %v950_v6 = vld [vmem:[#allocation1] sm:$0xff] }
 0x37e   :  { %978 = vst [vmem:[#allocation1] ss:$9 sm:$0xff] %v3820_v23 }
 0x37f   :  { %980 = vst [vmem:[#allocation1 + $0x1] ss:$9 sm:$0xff] %v3828_v26 }
 0x380   :  { %982 = vst [vmem:[#allocation1 + $0x2] ss:$9 sm:$0xff] %v3826_v25 }
 0x381   :  { %984 = vst [vmem:[#allocation1 + $0x3] ss:$9 sm:$0xff] %v3823_v24 }
 0x382   :  { %986 = vst [vmem:[#allocation1 + $0x4] ss:$9 sm:$0xff] %v3832_v27 }
 0x389   :  { %v3984_v7 = vld [vmem:[#allocation1] sm:$0xff] }
 0x38a   :  { %1015 = vst [vmem:[#allocation1] ss:$9 sm:$0xff] %v3840_v29 }
 0x38b   :  { %1017 = vst [vmem:[#allocation1 + $0x1] ss:$9 sm:$0xff] %v3843_v30 }
 0x38c   :  { %1019 = vst [vmem:[#allocation1 + $0x2] ss:$9 sm:$0xff] %v3855_v34 }
 0x38d   :  { %1021 = vst [vmem:[#allocation1 + $0x3] ss:$9 sm:$0xff] %v3848_v32 }
 0x38e   :  { %1023 = vst [vmem:[#allocation1 + $0x4] ss:$9 sm:$0xff] %v3852_v33 }
 0x390   :  { %v696_v10 = vpop.permute.xlu2 %695  ;;  %v650_v13 = vpop.permute.xlu0 %649 }
 0x391   :  { %3182 = vmatpush.xpose.msk.msra.mxu2 %vm466_vm15, %v696_v10  ;;  %3180 = vmatpush.xpose.msk.msrb.mxu3 %vm466_vm15, %v650_v13 }
 0x394   :  { %3183 = vmatmul.msk.f32.vlgmr.msra.gmra.mxu2 %vm466_vm15, %v3906_v51  ;;  %3181 = vmatmul.msk.f32.vlgmr.msrb.gmra.mxu3 %vm466_vm15, %v3881_v42 }
 0x395   :  { %v3991_v8 = vld [vmem:[#allocation1] sm:$0xff] }
 0x396   :  { %1052 = vst [vmem:[#allocation1] ss:$9 sm:$0xff] %v3867_v37 }
 0x397   :  { %1054 = vst [vmem:[#allocation1 + $0x1] ss:$9 sm:$0xff] %v3862_v36 }
 0x398   :  { %1056 = vst [vmem:[#allocation1 + $0x2] ss:$9 sm:$0xff] %v3874_v40 }
 0x399   :  { %1058 = vst [vmem:[#allocation1 + $0x3] ss:$9 sm:$0xff] %v3878_v41 }
 0x39a   :  { %1060 = vst [vmem:[#allocation1 + $0x4] ss:$9 sm:$0xff] %v3869_v39 }
 0x3a0   :  { %v488_v17 = vpop.f32.mrf.mxu3 }
 0x3a1   :  { %v4001_v11 = vld [vmem:[#allocation1] sm:$0xff]  ;;  %v814_v18 = vsel %vm813_vm2, %v488_v17, -inf }
 0x3a2   :  { %1089 = vst [vmem:[#allocation1] ss:$9 sm:$0xff] %v3884_v43  ;;  %815 = vmax.xlane.f32.xlu2 %v814_v18 }
 0x3a3   :  { %1091 = vst [vmem:[#allocation1 + $0x1] ss:$9 sm:$0xff] %v3890_v45 }
 0x3a4   :  { %1093 = vst [vmem:[#allocation1 + $0x2] ss:$9 sm:$0xff] %v3894_v48 }
 0x3a5   :  { %1095 = vst [vmem:[#allocation1 + $0x3] ss:$9 sm:$0xff] %v3892_v47 }
 0x3a6   :  { %1097 = vst [vmem:[#allocation1 + $0x4] ss:$9 sm:$0xff] %v3901_v49 }
 0x3a8   :  { %v534_v19 = vpop.f32.mrf.mxu3 }
 0x3a9   :  { %v817_v20 = vsel %vm813_vm2, %v534_v19, -inf }
 0x3aa   :  { %818 = vmax.xlane.f32.xlu1 %v817_v20 }
 0x3ad   :  { %v4014_v14 = vld [vmem:[#allocation1] sm:$0xff] }
 0x3ae   :  { %1126 = vst [vmem:[#allocation1] ss:$9 sm:$0xff] %v3911_v52 }
 0x3af   :  { %1128 = vst [vmem:[#allocation1 + $0x1] ss:$9 sm:$0xff] %v3904_v50 }
 0x3b0   :  { %1130 = vst [vmem:[#allocation1 + $0x2] ss:$9 sm:$0xff] %v3915_v53 }
 0x3b1   :  { %1132 = vst [vmem:[#allocation1 + $0x3] ss:$9 sm:$0xff] %v3921_v56 }
 0x3b2   :  { %1134 = vst [vmem:[#allocation1 + $0x4] ss:$9 sm:$0xff] %v3917_v54 }
 0x3b9   :  { %v4021_v15 = vld [vmem:[#allocation1] sm:$0xff] }
 0x3ba   :  { %1163 = vst [vmem:[#allocation1] ss:$9 sm:$0xff] %v3926_v57 }
 0x3bb   :  { %1165 = vst [vmem:[#allocation1 + $0x1] ss:$9 sm:$0xff] %v3937_v61 }
 0x3bc   :  { %1167 = vst [vmem:[#allocation1 + $0x2] ss:$9 sm:$0xff] %v3929_v58 }
 0x3bd   :  { %1169 = vst [vmem:[#allocation1 + $0x3] ss:$9 sm:$0xff] %v3935_v60 }
 0x3be   :  { %1171 = vst [vmem:[#allocation1 + $0x4] ss:$9 sm:$0xff] %v3945_v1 }
 0x3c0   :  { %v742_v16 = vpop.permute.xlu0 %741 }
 0x3c1   :  { %3184 = vmatpush.xpose.msk.msra.mxu3 %vm466_vm15, %v742_v16 }
 0x3c4   :  { %3185 = vmatmul.msk.f32.vlgmr.msra.gmra.mxu3 %vm466_vm15, %v3931_v59 }
 0x3cf   :  { %v580_v23 = vpop.f32.mrf.mxu3 }
 0x3d0   :  { %v820_v24 = vsel %vm813_vm2, %v580_v23, -inf }
 0x3d1   :  { %821 = vmax.xlane.f32.xlu0 %v820_v24 }
 0x3d8   :  { %v788_v22 = vpop.permute.xlu1 %787 }
 0x3d9   :  { %3186 = vmatpush.xpose.msk.msrb.mxu2 %vm466_vm15, %v788_v22 }
 0x3dc   :  { %3187 = vmatmul.msk.f32.vlgmr.msrb.gmra.mxu2 %vm466_vm15, %v3956_v2  ;;  %v1172_v2 = vld [vmem:[#allocation1] sm:$0xff] }
 0x3e5   :  { %951 = vrot.lane.b32.xlu0 %v950_v6, %s3519_s1 }
 0x3ff   :  { %v626_v25 = vpop.f32.mrf.mxu2 }
 0x400   :  { %v823_v26 = vsel %vm813_vm2, %v626_v25, -inf }
 0x401   :  { %824 = vmax.xlane.f32.xlu2 %v823_v26 }
 0x415   :  { %v816_v30 = vpop.xlane.xlu2 %815 }
 0x416   :  { %v838_v31 = vsub.f32 %v488_v17, %v816_v30 }
 0x417   :  { %v718_v27 = vpop.f32.mrf.mxu2  ;;  %v672_v29 = vpop.f32.mrf.mxu3 }
 0x418   :  { %v829_v28 = vsel %vm813_vm2, %v718_v27, -inf  ;;  %v846_v32 = vmul.f32 1.442695, %v838_v31  ;;  %v826_v41 = vsel %vm813_vm2, %v672_v29, -inf }
 0x419   :  { %830 = vmax.xlane.f32.xlu0 %v829_v28 }
 0x41a   :  { %3392 = vpow2.f32 %v846_v32 }
 0x41d   :  { %v819_v35 = vpop.xlane.xlu1 %818 }
 0x41e   :  { %v839_v36 = vsub.f32 %v534_v19, %v819_v35 }
 0x420   :  { %v4041_v37 = vpop.eup %3392  ;;  %v848_v38 = vmul.f32 1.442695, %v839_v36 }
 0x421   :  { %v862_v39 = vsel %vm813_vm2, %v4041_v37, 0.0 }
 0x422   :  { %3394 = vpow2.f32 %v848_v38  ;;  %863 = vadd.xlane.f32.xlu1 %v862_v39 }
 0x428   :  { %v3395_v40 = vpop.eup %3394 }
 0x429   :  { %v865_v42 = vsel %vm813_vm2, %v3395_v40, 0.0 }
 0x42a   :  { %827 = vmax.xlane.f32.xlu1 %v826_v41  ;;  %866 = vadd.xlane.f32.xlu2 %v865_v42 }
 0x442   :  { %988 = vrot.lane.b32.xlu2 %v3984_v7, %s3519_s1 }
 0x443   :  { %912 = vrot.lane.b32.xlu1 %v3969_v5, %s3519_s1 }
 0x444   :  { %v822_v43 = vpop.xlane.xlu0 %821 }
 0x445   :  { %v840_v46 = vsub.f32 %v580_v23, %v822_v43  ;;  %v1311_v43 = vld [vmem:[%s4711_s7] sm:$0xf] }
 0x447   :  { %v764_v33 = vpop.f32.mrf.mxu3  ;;  %v850_v47 = vmul.f32 1.442695, %v840_v46  ;;  %v1325_v46 = vsel %vm1323_vm5, %v1311_v43, 0 }
 0x448   :  { %v832_v34 = vsel %vm813_vm2, %v764_v33, -inf }
 0x449   :  { %833 = vmax.xlane.f32.xlu0 %v832_v34  ;;  %3396 = vpow2.f32 %v850_v47 }
 0x44a   :  { %1062 = vrot.lane.b32.xlu2 %v4001_v11, %s3519_s1 }
 0x44f   :  { %v3397_v53 = vpop.eup %3396 }
 0x450   :  { %v868_v54 = vsel %vm813_vm2, %v3397_v53, 0.0 }
 0x457   :  { %v952_v45 = vpop.permute.xlu0 %951 }
 0x458   :  { %3190 = vmatpush.msk.msrb.mxu0 %vm918_vm3, %v952_v45 }
 0x45d   :  { %1025 = vrot.lane.b32.xlu0 %v3991_v8, %s3519_s1 }
 0x45f   :  { %v810_v49 = vpop.f32.mrf.mxu2 }
 0x460   :  { %v835_v51 = vsel %vm813_vm2, %v810_v49, -inf }
 0x473   :  { %836 = vmax.xlane.f32.xlu2 %v835_v51 }
 0x474   :  { %v825_v48 = vpop.xlane.xlu2 %824 }
 0x475   :  { %v841_v50 = vsub.f32 %v626_v25, %v825_v48 }
 0x477   :  { %v852_v52 = vmul.f32 1.442695, %v841_v50 }
 0x479   :  { %3398 = vpow2.f32 %v852_v52 }
 0x47b   :  { %869 = vadd.xlane.f32.xlu2 %v868_v54 }
 0x47f   :  { %v3399_v56 = vpop.eup %3398 }
 0x480   :  { %v871_v59 = vsel %vm813_vm2, %v3399_v56, 0.0 }
 0x483   :  { %872 = vadd.xlane.f32.xlu2 %v871_v59 }
 0x48c   :  { %v831_v55 = vpop.xlane.xlu0 %830 }
 0x48d   :  { %v843_v57 = vsub.f32 %v718_v27, %v831_v55 }
 0x48f   :  { %v856_v58 = vmul.f32 1.442695, %v843_v57 }
 0x491   :  { %3400 = vpow2.f32 %v856_v58 }
 0x495   :  { %v864_v62 = vpop.xlane.xlu1 %863 }
 0x497   :  { %v3401_v60 = vpop.eup %3400 }
 0x498   :  { %v877_v61 = vsel %vm813_vm2, %v3401_v60, 0.0 }
 0x499   :  { %878 = vadd.xlane.f32.xlu0 %v877_v61 }
 0x49b   :  { %1099 = vrot.lane.b32.xlu2 %v4014_v14, %s3519_s1 }
 0x49d   :  { %v867_v0 = vpop.xlane.xlu2 %866  ;;  %v828_v1 = vpop.xlane.xlu1 %827 }
 0x49e   :  { %3402 = vrcp.f32 %v867_v0  ;;  %v842_v3 = vsub.f32 %v672_v29, %v828_v1 }
 0x4a0   :  { %v854_v5 = vmul.f32 1.442695, %v842_v3  ;;  %v1312_v3 = vld [vmem:[%s4711_s7 + $0x4] sm:$0xf] }
 0x4a2   :  { %3404 = vpow2.f32 %v854_v5  ;;  %v1350_v5 = vsel %vm1323_vm5, %v1312_v3, 0 }
 0x4a4   :  { %v3403_v7 = vpop.eup %3402 }
 0x4a5   :  { %v895_v9 = vmul.f32 %v3403_v7, %v3395_v40  ;;  %v989_v14 = vpop.permute.xlu2 %988 }
 0x4a7   :  { %3191 = vmatmul.msk.f32.vlgmr.msrb.gmra.mxu0 %vm914_vm4, %v895_v9 }
 0x4a8   :  { %v3405_v10 = vpop.eup %3404 }
 0x4a9   :  { %v874_v11 = vsel %vm813_vm2, %v3405_v10, 0.0 }
 0x4aa   :  { %875 = vadd.xlane.f32.xlu1 %v874_v11 }
 0x4ad   :  { %1173 = vrot.lane.b32.xlu0 %v1172_v2, %s3519_s1  ;;  %v1063_v20 = vpop.permute.xlu2 %1062 }
 0x4b5   :  { %v913_v19 = vpop.permute.xlu1 %912 }
 0x4b6   :  { %3188 = vmatpush.msk.msrb.mxu3 %vm918_vm3, %v913_v19 }
 0x4b8   :  { %3192 = vmatpush.msk.msra.mxu3 %vm918_vm3, %v989_v14 }
 0x4bc   :  { %v834_v63 = vpop.xlane.xlu0 %833 }
 0x4bd   :  { %v844_v4 = vsub.f32 %v764_v33, %v834_v63 }
 0x4bf   :  { %v858_v8 = vmul.f32 1.442695, %v844_v4 }
 0x4c1   :  { %3406 = vpow2.f32 %v858_v8 }
 0x4c2   :  { %3408 = vrcp.f32 %v864_v62 }
 0x4c7   :  { %v4066_v13 = vpop.eup %3406 }
 0x4c8   :  { %v880_v16 = vsel %vm813_vm2, %v4066_v13, 0.0  ;;  %v3409_v17 = vpop.eup %3408 }
 0x4c9   :  { %881 = vadd.xlane.f32.xlu1 %v880_v16  ;;  %v894_v18 = vmul.f32 %v3409_v17, %v4041_v37 }
 0x4cb   :  { %3189 = vmatmul.msk.f32.vlgmr.msrb.gmra.mxu3 %vm914_vm4, %v894_v18 }
 0x4cc   :  { %3196 = vmatpush.msk.msrb.mxu3 %vm918_vm3, %v1063_v20 }
 0x4cf   :  { %v1026_v6 = vpop.permute.xlu0 %1025 }
 0x4d0   :  { %3194 = vmatpush.msk.msra.mxu2 %vm918_vm3, %v1026_v6 }
 0x4e2   :  { %1136 = vrot.lane.b32.xlu1 %v4021_v15, %s3519_s1 }
 0x4e6   :  { %v837_v22 = vpop.xlane.xlu2 %836 }
 0x4e7   :  { %v845_v23 = vsub.f32 %v810_v49, %v837_v22 }
 0x4e9   :  { %v860_v24 = vmul.f32 1.442695, %v845_v23 }
 0x4eb   :  { %3410 = vpow2.f32 %v860_v24 }
 0x4ee   :  { %v870_v25 = vpop.xlane.xlu2 %869 }
 0x4ef   :  { %3412 = vrcp.f32 %v870_v25 }
 0x4f1   :  { %v4077_v26 = vpop.eup %3410 }
 0x4f2   :  { %v883_v27 = vsel %vm813_vm2, %v4077_v26, 0.0 }
 0x4f3   :  { %884 = vadd.xlane.f32.xlu2 %v883_v27 }
 0x4f5   :  { %v3413_v28 = vpop.eup %3412 }
 0x4f6   :  { %v896_v29 = vmul.f32 %v3413_v28, %v3397_v53  ;;  %v873_v30 = vpop.xlane.xlu2 %872  ;;  %v1313_v28 = vld [vmem:[%s4711_s7 + $0x8] sm:$0xf] }
 0x4f7   :  { %3414 = vrcp.f32 %v873_v30 }
 0x4f8   :  { %3193 = vmatmul.msk.f32.vlgmr.msra.gmra.mxu3 %vm914_vm4, %v896_v29  ;;  %v1375_v29 = vsel %vm1323_vm5, %v1313_v28, 0 }
 0x4f9   :  { %1334 = vmatpush.bf16.msra.mxu3 %v1325_v46 }
 0x4fd   :  { %v3415_v31 = vpop.eup %3414 }
 0x4fe   :  { %v897_v15 = vmul.f32 %v3415_v31, %v3399_v56  ;;  %v1100_v33 = vpop.permute.xlu2 %1099 }
 0x4ff   :  { %3198 = vmatpush.msk.msra.mxu0 %vm918_vm3, %v1100_v33 }
 0x500   :  { %3195 = vmatmul.msk.f32.vlgmr.msra.gmra.mxu2 %vm914_vm4, %v897_v15 }
 0x501   :  { %1359 = vmatpush.bf16.msrb.mxu0 %v1350_v5 }
 0x50c   :  { %v879_v32 = vpop.xlane.xlu0 %878 }
 0x50d   :  { %3416 = vrcp.f32 %v879_v32 }
 0x513   :  { %v3417_v34 = vpop.eup %3416 }
 0x514   :  { %v899_v35 = vmul.f32 %v3417_v34, %v3401_v60 }
 0x516   :  { %3199 = vmatmul.msk.f32.vlgmr.msra.gmra.mxu0 %vm914_vm4, %v899_v35 }
 0x51d   :  { %v876_v37 = vpop.xlane.xlu1 %875 }
 0x51e   :  { %3418 = vrcp.f32 %v876_v37 }
 0x51f   :  { %v1174_v36 = vpop.permute.xlu0 %1173 }
 0x520   :  { %3202 = vmatpush.msk.msrb.mxu2 %vm918_vm3, %v1174_v36 }
 0x524   :  { %v3419_v38 = vpop.eup %3418  ;;  %v975_v39 = vpop.f32.mrf.mxu0 }
 0x525   :  { %v898_v40 = vmul.f32 %v3419_v38, %v3405_v10  ;;  %v1212_v41 = vrot.slane %v975_v39, 1  ;;  %v1213_v42 = vrot.slane %v975_v39, 2  ;;  %1250 = vst [vmem:[#allocation1 + $0x5] ss:$9 sm:$0xff] %v975_v39  ;;  %v1214_v55 = vrot.slane %v975_v39, 3 }
 0x526   :  { %v1215_v56 = vrot.slane %v975_v39, 4 }
 0x527   :  { %1252 = vst [vmem:[#allocation1 + $0x6] ss:$9 sm:$0xff] %v1212_v41  ;;  %3197 = vmatmul.msk.f32.vlgmr.msrb.gmra.mxu3 %vm914_vm4, %v898_v40 }
 0x528   :  { %1254 = vst [vmem:[#allocation1 + $0x7] ss:$9 sm:$0xff] %v1213_v42 }
 0x53c   :  { %v882_v45 = vpop.xlane.xlu1 %881 }
 0x53d   :  { %3420 = vrcp.f32 %v882_v45 }
 0x543   :  { %v3421_v47 = vpop.eup %3420 }
 0x544   :  { %v900_v54 = vmul.f32 %v3421_v47, %v4066_v13 }
 0x54e   :  { %v938_v48 = vpop.f32.mrf.mxu3 }
 0x54f   :  { %v1208_v49 = vrot.slane %v938_v48, 1  ;;  %v1209_v50 = vrot.slane %v938_v48, 2  ;;  %v1210_v51 = vrot.slane %v938_v48, 3  ;;  %1240 = vst [vmem:[#allocation1] ss:$9 sm:$0xff] %v938_v48  ;;  %v1211_v52 = vrot.slane %v938_v48, 4 }
 0x551   :  { %1242 = vst [vmem:[#allocation1 + $0x1] ss:$9 sm:$0xff] %v1208_v49  ;;  %v1314_v49 = vld [vmem:[%s4711_s7 + $0xc] sm:$0xf] }
 0x552   :  { %1244 = vst [vmem:[#allocation1 + $0x2] ss:$9 sm:$0xff] %v1209_v50  ;;  %v1400_v50 = vsel %vm1323_vm5, %v1314_v49, 0 }
 0x553   :  { %1246 = vst [vmem:[#allocation1 + $0x3] ss:$9 sm:$0xff] %v1210_v51  ;;  %1409 = vmatpush.bf16.msra.mxu2 %v1400_v50 }
 0x554   :  { %v1137_v53 = vpop.permute.xlu1 %1136  ;;  %1248 = vst [vmem:[#allocation1 + $0x4] ss:$9 sm:$0xff] %v1211_v52 }
 0x555   :  { %3200 = vmatpush.msk.msrb.mxu1 %vm918_vm3, %v1137_v53 }
 0x556   :  { %3201 = vmatmul.msk.f32.vlgmr.msrb.gmra.mxu1 %vm914_vm4, %v900_v54 }
 0x557   :  { %1384 = vmatpush.bf16.msra.mxu1 %v1375_v29 }
 0x55b   :  { %v1255_v57 = vld [vmem:[#allocation1] sm:$0xff] }
 0x55c   :  { %1256 = vst [vmem:[#allocation1] ss:$9 sm:$0xff] %v1214_v55  ;;  %v1303_v58 = vpack.c.bf16 %v1255_v57, %v1255_v57 }
 0x55d   :  { %1257 = vst [vmem:[#allocation1 + $0x1] ss:$9 sm:$0xff] %v1215_v56 }
 0x55e   :  { %v1317_v61 = vunpack.c.l.b16 %v1303_v58 }
 0x564   :  { %v1258_v59 = vld [vmem:[#allocation1] sm:$0xff] }
 0x565   :  { %v1304_v60 = vpack.c.bf16 %v1258_v59, %v1258_v59 }
 0x566   :  { %v885_v0 = vpop.xlane.xlu2 %884 }
 0x567   :  { %v1318_v62 = vunpack.c.l.b16 %v1304_v60  ;;  %3422 = vrcp.f32 %v885_v0 }
 0x569   :  { %v1319_v63 = vpack.c.b16 %v1318_v62, %v1317_v61 }
 0x56b   :  { %3204 = vmatmul.msk.bf16.vlgmr.msra.gmra.mxu3 %vm466_vm15, %v1319_v63 }
 0x56d   :  { %v3423_v1 = vpop.eup %3422 }
 0x56e   :  { %v901_v2 = vmul.f32 %v3423_v1, %v4077_v26 }
 0x570   :  { %3203 = vmatmul.msk.f32.vlgmr.msrb.gmra.mxu2 %vm914_vm4, %v901_v2 }
 0x57b   :  { %v1012_v4 = vpop.f32.mrf.mxu3 }
 0x57c   :  { %v1216_v6 = vrot.slane %v1012_v4, 1  ;;  %v1217_v7 = vrot.slane %v1012_v4, 2  ;;  %v1218_v8 = vrot.slane %v1012_v4, 3  ;;  %1259 = vst [vmem:[#allocation1] ss:$9 sm:$0xff] %v1012_v4  ;;  %v1219_v9 = vrot.slane %v1012_v4, 4 }
 0x57e   :  { %1260 = vst [vmem:[#allocation1 + $0x1] ss:$9 sm:$0xff] %v1216_v6  ;;  %v4118_v6 = vld [vmem:[%s4714_s10] sm:$0x3] }
 0x57f   :  { %1261 = vst [vmem:[#allocation1 + $0x2] ss:$9 sm:$0xff] %v1217_v7 }
 0x580   :  { %1262 = vst [vmem:[#allocation1 + $0x3] ss:$9 sm:$0xff] %v1218_v8 }
 0x581   :  { %1263 = vst [vmem:[#allocation1 + $0x4] ss:$9 sm:$0xff] %v1219_v9 }
 0x583   :  { %v1049_v10 = vpop.f32.mrf.mxu2 }
 0x584   :  { %v1220_v11 = vrot.slane %v1049_v10, 1  ;;  %v1221_v13 = vrot.slane %v1049_v10, 2  ;;  %1264 = vst [vmem:[#allocation1 + $0x5] ss:$9 sm:$0xff] %v1049_v10  ;;  %v1222_v14 = vrot.slane %v1049_v10, 3  ;;  %v1223_v16 = vrot.slane %v1049_v10, 4 }
 0x586   :  { %1265 = vst [vmem:[#allocation1 + $0x6] ss:$9 sm:$0xff] %v1220_v11 }
 0x587   :  { %1266 = vst [vmem:[#allocation1 + $0x7] ss:$9 sm:$0xff] %v1221_v13 }
 0x58e   :  { %v1267_v17 = vld [vmem:[#allocation1] sm:$0xff] }
 0x58f   :  { %1268 = vst [vmem:[#allocation1] ss:$9 sm:$0xff] %v1222_v14  ;;  %v1305_v19 = vpack.c.bf16 %v1267_v17, %v1267_v17 }
 0x590   :  { %1269 = vst [vmem:[#allocation1 + $0x1] ss:$9 sm:$0xff] %v1223_v16  ;;  %v1432_v16 = vperm.slane %v4118_v6, 0 }
 0x591   :  { %v1343_v25 = vunpack.c.l.b16 %v1305_v19 }
 0x593   :  { %v1123_v18 = vpop.f32.mrf.mxu0 }
 0x594   :  { %v1228_v22 = vrot.slane %v1123_v18, 1  ;;  %v1229_v23 = vrot.slane %v1123_v18, 2  ;;  %v1230_v34 = vrot.slane %v1123_v18, 3  ;;  %v1231_v35 = vrot.slane %v1123_v18, 4 }
 0x597   :  { %v1270_v20 = vld [vmem:[#allocation1] sm:$0xff] }
 0x598   :  { %1276 = vst [vmem:[#allocation1 + $0x5] ss:$9 sm:$0xff] %v1123_v18  ;;  %v1306_v24 = vpack.c.bf16 %v1270_v20, %v1270_v20 }
 0x599   :  { %1277 = vst [vmem:[#allocation1 + $0x6] ss:$9 sm:$0xff] %v1228_v22 }
 0x59a   :  { %1278 = vst [vmem:[#allocation1 + $0x7] ss:$9 sm:$0xff] %v1229_v23  ;;  %v1344_v26 = vunpack.c.l.b16 %v1306_v24 }
 0x59c   :  { %v1345_v27 = vpack.c.b16 %v1344_v26, %v1343_v25 }
 0x59e   :  { %3205 = vmatmul.msk.bf16.vlgmr.msrb.gmra.mxu0 %vm466_vm15, %v1345_v27 }
 0x5aa   :  { %v1086_v30 = vpop.f32.mrf.mxu3 }
 0x5ab   :  { %v1224_v31 = vrot.slane %v1086_v30, 1  ;;  %v1225_v15 = vrot.slane %v1086_v30, 2  ;;  %v1226_v32 = vrot.slane %v1086_v30, 3  ;;  %1271 = vst [vmem:[#allocation1] ss:$9 sm:$0xff] %v1086_v30  ;;  %v1227_v33 = vrot.slane %v1086_v30, 4 }
 0x5ad   :  { %1272 = vst [vmem:[#allocation1 + $0x1] ss:$9 sm:$0xff] %v1224_v31 }
 0x5ae   :  { %1273 = vst [vmem:[#allocation1 + $0x2] ss:$9 sm:$0xff] %v1225_v15 }
 0x5af   :  { %1274 = vst [vmem:[#allocation1 + $0x3] ss:$9 sm:$0xff] %v1226_v32 }
 0x5b0   :  { %1275 = vst [vmem:[#allocation1 + $0x4] ss:$9 sm:$0xff] %v1227_v33 }
 0x5b7   :  { %v1279_v36 = vld [vmem:[#allocation1] sm:$0xff] }
 0x5b8   :  { %1280 = vst [vmem:[#allocation1] ss:$9 sm:$0xff] %v1230_v34  ;;  %v1307_v40 = vpack.c.bf16 %v1279_v36, %v1279_v36 }
 0x5b9   :  { %1281 = vst [vmem:[#allocation1 + $0x1] ss:$9 sm:$0xff] %v1231_v35 }
 0x5ba   :  { %v1368_v46 = vunpack.c.l.b16 %v1307_v40 }
 0x5c0   :  { %v1282_v41 = vld [vmem:[#allocation1] sm:$0xff] }
 0x5c1   :  { %v1308_v45 = vpack.c.bf16 %v1282_v41, %v1282_v41  ;;  %v3353_v41 = vld [vmem:[%s4712_s8] sm:$0xff] }
 0x5c3   :  { %v1369_v47 = vunpack.c.l.b16 %v1308_v45 }
 0x5c5   :  { %v1370_v48 = vpack.c.b16 %v1369_v47, %v1368_v46 }
 0x5c7   :  { %3206 = vmatmul.msk.bf16.vlgmr.msra.gmra.mxu1 %vm466_vm15, %v1370_v48 }
 0x5d3   :  { %v1160_v37 = vpop.f32.mrf.mxu1 }
 0x5d4   :  { %v1232_v38 = vrot.slane %v1160_v37, 1  ;;  %v1233_v39 = vrot.slane %v1160_v37, 2  ;;  %v1234_v42 = vrot.slane %v1160_v37, 3  ;;  %v1235_v43 = vrot.slane %v1160_v37, 4  ;;  %1283 = vst [vmem:[#allocation1] ss:$9 sm:$0xff] %v1160_v37 }
 0x5d6   :  { %1284 = vst [vmem:[#allocation1 + $0x1] ss:$9 sm:$0xff] %v1232_v38 }
 0x5d7   :  { %1285 = vst [vmem:[#allocation1 + $0x2] ss:$9 sm:$0xff] %v1233_v39  ;;  %v3354_v39 = vld [vmem:[%s4712_s8 + $0x8] sm:$0xff] }
 0x5d8   :  { %1286 = vst [vmem:[#allocation1 + $0x3] ss:$9 sm:$0xff] %v1234_v42  ;;  %1519 = vmatpush.bf16.msrb.mxu3 %v3354_v39 }
 0x5d9   :  { %1287 = vst [vmem:[#allocation1 + $0x4] ss:$9 sm:$0xff] %v1235_v43 }
 0x5dc   :  { %1520 = vmatpush.bf16.msrb.mxu3 %v3353_v41 }
 0x5ee   :  { %v1336_v0 = vpop.f32.mrf.mxu3 }
 0x5ef   :  { %v1416_v3 = vsel %vm217_vm0, %v1336_v0, 0.0 }
 0x5f3   :  { %v1197_v51 = vpop.f32.mrf.mxu2 }
 0x5f4   :  { %v1236_v52 = vrot.slane %v1197_v51, 1  ;;  %v1237_v53 = vrot.slane %v1197_v51, 2  ;;  %1288 = vst [vmem:[#allocation1 + $0x5] ss:$9 sm:$0xff] %v1197_v51  ;;  %v1238_v54 = vrot.slane %v1197_v51, 3  ;;  %v1239_v55 = vrot.slane %v1197_v51, 4 }
 0x5f6   :  { %1289 = vst [vmem:[#allocation1 + $0x6] ss:$9 sm:$0xff] %v1236_v52  ;;  %v1338_v11 = vpop.f32.mrf.mxu3 }
 0x5f7   :  { %1290 = vst [vmem:[#allocation1 + $0x7] ss:$9 sm:$0xff] %v1237_v53  ;;  %v1423_v19 = vsel %vm221_vm1, %v1338_v11, 0.0 }
 0x5fe   :  { %v1291_v56 = vld [vmem:[#allocation1] sm:$0xff] }
 0x5ff   :  { %1292 = vst [vmem:[#allocation1] ss:$9 sm:$0xff] %v1238_v54  ;;  %v1309_v57 = vpack.c.bf16 %v1291_v56, %v1291_v56 }
 0x600   :  { %1293 = vst [vmem:[#allocation1 + $0x1] ss:$9 sm:$0xff] %v1239_v55 }
 0x601   :  { %v1393_v60 = vunpack.c.l.b16 %v1309_v57 }
 0x607   :  { %v1294_v58 = vld [vmem:[#allocation1] sm:$0xff] }
 0x608   :  { %v1310_v59 = vpack.c.bf16 %v1294_v58, %v1294_v58 }
 0x60a   :  { %v1394_v61 = vunpack.c.l.b16 %v1310_v59 }
 0x60c   :  { %v1395_v62 = vpack.c.b16 %v1394_v61, %v1393_v60 }
 0x60e   :  { %3207 = vmatmul.msk.bf16.vlgmr.msra.gmra.mxu2 %vm466_vm15, %v1395_v62 }
 0x61b   :  { %v1361_v63 = vpop.f32.mrf.mxu0 }
 0x61c   :  { %v1417_v2 = vsel %vm217_vm0, %v1361_v63, 0.0  ;;  %v3486_v63 = vld [vmem:[%s4708_s4] sm:$0xf] }
 0x61d   :  { %v1418_v5 = vadd.f32 %v1417_v2, %v1416_v3  ;;  %v1483_v0 = vperm.slane %v3486_v63, 2 }
 0x623   :  { %v1363_v7 = vpop.f32.mrf.mxu0 }
 0x624   :  { %v1424_v17 = vsel %vm221_vm1, %v1363_v7, 0.0 }
 0x625   :  { %v1425_v22 = vadd.f32 %v1424_v17, %v1423_v19 }
 0x644   :  { %v1386_v1 = vpop.f32.mrf.mxu1 }
 0x645   :  { %v1419_v4 = vsel %vm217_vm0, %v1386_v1, 0.0 }
 0x646   :  { %v1420_v8 = vadd.f32 %v1419_v4, %v1418_v5 }
 0x64c   :  { %v1388_v13 = vpop.f32.mrf.mxu1 }
 0x64d   :  { %v1426_v20 = vsel %vm221_vm1, %v1388_v13, 0.0 }
 0x64e   :  { %v1427_v24 = vadd.f32 %v1426_v20, %v1425_v22 }
 0x691   :  { %v1411_v9 = vpop.f32.mrf.mxu2 }
 0x692   :  { %v1421_v10 = vsel %vm217_vm0, %v1411_v9, 0.0 }
 0x693   :  { %v1422_v14 = vadd.f32 %v1421_v10, %v1420_v8  ;;  %v1486_v8 = vperm.slane %v3486_v63, 3 }
 0x695   :  { %v1430_v18 = vadd.f32 %v1422_v14, %v3673_v12  ;;  %v3377_v14 = vld [vmem:[%s4715_s11] ss:$0 sm:$0xff] }
 0x697   :  { %v4126_v23 = vadd.f32 %v1432_v16, %v1430_v18 }
 0x699   :  { %v1413_v25 = vpop.f32.mrf.mxu2  ;;  %v1435_v26 = vsel %vm217_vm0, %v4126_v23, 0.0  ;;  %v1443_v27 = vmul.f32 %v4126_v23, %v4126_v23 }
 0x69a   :  { %v1428_v28 = vsel %vm221_vm1, %v1413_v25, 0.0  ;;  %1436 = vadd.xlane.f32.xlu0 %v1435_v26  ;;  %v3358_v25 = vld [vmem:[%s4713_s9 + $0x18] sm:$0xff] }
 0x69b   :  { %v1429_v29 = vadd.f32 %v1428_v28, %v1427_v24  ;;  %v1445_v12 = vsel %vm217_vm0, %v1443_v27, 0.0  ;;  %1611 = vmatpush.bf16.msra.mxu0 %v3358_v25  ;;  %v3357_v28 = vld [vmem:[%s4713_s9 + $0x10] sm:$0xff] }
 0x69c   :  { %1446 = vadd.xlane.f32.xlu2 %v1445_v12  ;;  %v3356_v12 = vld [vmem:[%s4713_s9 + $0x8] sm:$0xff] }
 0x69d   :  { %v1431_v30 = vadd.f32 %v1429_v29, %v3680_v21 }
 0x69f   :  { %v4135_v31 = vadd.f32 %v1432_v16, %v1431_v30  ;;  %1612 = vmatpush.bf16.msra.mxu0 %v3357_v28 }
 0x6a1   :  { %v1438_v15 = vsel %vm221_vm1, %v4135_v31, 0.0  ;;  %v1444_v32 = vmul.f32 %v4135_v31, %v4135_v31 }
 0x6a2   :  { %1439 = vadd.xlane.f32.xlu1 %v1438_v15  ;;  %v3355_v15 = vld [vmem:[%s4713_s9] sm:$0xff] }
 0x6a3   :  { %v1448_v33 = vsel %vm221_vm1, %v1444_v32, 0.0  ;;  %1613 = vmatpush.bf16.msra.mxu0 %v3356_v12 }
 0x6a4   :  { %1449 = vadd.xlane.f32.xlu2 %v1448_v33 }
 0x6a7   :  { %1614 = vmatpush.bf16.msra.mxu0 %v3355_v15  ;;  %v3236_v15 = vld [vmem:[%s4708_s4 + $0x4] sm:$0xf] }
 0x70d   :  { %v1437_v34 = vpop.xlane.xlu0 %1436 }
 0x70e   :  { %v1441_v35 = vmul.f32 %v1437_v34, %v3661_v44 }
 0x70f   :  { %v1447_v36 = vpop.xlane.xlu2 %1446 }
 0x710   :  { %v1453_v37 = vmul.f32 %v1441_v35, %v1441_v35  ;;  %v1451_v38 = vmul.f32 %v1447_v36, %v3661_v44  ;;  %v1457_v61 = vsub.f32 %v4126_v23, %v1441_v35 }
 0x712   :  { %v1455_v21 = vsub.f32 %v1451_v38, %v1453_v37 }
 0x714   :  { %v1459_v40 = vadd.f32 1e-05, %v1455_v21 }
 0x715   :  { %v1440_v42 = vpop.xlane.xlu1 %1439 }
 0x716   :  { %3424 = vrsqrt.f32 %v1459_v40  ;;  %v1442_v43 = vmul.f32 %v1440_v42, %v3661_v44  ;;  %vm1467_vm7 = vweird.f32 %v1459_v40 }
 0x717   :  { %v1450_v45 = vpop.xlane.xlu2 %1449 }
 0x718   :  { %v1454_v46 = vmul.f32 %v1442_v43, %v1442_v43  ;;  %v1452_v47 = vmul.f32 %v1450_v45, %v3661_v44  ;;  %v1458_v3 = vsub.f32 %v4135_v31, %v1442_v43 }
 0x71a   :  { %v1456_v48 = vsub.f32 %v1452_v47, %v1454_v46 }
 0x71c   :  { %v3425_v49 = vpop.eup %3424  ;;  %v1460_v50 = vadd.f32 1e-05, %v1456_v48 }
 0x71d   :  { %v1462_v51 = vmul.f32 %v3425_v49, %v1459_v40  ;;  %vm1468_vm6 = vweird.f32 %v3425_v49 }
 0x71e   :  { %3426 = vrsqrt.f32 %v1460_v50  ;;  %vm1469_vm8 = vmor %vm1467_vm7, %vm1468_vm6  ;;  %vm1477_vm10 = vweird.f32 %v1460_v50 }
 0x71f   :  { %v1463_v52 = vmul.f32 %v3425_v49, %v1462_v51 }
 0x721   :  { %v1464_v53 = vmul.f32 0.5, %v1463_v52 }
 0x723   :  { %v1465_v54 = vsub.f32 1.5, %v1464_v53 }
 0x724   :  { %v3427_v55 = vpop.eup %3426 }
 0x725   :  { %v1466_v56 = vmul.f32 %v3425_v49, %v1465_v54  ;;  %v1472_v57 = vmul.f32 %v3427_v55, %v1460_v50  ;;  %vm1478_vm9 = vweird.f32 %v3427_v55 }
 0x726   :  { %vm1479_vm11 = vmor %vm1477_vm10, %vm1478_vm9 }
 0x727   :  { %v1473_v58 = vmul.f32 %v3427_v55, %v1472_v57  ;;  %v1470_v59 = vsel %vm1469_vm8, %v3425_v49, %v1466_v56  ;;  %v1578_v56 = vperm.slane %v4118_v6, 1 }
 0x728   :  { %v1481_v1 = vmul.f32 %v1470_v59, %v1457_v61 }
 0x729   :  { %v1474_v60 = vmul.f32 0.5, %v1473_v58 }
 0x72a   :  { %v1484_v5 = vmul.f32 %v1483_v0, %v1481_v1 }
 0x72b   :  { %v1475_v62 = vsub.f32 1.5, %v1474_v60 }
 0x72c   :  { %v1487_v10 = vadd.f32 %v1486_v8, %v1484_v5 }
 0x72d   :  { %v1476_v2 = vmul.f32 %v3427_v55, %v1475_v62 }
 0x72f   :  { %v1480_v4 = vsel %vm1479_vm11, %v3427_v55, %v1476_v2  ;;  %vm1603_vm11 = vcmask 523264  }
 0x730   :  { %v1482_v7 = vmul.f32 %v1480_v4, %v1458_v3 }
 0x732   :  { %v1485_v9 = vmul.f32 %v1483_v0, %v1482_v7 }
 0x734   :  { %v1488_v11 = vadd.f32 %v1486_v8, %v1485_v9 }
 0x736   :  { %v1489_v13 = vpack.c.bf16 %v1488_v11, %v1487_v10  ;;  %v3360_v11 = vld [vmem:[%s4709_s5 + $0x18] sm:$0xff] }
 0x737   :  { %1713 = vmatpush.bf16.msrb.mxu1 %v3360_v11 }
 0x738   :  { %3216 = vmatmul.msk.bf16.vlgmr.msrb.gmra.mxu3 %vm217_vm0, %v1489_v13 }
 0x7bb   :  { %v1522_v16 = vpop.f32.mrf.mxu3 }
 0x7bc   :  { %v1523_v17 = vadd.f32 %v3377_v14, %v1522_v16 }
 0x7be   :  { %v3217_v18 = vmul.f32 -1.702, %v1523_v17 }
 0x7c0   :  { %v1531_v19 = vmul.f32 1.442695, %v3217_v18 }
 0x7c2   :  { %3428 = vpow2.f32 %v1531_v19 }
 0x7c3   :  { %v1524_v20 = vpop.f32.mrf.mxu3 }
 0x7c4   :  { %v1525_v22 = vadd.f32 %v3377_v14, %v1524_v20  ;;  %v3359_v14 = vld [vmem:[%s4709_s5 + $0x10] sm:$0xff] }
 0x7c5   :  { %1714 = vmatpush.bf16.msrb.mxu1 %v3359_v14 }
 0x7c6   :  { %v3218_v24 = vmul.f32 -1.702, %v1525_v22 }
 0x7c8   :  { %v3429_v26 = vpop.eup %3428  ;;  %v1533_v27 = vmul.f32 1.442695, %v3218_v24 }
 0x7c9   :  { %v1535_v29 = vadd.f32 1.0, %v3429_v26 }
 0x7ca   :  { %3430 = vpow2.f32 %v1533_v27 }
 0x7cb   :  { %3432 = vrcp.f32 %v1535_v29  ;;  %v1548_v39 = vand.u32 2147483648, %v1535_v29  ;;  %vm1542_vm13 = vweird.f32 %v1535_v29  ;;  %v1546_v40 = vand.u32 2147483647, %v1535_v29 }
 0x7cd   :  { %v1549_v47 = vor.u32 1.1754944e-38, %v1548_v39  ;;  %vm1547_vm7 = vcmp.eq.f32.partialorder %v1546_v40, 8.507059e+37 }
 0x7d0   :  { %v3431_v30 = vpop.eup %3430 }
 0x7d1   :  { %v3433_v32 = vpop.eup %3432  ;;  %v1536_v33 = vadd.f32 1.0, %v3431_v30 }
 0x7d2   :  { %v1538_v34 = vmul.f32 %v3433_v32, %v1535_v29  ;;  %vm1543_vm12 = vweird.f32 %v3433_v32 }
 0x7d3   :  { %3434 = vrcp.f32 %v1536_v33  ;;  %vm1544_vm14 = vmor %vm1542_vm13, %vm1543_vm12  ;;  %v1563_v42 = vand.u32 2147483648, %v1536_v33  ;;  %v1561_v46 = vand.u32 2147483647, %v1536_v33  ;;  %vm1557_vm8 = vweird.f32 %v1536_v33 }
 0x7d4   :  { %v1539_v35 = vsub.f32 1.0, %v1538_v34 }
 0x7d5   :  { %v1564_v50 = vor.u32 1.1754944e-38, %v1563_v42  ;;  %vm1562_vm10 = vcmp.eq.f32.partialorder %v1561_v46, 8.507059e+37  ;;  %v1678_v42 = vperm.slane %v3236_v15, 1 }
 0x7d6   :  { %v1540_v36 = vmul.f32 %v3433_v32, %v1539_v35 }
 0x7d8   :  { %v1541_v38 = vadd.f32 %v3433_v32, %v1540_v36  ;;  %v1675_v36 = vperm.slane %v3236_v15, 0 }
 0x7d9   :  { %v3435_v37 = vpop.eup %3434 }
 0x7da   :  { %v1553_v21 = vmul.f32 %v3435_v37, %v1536_v33  ;;  %v1545_v43 = vsel %vm1544_vm14, %v3433_v32, %v1541_v38  ;;  %vm1558_vm6 = vweird.f32 %v3435_v37 }
 0x7db   :  { %v1550_v49 = vsel %vm1547_vm7, %v1549_v47, %v1545_v43  ;;  %vm1559_vm9 = vmor %vm1557_vm8, %vm1558_vm6 }
 0x7dc   :  { %v1554_v41 = vsub.f32 1.0, %v1553_v21  ;;  %v1567_v53 = vmul.f32 %v1550_v49, %v1523_v17 }
 0x7de   :  { %v1555_v45 = vmul.f32 %v3435_v37, %v1554_v41 }
 0x7e0   :  { %v1556_v48 = vadd.f32 %v3435_v37, %v1555_v45 }
 0x7e2   :  { %v1560_v51 = vsel %vm1559_vm9, %v3435_v37, %v1556_v48  ;;  %v3378_v48 = vld [vmem:[%s4710_s6 + $0x1] ss:$0 sm:$0xff] }
 0x7e3   :  { %v1565_v52 = vsel %vm1562_vm10, %v1564_v50, %v1560_v51 }
 0x7e4   :  { %v1568_v54 = vmul.f32 %v1565_v52, %v1525_v22 }
 0x7e6   :  { %v1569_v55 = vpack.c.bf16 %v1568_v54, %v1567_v53 }
 0x7e8   :  { %3235 = vmatmul.msk.bf16.vlgmr.msra.gmra.mxu0 %vm1603_vm11, %v1569_v55 }
 0x865   :  { %v1616_v57 = vpop.f32.mrf.mxu0 }
 0x866   :  { %v1617_v58 = vadd.f32 %v1616_v57, %v1578_v56 }
 0x868   :  { %v4176_v59 = vadd.f32 %v1617_v58, %v4126_v23 }
 0x86a   :  { %v1627_v60 = vsel %vm217_vm0, %v4176_v59, 0.0  ;;  %v1635_v61 = vmul.f32 %v4176_v59, %v4176_v59 }
 0x86b   :  { %1628 = vadd.xlane.f32.xlu2 %v1627_v60 }
 0x86c   :  { %v1637_v62 = vsel %vm217_vm0, %v1635_v61, 0.0 }
 0x86d   :  { %v1618_v63 = vpop.f32.mrf.mxu0  ;;  %1638 = vadd.xlane.f32.xlu0 %v1637_v62 }
 0x86e   :  { %v1619_v0 = vadd.f32 %v1618_v63, %v1578_v56 }
 0x870   :  { %v4184_v1 = vadd.f32 %v1619_v0, %v4135_v31 }
 0x872   :  { %v1630_v6 = vsel %vm221_vm1, %v4184_v1, 0.0  ;;  %v1636_v23 = vmul.f32 %v4184_v1, %v4184_v1 }
 0x873   :  { %1631 = vadd.xlane.f32.xlu2 %v1630_v6 }
 0x874   :  { %v1640_v2 = vsel %vm221_vm1, %v1636_v23, 0.0 }
 0x87b   :  { %1641 = vadd.xlane.f32.xlu2 %v1640_v2 }
 0x8de   :  { %v1629_v3 = vpop.xlane.xlu2 %1628 }
 0x8df   :  { %v1633_v4 = vmul.f32 %v1629_v3, %v3661_v44 }
 0x8e0   :  { %v1639_v5 = vpop.xlane.xlu0 %1638 }
 0x8e1   :  { %v1645_v7 = vmul.f32 %v1633_v4, %v1633_v4  ;;  %v1643_v8 = vmul.f32 %v1639_v5, %v3661_v44  ;;  %v1649_v34 = vsub.f32 %v4176_v59, %v1633_v4 }
 0x8e3   :  { %v1647_v9 = vsub.f32 %v1643_v8, %v1645_v7 }
 0x8e5   :  { %v1651_v31 = vadd.f32 1e-05, %v1647_v9 }
 0x8e6   :  { %v1632_v10 = vpop.xlane.xlu2 %1631 }
 0x8e7   :  { %3436 = vrsqrt.f32 %v1651_v31  ;;  %v1634_v13 = vmul.f32 %v1632_v10, %v3661_v44  ;;  %vm1659_vm13 = vweird.f32 %v1651_v31 }
 0x8e9   :  { %v1646_v19 = vmul.f32 %v1634_v13, %v1634_v13  ;;  %v1650_v21 = vsub.f32 %v4184_v1, %v1634_v13 }
 0x8ed   :  { %v3437_v16 = vpop.eup %3436 }
 0x8ee   :  { %v1654_v17 = vmul.f32 %v3437_v16, %v1651_v31  ;;  %v1642_v18 = vpop.xlane.xlu2 %1641  ;;  %vm1660_vm12 = vweird.f32 %v3437_v16 }
 0x8ef   :  { %v1644_v20 = vmul.f32 %v1642_v18, %v3661_v44  ;;  %vm1661_vm14 = vmor %vm1659_vm13, %vm1660_vm12 }
 0x8f0   :  { %v1655_v22 = vmul.f32 %v3437_v16, %v1654_v17 }
 0x8f1   :  { %v1648_v24 = vsub.f32 %v1644_v20, %v1646_v19 }
 0x8f2   :  { %v1656_v26 = vmul.f32 0.5, %v1655_v22 }
 0x8f3   :  { %v1652_v25 = vadd.f32 1e-05, %v1648_v24 }
 0x8f4   :  { %v1657_v27 = vsub.f32 1.5, %v1656_v26 }
 0x8f5   :  { %3438 = vrsqrt.f32 %v1652_v25  ;;  %vm1669_vm7 = vweird.f32 %v1652_v25 }
 0x8f6   :  { %v1658_v29 = vmul.f32 %v3437_v16, %v1657_v27 }
 0x8f8   :  { %v1662_v32 = vsel %vm1661_vm14, %v3437_v16, %v1658_v29 }
 0x8f9   :  { %v1673_v37 = vmul.f32 %v1662_v32, %v1649_v34 }
 0x8fb   :  { %v3439_v28 = vpop.eup %3438  ;;  %v1676_v40 = vmul.f32 %v1675_v36, %v1673_v37 }
 0x8fc   :  { %v1664_v12 = vmul.f32 %v3439_v28, %v1652_v25  ;;  %vm1670_vm6 = vweird.f32 %v3439_v28 }
 0x8fd   :  { %vm1671_vm8 = vmor %vm1669_vm7, %vm1670_vm6  ;;  %v1679_v45 = vadd.f32 %v1678_v42, %v1676_v40 }
 0x8fe   :  { %v1665_v30 = vmul.f32 %v3439_v28, %v1664_v12 }
 0x900   :  { %v1666_v33 = vmul.f32 0.5, %v1665_v30 }
 0x902   :  { %v1667_v35 = vsub.f32 1.5, %v1666_v33 }
 0x904   :  { %v1668_v38 = vmul.f32 %v3439_v28, %v1667_v35 }
 0x906   :  { %v1672_v39 = vsel %vm1671_vm8, %v3439_v28, %v1668_v38 }
 0x907   :  { %v1674_v41 = vmul.f32 %v1672_v39, %v1650_v21 }
 0x909   :  { %v1677_v43 = vmul.f32 %v1675_v36, %v1674_v41 }
 0x90b   :  { %v1680_v46 = vadd.f32 %v1678_v42, %v1677_v43 }
 0x90d   :  { %v1681_v47 = vpack.c.bf16 %v1680_v46, %v1679_v45 }
 0x90f   :  { %3251 = vmatmul.msk.bf16.vlgmr.msrb.gmra.mxu1 %vm217_vm0, %v1681_v47 }
 0x98c   :  { %v1716_v49 = vpop.f32.mrf.mxu1 }
 0x98d   :  { %v4210_v50 = vadd.f32 %v3378_v48, %v1716_v49 }
 0x98f   :  { %v4213_v51 = vrot.slane %v4210_v50, 1  ;;  %v4216_v52 = vrot.slane %v4210_v50, 2  ;;  %v4219_v53 = vrot.slane %v4210_v50, 3  ;;  %1791 = vst [vmem:[#allocation1] ss:$9 sm:$0xff] %v4210_v50  ;;  %1731 = vrot.lane.b32.xlu1 %v4210_v50, %s3515_s27  ;;  %v4225_v54 = vrot.slane %v4210_v50, 4 }
 0x990   :  { %v4238_v55 = vrot.slane %v4210_v50, 5  ;;  %v4249_v58 = vrot.slane %v4210_v50, 7  ;;  %v4256_v61 = vrot.slane %v4210_v50, 6 }
 0x991   :  { %1793 = vst [vmem:[#allocation1 + $0x1] ss:$9 sm:$0xff] %v4213_v51  ;;  %1735 = vrot.lane.b32.xlu2 %v4216_v52, %s3515_s27  ;;  %1733 = vrot.lane.b32.xlu0 %v4213_v51, %s3515_s27 }
 0x992   :  { %1795 = vst [vmem:[#allocation1 + $0x2] ss:$9 sm:$0xff] %v4216_v52 }
 0x993   :  { %1797 = vst [vmem:[#allocation1 + $0x3] ss:$9 sm:$0xff] %v4219_v53 }
 0x994   :  { %1799 = vst [vmem:[#allocation1 + $0x4] ss:$9 sm:$0xff] %v4225_v54  ;;  %v1718_v57 = vpop.f32.mrf.mxu1 }
 0x995   :  { %v4253_v60 = vadd.f32 %v3378_v48, %v1718_v57 }
 0x997   :  { %1739 = vrot.lane.b32.xlu1 %v4225_v54, %s3515_s27  ;;  %v4266_v62 = vrot.slane %v4253_v60, 1 }
 0x999   :  { %1741 = vrot.lane.b32.xlu2 %v4238_v55, %s3515_s27  ;;  %1737 = vrot.lane.b32.xlu0 %v4219_v53, %s3515_s27 }
 0x99b   :  { %v4244_v56 = vld [vmem:[#allocation1] sm:$0xff] }
 0x99c   :  { %1801 = vst [vmem:[#allocation1] ss:$9 sm:$0xff] %v4210_v50 }
 0x99d   :  { %1803 = vst [vmem:[#allocation1 + $0x1] ss:$9 sm:$0xff] %v4213_v51 }
 0x99e   :  { %1805 = vst [vmem:[#allocation1 + $0x2] ss:$9 sm:$0xff] %v4216_v52 }
 0x99f   :  { %1807 = vst [vmem:[#allocation1 + $0x3] ss:$9 sm:$0xff] %v4219_v53  ;;  %1745 = vrot.lane.b32.xlu1 %v4249_v58, %s3515_s27 }
 0x9a0   :  { %1809 = vst [vmem:[#allocation1 + $0x4] ss:$9 sm:$0xff] %v4225_v54 }
 0x9a1   :  { %1747 = vrot.lane.b32.xlu2 %v4253_v60, %s3515_s27  ;;  %1743 = vrot.lane.b32.xlu0 %v4256_v61, %s3515_s27 }
 0x9a7   :  { %v1810_v63 = vld [vmem:[#allocation1] sm:$0xff]  ;;  %1751 = vrot.lane.b32.xlu1 %v4210_v50, %s3516_s28 }
 0x9a8   :  { %1837 = vst [vmem:[#allocation1] ss:$9 sm:$0xff] %v4238_v55 }
 0x9a9   :  { %1839 = vst [vmem:[#allocation1 + $0x1] ss:$9 sm:$0xff] %v4256_v61  ;;  %1753 = vrot.lane.b32.xlu2 %v4213_v51, %s3516_s28  ;;  %1749 = vrot.lane.b32.xlu0 %v4266_v62, %s3515_s27 }
 0x9aa   :  { %1841 = vst [vmem:[#allocation1 + $0x2] ss:$9 sm:$0xff] %v4249_v58 }
 0x9ab   :  { %1843 = vst [vmem:[#allocation1 + $0x3] ss:$9 sm:$0xff] %v4253_v60 }
 0x9ac   :  { %1845 = vst [vmem:[#allocation1 + $0x4] ss:$9 sm:$0xff] %v4266_v62 }
 0x9af   :  { %1757 = vrot.lane.b32.xlu1 %v4219_v53, %s3516_s28 }
 0x9b1   :  { %1759 = vrot.lane.b32.xlu2 %v4225_v54, %s3516_s28  ;;  %1755 = vrot.lane.b32.xlu0 %v4216_v52, %s3516_s28 }
 0x9b3   :  { %v4285_v0 = vld [vmem:[#allocation1] sm:$0xff] }
 0x9b4   :  { %1847 = vst [vmem:[#allocation1] ss:$9 sm:$0xff] %v4238_v55 }
 0x9b5   :  { %1849 = vst [vmem:[#allocation1 + $0x1] ss:$9 sm:$0xff] %v4256_v61 }
 0x9b6   :  { %1851 = vst [vmem:[#allocation1 + $0x2] ss:$9 sm:$0xff] %v4249_v58 }
 0x9b7   :  { %1853 = vst [vmem:[#allocation1 + $0x3] ss:$9 sm:$0xff] %v4253_v60  ;;  %1763 = vrot.lane.b32.xlu1 %v4256_v61, %s3516_s28 }
 0x9b8   :  { %1855 = vst [vmem:[#allocation1 + $0x4] ss:$9 sm:$0xff] %v4266_v62 }
 0x9b9   :  { %1765 = vrot.lane.b32.xlu2 %v4249_v58, %s3516_s28  ;;  %1761 = vrot.lane.b32.xlu0 %v4238_v55, %s3516_s28 }
 0x9bf   :  { %1769 = vrot.lane.b32.xlu1 %v4266_v62, %s3516_s28  ;;  %v1856_v6 = vld [vmem:[#allocation1] sm:$0xff] }
 0x9c1   :  { %1771 = vrot.lane.b32.xlu2 %v4210_v50, %s3517_s29  ;;  %1767 = vrot.lane.b32.xlu0 %v4253_v60, %s3516_s28 }
 0x9c7   :  { %1775 = vrot.lane.b32.xlu1 %v4216_v52, %s3517_s29 }
 0x9c9   :  { %1777 = vrot.lane.b32.xlu2 %v4219_v53, %s3517_s29  ;;  %1773 = vrot.lane.b32.xlu0 %v4213_v51, %s3517_s29 }
 0x9cf   :  { %1811 = vrot.lane.b32.xlu1 %v1810_v63, %s3518_s30 }
 0x9d1   :  { %1779 = vrot.lane.b32.xlu0 %v4225_v54, %s3517_s29  ;;  %1857 = vrot.lane.b32.xlu2 %v1856_v6, %s3518_s30 }
 0x9d7   :  { %1783 = vrot.lane.b32.xlu1 %v4256_v61, %s3517_s29 }
 0x9d9   :  { %1781 = vrot.lane.b32.xlu0 %v4238_v55, %s3517_s29  ;;  %1785 = vrot.lane.b32.xlu2 %v4249_v58, %s3517_s29 }
 0x9df   :  { %1789 = vrot.lane.b32.xlu1 %v4266_v62, %s3517_s29 }
 0x9e1   :  { %1787 = vrot.lane.b32.xlu0 %v4253_v60, %s3517_s29 }
 0x9eb   :  { %v4324_v23 = vpop.permute.xlu2 %1735 }
 0x9ec   :  { %1887 = vst [vmem:[#allocation1 + $0x2] ss:$9 sm:$0xff] %v4324_v23 }
 0x9f3   :  { %v4327_v2 = vpop.permute.xlu2 %1741 }
 0x9fb   :  { %v4335_v5 = vpop.permute.xlu2 %1747 }
 0xa01   :  { %v4329_v3 = vpop.permute.xlu1 %1731 }
 0xa02   :  { %1883 = vst [vmem:[#allocation1] ss:$9 sm:$0xff] %v4329_v3 }
 0xa03   :  { %v4332_v4 = vpop.permute.xlu0 %1733  ;;  %v4343_v9 = vpop.permute.xlu2 %1753 }
 0xa04   :  { %1885 = vst [vmem:[#allocation1 + $0x1] ss:$9 sm:$0xff] %v4332_v4 }
 0xa09   :  { %v4337_v7 = vpop.permute.xlu1 %1739 }
 0xa0a   :  { %1891 = vst [vmem:[#allocation1 + $0x4] ss:$9 sm:$0xff] %v4337_v7 }
 0xa0b   :  { %v4340_v8 = vpop.permute.xlu0 %1737  ;;  %v4358_v14 = vpop.permute.xlu2 %1759 }
 0xa0c   :  { %1889 = vst [vmem:[#allocation1 + $0x3] ss:$9 sm:$0xff] %v4340_v8 }
 0xa11   :  { %v4345_v31 = vpop.permute.xlu1 %1745 }
 0xa13   :  { %v4347_v10 = vld [vmem:[#allocation1] sm:$0xff]  ;;  %v4353_v11 = vpop.permute.xlu0 %1743  ;;  %v4369_v19 = vpop.permute.xlu2 %1765 }
 0xa14   :  { %1893 = vst [vmem:[#allocation1] ss:$9 sm:$0xff] %v4329_v3 }
 0xa15   :  { %1895 = vst [vmem:[#allocation1 + $0x1] ss:$9 sm:$0xff] %v4332_v4 }
 0xa16   :  { %1897 = vst [vmem:[#allocation1 + $0x2] ss:$9 sm:$0xff] %v4324_v23 }
 0xa17   :  { %1899 = vst [vmem:[#allocation1 + $0x3] ss:$9 sm:$0xff] %v4340_v8 }
 0xa18   :  { %1901 = vst [vmem:[#allocation1 + $0x4] ss:$9 sm:$0xff] %v4337_v7 }
 0xa19   :  { %v4356_v13 = vpop.permute.xlu1 %1751 }
 0xa1b   :  { %v4363_v17 = vpop.permute.xlu0 %1749  ;;  %v4378_v24 = vpop.permute.xlu2 %1771 }
 0xa1f   :  { %v1902_v16 = vld [vmem:[#allocation1] sm:$0xff] }
 0xa20   :  { %1935 = vst [vmem:[#allocation1 + $0x3] ss:$9 sm:$0xff] %v4335_v5  ;;  %1903 = vrot.lane.b32.xlu2 %v1902_v16, %s3518_s30 }
 0xa21   :  { %1929 = vst [vmem:[#allocation1] ss:$9 sm:$0xff] %v4327_v2  ;;  %v4365_v18 = vpop.permute.xlu1 %1757 }
 0xa22   :  { %1933 = vst [vmem:[#allocation1 + $0x2] ss:$9 sm:$0xff] %v4345_v31 }
 0xa23   :  { %1931 = vst [vmem:[#allocation1 + $0x1] ss:$9 sm:$0xff] %v4353_v11  ;;  %v4386_v27 = vpop.permute.xlu2 %1777  ;;  %v4394_v29 = vpop.permute.xlu0 %1755 }
 0xa24   :  { %1937 = vst [vmem:[#allocation1 + $0x4] ss:$9 sm:$0xff] %v4363_v17 }
 0xa29   :  { %v4372_v20 = vpop.permute.xlu1 %1763 }
 0xa2b   :  { %v4374_v22 = vld [vmem:[#allocation1] sm:$0xff]  ;;  %v1858_v30 = vpop.permute.xlu2 %1857  ;;  %v4408_v32 = vpop.permute.xlu0 %1761 }
 0xa2c   :  { %1939 = vst [vmem:[#allocation1] ss:$9 sm:$0xff] %v4327_v2 }
 0xa2d   :  { %1941 = vst [vmem:[#allocation1 + $0x1] ss:$9 sm:$0xff] %v4353_v11 }
 0xa2e   :  { %1943 = vst [vmem:[#allocation1 + $0x2] ss:$9 sm:$0xff] %v4345_v31 }
 0xa2f   :  { %1945 = vst [vmem:[#allocation1 + $0x3] ss:$9 sm:$0xff] %v4335_v5 }
 0xa30   :  { %1947 = vst [vmem:[#allocation1 + $0x4] ss:$9 sm:$0xff] %v4363_v17 }
 0xa31   :  { %v4383_v25 = vpop.permute.xlu1 %1769 }
 0xa33   :  { %v4417_v34 = vpop.permute.xlu0 %1767  ;;  %v4448_v41 = vpop.permute.xlu2 %1785 }
 0xa37   :  { %v1948_v26 = vld [vmem:[#allocation1] sm:$0xff] }
 0xa38   :  { %1983 = vst [vmem:[#allocation1 + $0x4] ss:$9 sm:$0xff] %v4358_v14  ;;  %1949 = vrot.lane.b32.xlu0 %v1948_v26, %s3518_s30 }
 0xa39   :  { %1975 = vst [vmem:[#allocation1] ss:$9 sm:$0xff] %v4356_v13  ;;  %v4390_v28 = vpop.permute.xlu1 %1775 }
 0xa3a   :  { %1977 = vst [vmem:[#allocation1 + $0x1] ss:$9 sm:$0xff] %v4343_v9 }
 0xa3b   :  { %1981 = vst [vmem:[#allocation1 + $0x3] ss:$9 sm:$0xff] %v4365_v18  ;;  %v4427_v36 = vpop.permute.xlu0 %1773 }
 0xa3c   :  { %1979 = vst [vmem:[#allocation1 + $0x2] ss:$9 sm:$0xff] %v4394_v29 }
 0xa41   :  { %v1812_v12 = vpop.permute.xlu1 %1811 }
 0xa42   :  { %3252 = vmatpush.xpose.msk.msrb.mxu2 %vm466_vm15, %v1812_v12 }
 0xa43   :  { %v4398_v15 = vld [vmem:[#allocation1] sm:$0xff]  ;;  %v4434_v38 = vpop.permute.xlu0 %1779 }
 0xa44   :  { %1985 = vst [vmem:[#allocation1] ss:$9 sm:$0xff] %v4356_v13 }
 0xa45   :  { %1987 = vst [vmem:[#allocation1 + $0x1] ss:$9 sm:$0xff] %v4343_v9  ;;  %3253 = vmatmul.msk.f32.vlgmr.msrb.gmra.mxu2 %vm466_vm15, %v4244_v56 }
 0xa46   :  { %3254 = vmatpush.xpose.msk.msra.mxu2 %vm466_vm15, %v1858_v30  ;;  %1989 = vst [vmem:[#allocation1 + $0x2] ss:$9 sm:$0xff] %v4394_v29 }
 0xa47   :  { %1991 = vst [vmem:[#allocation1 + $0x3] ss:$9 sm:$0xff] %v4365_v18 }
 0xa48   :  { %1993 = vst [vmem:[#allocation1 + $0x4] ss:$9 sm:$0xff] %v4358_v14 }
 0xa49   :  { %v4444_v39 = vpop.permute.xlu1 %1783 }
 0xa4b   :  { %v4446_v40 = vpop.permute.xlu0 %1781 }
 0xa4d   :  { %3255 = vmatmul.msk.f32.vlgmr.msra.gmra.mxu2 %vm466_vm15, %v4285_v0 }
 0xa4f   :  { %v1994_v33 = vld [vmem:[#allocation1] sm:$0xff] }
 0xa50   :  { %2025 = vst [vmem:[#allocation1 + $0x2] ss:$9 sm:$0xff] %v4369_v19  ;;  %1995 = vrot.lane.b32.xlu2 %v1994_v33, %s3518_s30 }
 0xa51   :  { %2023 = vst [vmem:[#allocation1 + $0x1] ss:$9 sm:$0xff] %v4372_v20  ;;  %v4454_v43 = vpop.permute.xlu1 %1789 }
 0xa52   :  { %2021 = vst [vmem:[#allocation1] ss:$9 sm:$0xff] %v4408_v32 }
 0xa53   :  { %2029 = vst [vmem:[#allocation1 + $0x4] ss:$9 sm:$0xff] %v4383_v25  ;;  %v4457_v45 = vpop.permute.xlu0 %1787 }
 0xa54   :  { %2027 = vst [vmem:[#allocation1 + $0x3] ss:$9 sm:$0xff] %v4417_v34 }
 0xa5b   :  { %v4420_v35 = vld [vmem:[#allocation1] sm:$0xff] }
 0xa5c   :  { %2031 = vst [vmem:[#allocation1] ss:$9 sm:$0xff] %v4408_v32 }
 0xa5d   :  { %2033 = vst [vmem:[#allocation1 + $0x1] ss:$9 sm:$0xff] %v4372_v20 }
 0xa5e   :  { %2035 = vst [vmem:[#allocation1 + $0x2] ss:$9 sm:$0xff] %v4369_v19 }
 0xa5f   :  { %2037 = vst [vmem:[#allocation1 + $0x3] ss:$9 sm:$0xff] %v4417_v34 }
 0xa60   :  { %2039 = vst [vmem:[#allocation1 + $0x4] ss:$9 sm:$0xff] %v4383_v25 }
 0xa67   :  { %v2040_v37 = vld [vmem:[#allocation1] sm:$0xff] }
 0xa68   :  { %2073 = vst [vmem:[#allocation1 + $0x3] ss:$9 sm:$0xff] %v4386_v27  ;;  %2041 = vrot.lane.b32.xlu1 %v2040_v37, %s3518_s30 }
 0xa69   :  { %2067 = vst [vmem:[#allocation1] ss:$9 sm:$0xff] %v4378_v24 }
 0xa6a   :  { %2071 = vst [vmem:[#allocation1 + $0x2] ss:$9 sm:$0xff] %v4390_v28 }
 0xa6b   :  { %2069 = vst [vmem:[#allocation1 + $0x1] ss:$9 sm:$0xff] %v4427_v36 }
 0xa6c   :  { %2075 = vst [vmem:[#allocation1 + $0x4] ss:$9 sm:$0xff] %v4434_v38 }
 0xa73   :  { %v4437_v21 = vld [vmem:[#allocation1] sm:$0xff] }
 0xa74   :  { %2077 = vst [vmem:[#allocation1] ss:$9 sm:$0xff] %v4378_v24 }
 0xa75   :  { %2079 = vst [vmem:[#allocation1 + $0x1] ss:$9 sm:$0xff] %v4427_v36 }
 0xa76   :  { %2081 = vst [vmem:[#allocation1 + $0x2] ss:$9 sm:$0xff] %v4390_v28 }
 0xa77   :  { %2083 = vst [vmem:[#allocation1 + $0x3] ss:$9 sm:$0xff] %v4386_v27 }
 0xa78   :  { %2085 = vst [vmem:[#allocation1 + $0x4] ss:$9 sm:$0xff] %v4434_v38 }
 0xa7a   :  { %v1904_v48 = vpop.permute.xlu2 %1903 }
 0xa7b   :  { %3256 = vmatpush.xpose.msk.msra.mxu3 %vm466_vm15, %v1904_v48 }
 0xa7e   :  { %3257 = vmatmul.msk.f32.vlgmr.msra.gmra.mxu3 %vm466_vm15, %v4347_v10 }
 0xa7f   :  { %v2086_v42 = vld [vmem:[#allocation1] sm:$0xff] }
 0xa80   :  { %2117 = vst [vmem:[#allocation1 + $0x2] ss:$9 sm:$0xff] %v4448_v41  ;;  %2087 = vrot.lane.b32.xlu0 %v2086_v42, %s3518_s30 }
 0xa81   :  { %2115 = vst [vmem:[#allocation1 + $0x1] ss:$9 sm:$0xff] %v4444_v39 }
 0xa82   :  { %2113 = vst [vmem:[#allocation1] ss:$9 sm:$0xff] %v4446_v40 }
 0xa83   :  { %2121 = vst [vmem:[#allocation1 + $0x4] ss:$9 sm:$0xff] %v4454_v43 }
 0xa84   :  { %2119 = vst [vmem:[#allocation1 + $0x3] ss:$9 sm:$0xff] %v4457_v45 }
 0xa8b   :  { %v4460_v46 = vld [vmem:[#allocation1] sm:$0xff] }
 0xa8c   :  { %2123 = vst [vmem:[#allocation1] ss:$9 sm:$0xff] %v4446_v40 }
 0xa8d   :  { %2125 = vst [vmem:[#allocation1 + $0x1] ss:$9 sm:$0xff] %v4444_v39 }
 0xa8e   :  { %2127 = vst [vmem:[#allocation1 + $0x2] ss:$9 sm:$0xff] %v4448_v41 }
 0xa8f   :  { %2129 = vst [vmem:[#allocation1 + $0x3] ss:$9 sm:$0xff] %v4457_v45 }
 0xa90   :  { %2131 = vst [vmem:[#allocation1 + $0x4] ss:$9 sm:$0xff] %v4454_v43 }
 0xa97   :  { %v2132_v47 = vld [vmem:[#allocation1] sm:$0xff] }
 0xa98   :  { %2247 = vst [vmem:[#allocation1] ss:$9 sm:$0xff] %v4210_v50  ;;  %2133 = vrot.lane.b32.xlu1 %v2132_v47, %s3518_s30 }
 0xa99   :  { %2249 = vst [vmem:[#allocation1 + $0x1] ss:$9 sm:$0xff] %v4213_v51 }
 0xa9a   :  { %2251 = vst [vmem:[#allocation1 + $0x2] ss:$9 sm:$0xff] %v4216_v52 }
 0xa9b   :  { %2253 = vst [vmem:[#allocation1 + $0x3] ss:$9 sm:$0xff] %v4219_v53 }
 0xa9c   :  { %2255 = vst [vmem:[#allocation1 + $0x4] ss:$9 sm:$0xff] %v4225_v54 }
 0xaa3   :  { %v4473_v49 = vld [vmem:[#allocation1] sm:$0xff] }
 0xaa4   :  { %2284 = vst [vmem:[#allocation1] ss:$9 sm:$0xff] %v4238_v55 }
 0xaa5   :  { %2286 = vst [vmem:[#allocation1 + $0x1] ss:$9 sm:$0xff] %v4256_v61 }
 0xaa6   :  { %2288 = vst [vmem:[#allocation1 + $0x2] ss:$9 sm:$0xff] %v4249_v58 }
 0xaa7   :  { %2290 = vst [vmem:[#allocation1 + $0x3] ss:$9 sm:$0xff] %v4253_v60 }
 0xaa8   :  { %2292 = vst [vmem:[#allocation1 + $0x4] ss:$9 sm:$0xff] %v4266_v62 }
 0xaaa   :  { %v1996_v52 = vpop.permute.xlu2 %1995  ;;  %v1950_v54 = vpop.permute.xlu0 %1949 }
 0xaab   :  { %3260 = vmatpush.xpose.msk.msra.mxu1 %vm466_vm15, %v1996_v52  ;;  %3258 = vmatpush.xpose.msk.msrb.mxu0 %vm466_vm15, %v1950_v54 }
 0xaae   :  { %3261 = vmatmul.msk.f32.vlgmr.msra.gmra.mxu1 %vm466_vm15, %v4398_v15  ;;  %3259 = vmatmul.msk.f32.vlgmr.msrb.gmra.mxu0 %vm466_vm15, %v4374_v22 }
 0xaaf   :  { %v2293_v50 = vld [vmem:[#allocation1] sm:$0xff] }
 0xab0   :  { %2321 = vst [vmem:[#allocation1] ss:$9 sm:$0xff] %v4329_v3  ;;  %2294 = vrot.lane.b32.xlu0 %v2293_v50, %s3519_s1 }
 0xab1   :  { %2323 = vst [vmem:[#allocation1 + $0x1] ss:$9 sm:$0xff] %v4332_v4 }
 0xab2   :  { %2325 = vst [vmem:[#allocation1 + $0x2] ss:$9 sm:$0xff] %v4324_v23 }
 0xab3   :  { %2327 = vst [vmem:[#allocation1 + $0x3] ss:$9 sm:$0xff] %v4340_v8 }
 0xab4   :  { %2329 = vst [vmem:[#allocation1 + $0x4] ss:$9 sm:$0xff] %v4337_v7 }
 0xabb   :  { %v4489_v51 = vld [vmem:[#allocation1] sm:$0xff] }
 0xabc   :  { %2358 = vst [vmem:[#allocation1] ss:$9 sm:$0xff] %v4327_v2 }
 0xabd   :  { %2360 = vst [vmem:[#allocation1 + $0x1] ss:$9 sm:$0xff] %v4353_v11 }
 0xabe   :  { %2362 = vst [vmem:[#allocation1 + $0x2] ss:$9 sm:$0xff] %v4345_v31 }
 0xabf   :  { %2364 = vst [vmem:[#allocation1 + $0x3] ss:$9 sm:$0xff] %v4335_v5 }
 0xac0   :  { %2366 = vst [vmem:[#allocation1 + $0x4] ss:$9 sm:$0xff] %v4363_v17 }
 0xac7   :  { %v4499_v53 = vld [vmem:[#allocation1] sm:$0xff] }
 0xac8   :  { %2395 = vst [vmem:[#allocation1] ss:$9 sm:$0xff] %v4356_v13  ;;  %v1834_v55 = vpop.f32.mrf.mxu2 }
 0xac9   :  { %2397 = vst [vmem:[#allocation1 + $0x1] ss:$9 sm:$0xff] %v4343_v9  ;;  %v2159_v57 = vsel %vm813_vm2, %v1834_v55, -inf }
 0xaca   :  { %2399 = vst [vmem:[#allocation1 + $0x2] ss:$9 sm:$0xff] %v4394_v29 }
 0xacb   :  { %2401 = vst [vmem:[#allocation1 + $0x3] ss:$9 sm:$0xff] %v4365_v18 }
 0xacc   :  { %2403 = vst [vmem:[#allocation1 + $0x4] ss:$9 sm:$0xff] %v4358_v14 }
 0xad0   :  { %v1880_v58 = vpop.f32.mrf.mxu2 }
 0xad1   :  { %v2162_v60 = vsel %vm813_vm2, %v1880_v58, -inf }
 0xad2   :  { %2163 = vmax.xlane.f32.xlu2 %v2162_v60 }
 0xad3   :  { %v4509_v56 = vld [vmem:[#allocation1] sm:$0xff] }
 0xad4   :  { %2432 = vst [vmem:[#allocation1] ss:$9 sm:$0xff] %v4408_v32 }
 0xad5   :  { %2434 = vst [vmem:[#allocation1 + $0x1] ss:$9 sm:$0xff] %v4372_v20 }
 0xad6   :  { %2436 = vst [vmem:[#allocation1 + $0x2] ss:$9 sm:$0xff] %v4369_v19 }
 0xad7   :  { %2438 = vst [vmem:[#allocation1 + $0x3] ss:$9 sm:$0xff] %v4417_v34 }
 0xad8   :  { %2440 = vst [vmem:[#allocation1 + $0x4] ss:$9 sm:$0xff] %v4383_v25 }
 0xada   :  { %v2042_v61 = vpop.permute.xlu1 %2041  ;;  %2160 = vmax.xlane.f32.xlu0 %v2159_v57 }
 0xadb   :  { %3262 = vmatpush.xpose.msk.msrb.mxu2 %vm466_vm15, %v2042_v61 }
 0xade   :  { %3263 = vmatmul.msk.f32.vlgmr.msrb.gmra.mxu2 %vm466_vm15, %v4420_v35 }
 0xadf   :  { %v2441_v62 = vld [vmem:[#allocation1] sm:$0xff] }
 0xae0   :  { %2469 = vst [vmem:[#allocation1] ss:$9 sm:$0xff] %v4378_v24 }
 0xae1   :  { %2471 = vst [vmem:[#allocation1 + $0x1] ss:$9 sm:$0xff] %v4427_v36 }
 0xae2   :  { %2473 = vst [vmem:[#allocation1 + $0x2] ss:$9 sm:$0xff] %v4390_v28 }
 0xae3   :  { %2475 = vst [vmem:[#allocation1 + $0x3] ss:$9 sm:$0xff] %v4386_v27 }
 0xae4   :  { %2477 = vst [vmem:[#allocation1 + $0x4] ss:$9 sm:$0xff] %v4434_v38 }
 0xaeb   :  { %v4526_v63 = vld [vmem:[#allocation1] sm:$0xff] }
 0xaec   :  { %2512 = vst [vmem:[#allocation1 + $0x3] ss:$9 sm:$0xff] %v4457_v45 }
 0xaed   :  { %2506 = vst [vmem:[#allocation1] ss:$9 sm:$0xff] %v4446_v40 }
 0xaee   :  { %2508 = vst [vmem:[#allocation1 + $0x1] ss:$9 sm:$0xff] %v4444_v39 }
 0xaef   :  { %2510 = vst [vmem:[#allocation1 + $0x2] ss:$9 sm:$0xff] %v4448_v41 }
 0xaf0   :  { %2514 = vst [vmem:[#allocation1 + $0x4] ss:$9 sm:$0xff] %v4454_v43 }
 0xaf2   :  { %v2088_v0 = vpop.permute.xlu0 %2087 }
 0xaf3   :  { %3264 = vmatpush.xpose.msk.msrb.mxu3 %vm466_vm15, %v2088_v0 }
 0xaf6   :  { %3265 = vmatmul.msk.f32.vlgmr.msrb.gmra.mxu3 %vm466_vm15, %v4437_v21 }
 0xb01   :  { %v1926_v2 = vpop.f32.mrf.mxu3 }
 0xb02   :  { %v2165_v3 = vsel %vm813_vm2, %v1926_v2, -inf }
 0xb03   :  { %2166 = vmax.xlane.f32.xlu1 %v2165_v3  ;;  %v2515_v3 = vld [vmem:[#allocation1] sm:$0xff] }
 0xb0a   :  { %v2134_v6 = vpop.permute.xlu1 %2133 }
 0xb0b   :  { %3266 = vmatpush.xpose.msk.msra.mxu0 %vm466_vm15, %v2134_v6 }
 0xb0e   :  { %3267 = vmatmul.msk.f32.vlgmr.msra.gmra.mxu0 %vm466_vm15, %v4460_v46 }
 0xb22   :  { %v2295_v23 = vpop.permute.xlu0 %2294 }
 0xb23   :  { %3270 = vmatpush.msk.msra.mxu2 %vm918_vm3, %v2295_v23 }
 0xb2b   :  { %v1972_v4 = vpop.f32.mrf.mxu0  ;;  %v2018_v13 = vpop.f32.mrf.mxu1 }
 0xb2c   :  { %v2168_v5 = vsel %vm813_vm2, %v1972_v4, -inf  ;;  %v2171_v14 = vsel %vm813_vm2, %v2018_v13, -inf }
 0xb2d   :  { %2169 = vmax.xlane.f32.xlu2 %v2168_v5 }
 0xb35   :  { %2172 = vmax.xlane.f32.xlu2 %v2171_v14 }
 0xb45   :  { %v2164_v8 = vpop.xlane.xlu2 %2163 }
 0xb46   :  { %v2184_v31 = vsub.f32 %v1880_v58, %v2164_v8 }
 0xb48   :  { %v2193_v11 = vmul.f32 1.442695, %v2184_v31 }
 0xb4d   :  { %v2161_v7 = vpop.xlane.xlu0 %2160 }
 0xb4e   :  { %v2183_v9 = vsub.f32 %v1834_v55, %v2161_v7 }
 0xb50   :  { %v2191_v10 = vmul.f32 1.442695, %v2183_v9 }
 0xb52   :  { %3440 = vpow2.f32 %v2191_v10 }
 0xb53   :  { %3442 = vpow2.f32 %v2193_v11 }
 0xb58   :  { %v4543_v16 = vpop.eup %3440 }
 0xb59   :  { %v3443_v17 = vpop.eup %3442  ;;  %v2207_v18 = vsel %vm813_vm2, %v4543_v16, 0.0 }
 0xb5a   :  { %2208 = vadd.xlane.f32.xlu1 %v2207_v18  ;;  %v2210_v19 = vsel %vm813_vm2, %v3443_v17, 0.0 }
 0xb5b   :  { %2211 = vadd.xlane.f32.xlu0 %v2210_v19 }
 0xb61   :  { %v2064_v20 = vpop.f32.mrf.mxu2 }
 0xb62   :  { %v2174_v22 = vsel %vm813_vm2, %v2064_v20, -inf }
 0xb63   :  { %2175 = vmax.xlane.f32.xlu0 %v2174_v22 }
 0xb76   :  { %v2167_v28 = vpop.xlane.xlu1 %2166 }
 0xb77   :  { %2331 = vrot.lane.b32.xlu0 %v4489_v51, %s3519_s1  ;;  %v2185_v29 = vsub.f32 %v1926_v2, %v2167_v28 }
 0xb79   :  { %v2110_v24 = vpop.f32.mrf.mxu3  ;;  %v2195_v12 = vmul.f32 1.442695, %v2185_v29 }
 0xb7a   :  { %v2177_v25 = vsel %vm813_vm2, %v2110_v24, -inf }
 0xb7b   :  { %2178 = vmax.xlane.f32.xlu1 %v2177_v25  ;;  %3444 = vpow2.f32 %v2195_v12  ;;  %v3284_v25 = vld [vmem:[%s4711_s7 + $0x10] sm:$0xf] }
 0xb81   :  { %v3445_v32 = vpop.eup %3444 }
 0xb82   :  { %v2213_v34 = vsel %vm813_vm2, %v3445_v32, 0.0 }
 0xb8b   :  { %v2156_v26 = vpop.f32.mrf.mxu0 }
 0xb8c   :  { %v2180_v27 = vsel %vm813_vm2, %v2156_v26, -inf }
 0xb8d   :  { %2181 = vmax.xlane.f32.xlu2 %v2180_v27 }
 0xb94   :  { %2368 = vrot.lane.b32.xlu1 %v4499_v53, %s3519_s1 }
 0xb9c   :  { %2442 = vrot.lane.b32.xlu1 %v2441_v62, %s3519_s1 }
 0xba0   :  { %v2170_v30 = vpop.xlane.xlu2 %2169 }
 0xba1   :  { %v2186_v15 = vsub.f32 %v1972_v4, %v2170_v30 }
 0xba3   :  { %v2197_v33 = vmul.f32 1.442695, %v2186_v15 }
 0xba5   :  { %2257 = vrot.lane.b32.xlu2 %v4473_v49, %s3519_s1  ;;  %3446 = vpow2.f32 %v2197_v33 }
 0xba8   :  { %v2173_v35 = vpop.xlane.xlu2 %2172 }
 0xba9   :  { %v2187_v36 = vsub.f32 %v2018_v13, %v2173_v35 }
 0xbab   :  { %v3447_v37 = vpop.eup %3446  ;;  %v2199_v38 = vmul.f32 1.442695, %v2187_v36 }
 0xbac   :  { %v2216_v21 = vsel %vm813_vm2, %v3447_v37, 0.0 }
 0xbad   :  { %3448 = vpow2.f32 %v2199_v38 }
 0xbb3   :  { %v3449_v40 = vpop.eup %3448 }
 0xbb4   :  { %v2219_v41 = vsel %vm813_vm2, %v3449_v40, 0.0 }
 0xbb5   :  { %2220 = vadd.xlane.f32.xlu0 %v2219_v41 }
 0xbc6   :  { %2214 = vadd.xlane.f32.xlu1 %v2213_v34 }
 0xbc9   :  { %2479 = vrot.lane.b32.xlu0 %v4526_v63, %s3519_s1 }
 0xbcd   :  { %v2209_v51 = vpop.xlane.xlu1 %2208 }
 0xbce   :  { %2217 = vadd.xlane.f32.xlu1 %v2216_v21  ;;  %v2212_v39 = vpop.xlane.xlu0 %2211 }
 0xbcf   :  { %3450 = vrcp.f32 %v2212_v39 }
 0xbd5   :  { %v3451_v42 = vpop.eup %3450 }
 0xbd6   :  { %v2240_v43 = vmul.f32 %v3451_v42, %v3443_v17  ;;  %v2176_v45 = vpop.xlane.xlu0 %2175 }
 0xbd7   :  { %v2188_v46 = vsub.f32 %v2064_v20, %v2176_v45 }
 0xbd8   :  { %3271 = vmatmul.msk.f32.vlgmr.msra.gmra.mxu2 %vm914_vm4, %v2240_v43 }
 0xbd9   :  { %v2201_v47 = vmul.f32 1.442695, %v2188_v46 }
 0xbdb   :  { %3452 = vpow2.f32 %v2201_v47  ;;  %v3285_v47 = vld [vmem:[%s4711_s7 + $0x14] sm:$0xf] }
 0xbdc   :  { %3454 = vrcp.f32 %v2209_v51 }
 0xbe1   :  { %v3453_v48 = vpop.eup %3452 }
 0xbe2   :  { %v2222_v49 = vsel %vm813_vm2, %v3453_v48, 0.0  ;;  %v3455_v60 = vpop.eup %3454 }
 0xbe3   :  { %2223 = vadd.xlane.f32.xlu2 %v2222_v49 }
 0xbe7   :  { %2405 = vrot.lane.b32.xlu1 %v4509_v56, %s3519_s1  ;;  %v2239_v56 = vmul.f32 %v3455_v60, %v4543_v16 }
 0xbe9   :  { %v2332_v50 = vpop.permute.xlu0 %2331 }
 0xbea   :  { %3272 = vmatpush.msk.msra.mxu3 %vm918_vm3, %v2332_v50 }
 0xbee   :  { %v2179_v52 = vpop.xlane.xlu1 %2178 }
 0xbef   :  { %v2189_v53 = vsub.f32 %v2110_v24, %v2179_v52 }
 0xbf1   :  { %v2203_v57 = vmul.f32 1.442695, %v2189_v53 }
 0xc00   :  { %v2182_v54 = vpop.xlane.xlu2 %2181 }
 0xc01   :  { %v2190_v55 = vsub.f32 %v2156_v26, %v2182_v54  ;;  %v2668_v26 = vsel %vm1323_vm5, %v3284_v25, 0 }
 0xc03   :  { %v2205_v58 = vmul.f32 1.442695, %v2190_v55 }
 0xc05   :  { %3456 = vpow2.f32 %v2205_v58 }
 0xc06   :  { %v2369_v61 = vpop.permute.xlu1 %2368  ;;  %3458 = vpow2.f32 %v2203_v57 }
 0xc07   :  { %3274 = vmatpush.msk.msrb.mxu0 %vm918_vm3, %v2369_v61 }
 0xc08   :  { %v2258_v62 = vpop.permute.xlu2 %2257 }
 0xc09   :  { %3268 = vmatpush.msk.msrb.mxu1 %vm918_vm3, %v2258_v62 }
 0xc0a   :  { %3269 = vmatmul.msk.f32.vlgmr.msrb.gmra.mxu1 %vm914_vm4, %v2239_v56 }
 0xc0b   :  { %v3457_v63 = vpop.eup %3456 }
 0xc0c   :  { %v2228_v0 = vsel %vm813_vm2, %v3457_v63, 0.0  ;;  %v3459_v6 = vpop.eup %3458 }
 0xc0d   :  { %2229 = vadd.xlane.f32.xlu2 %v2228_v0  ;;  %v2225_v2 = vsel %vm813_vm2, %v3459_v6, 0.0 }
 0xc0e   :  { %v2443_v23 = vpop.permute.xlu1 %2442 }
 0xc0f   :  { %3278 = vmatpush.msk.msrb.mxu2 %vm918_vm3, %v2443_v23 }
 0xc11   :  { %2226 = vadd.xlane.f32.xlu1 %v2225_v2 }
 0xc25   :  { %2516 = vrot.lane.b32.xlu2 %v2515_v3, %s3519_s1  ;;  %s3520_s1 = smov [#allocation2]  }
 0xc26   :  { %s3078_s2 = sshll.u32 %s3520_s1, 4  ;;  %s3079_s2 = int_to_ptr.vmem [resolvable:$true] %s3078_s2 }
 0xc28   :  { %v2221_v10 = vpop.xlane.xlu0 %2220 }
 0xc39   :  { %v2215_v4 = vpop.xlane.xlu1 %2214 }
 0xc3a   :  { %3460 = vrcp.f32 %v2215_v4 }
 0xc3b   :  { %v2480_v17 = vpop.permute.xlu0 %2479 }
 0xc3c   :  { %3280 = vmatpush.msk.msrb.mxu3 %vm918_vm3, %v2480_v17 }
 0xc40   :  { %v3461_v5 = vpop.eup %3460 }
 0xc41   :  { %v2241_v7 = vmul.f32 %v3461_v5, %v3445_v32  ;;  %v2218_v8 = vpop.xlane.xlu1 %2217 }
 0xc42   :  { %3462 = vrcp.f32 %v2218_v8 }
 0xc43   :  { %3273 = vmatmul.msk.f32.vlgmr.msra.gmra.mxu3 %vm914_vm4, %v2241_v7  ;;  %3464 = vrcp.f32 %v2221_v10  ;;  %v3286_v10 = vld [vmem:[%s4711_s7 + $0x18] sm:$0xf] }
 0xc48   :  { %v3463_v9 = vpop.eup %3462 }
 0xc49   :  { %v2242_v31 = vmul.f32 %v3463_v9, %v3447_v37  ;;  %v3465_v11 = vpop.eup %3464 }
 0xc4a   :  { %v2243_v13 = vmul.f32 %v3465_v11, %v3449_v40  ;;  %v2718_v11 = vsel %vm1323_vm5, %v3286_v10, 0 }
 0xc4b   :  { %3275 = vmatmul.msk.f32.vlgmr.msrb.gmra.mxu0 %vm914_vm4, %v2242_v31  ;;  %2727 = vmatpush.bf16.msra.mxu3 %v2718_v11 }
 0xc56   :  { %v2224_v16 = vpop.xlane.xlu2 %2223 }
 0xc57   :  { %3466 = vrcp.f32 %v2224_v16 }
 0xc59   :  { %v2406_v14 = vpop.permute.xlu1 %2405 }
 0xc5a   :  { %3276 = vmatpush.msk.msra.mxu1 %vm918_vm3, %v2406_v14 }
 0xc5b   :  { %3277 = vmatmul.msk.f32.vlgmr.msra.gmra.mxu1 %vm914_vm4, %v2243_v13  ;;  %v2318_v18 = vpop.f32.mrf.mxu2 }
 0xc5c   :  { %v2555_v19 = vrot.slane %v2318_v18, 1  ;;  %v2556_v20 = vrot.slane %v2318_v18, 2  ;;  %2593 = vst [vmem:[#allocation1 + $0x5] ss:$9 sm:$0xff] %v2318_v18  ;;  %2677 = vmatpush.bf16.msrb.mxu1 %v2668_v26  ;;  %v2557_v38 = vrot.slane %v2318_v18, 3  ;;  %v2558_v21 = vrot.slane %v2318_v18, 4 }
 0xc5d   :  { %v3467_v22 = vpop.eup %3466 }
 0xc5e   :  { %2595 = vst [vmem:[#allocation1 + $0x6] ss:$9 sm:$0xff] %v2555_v19  ;;  %v2244_v24 = vmul.f32 %v3467_v22, %v3453_v48  ;;  %v2693_v48 = vsel %vm1323_vm5, %v3285_v47, 0  ;;  %v3287_v19 = vld [vmem:[%s4711_s7 + $0x1c] sm:$0xf]  ;;  %s3080_s7 = sshll.u32 %s4717_s13, 4  ;;  %s3081_s7 = int_to_ptr.hbm [resolvable:$true] %s3080_s7 }
 0xc5f   :  { %2597 = vst [vmem:[#allocation1 + $0x7] ss:$9 sm:$0xff] %v2556_v20  ;;  %2702 = vmatpush.bf16.msra.mxu2 %v2693_v48 }
 0xc60   :  { %3279 = vmatmul.msk.f32.vlgmr.msrb.gmra.mxu2 %vm914_vm4, %v2244_v24  ;;  %v2743_v24 = vsel %vm1323_vm5, %v3287_v19, 0  ;;  %v3362_v19 = vld [vmem:[%s4712_s8 + $0x18] sm:$0xff] }
 0xc61   :  { %2864 = vmatpush.bf16.msra.mxu1 %v3362_v19 }
 0xc80   :  { %v2230_v27 = vpop.xlane.xlu2 %2229 }
 0xc81   :  { %3468 = vrcp.f32 %v2230_v27 }
 0xc84   :  { %v2227_v28 = vpop.xlane.xlu1 %2226 }
 0xc85   :  { %3470 = vrcp.f32 %v2227_v28 }
 0xc87   :  { %v3469_v29 = vpop.eup %3468  ;;  %v2281_v12 = vpop.f32.mrf.mxu1 }
 0xc88   :  { %v2246_v30 = vmul.f32 %v3469_v29, %v3457_v63  ;;  %v2551_v15 = vrot.slane %v2281_v12, 1  ;;  %v2552_v32 = vrot.slane %v2281_v12, 2  ;;  %v2553_v33 = vrot.slane %v2281_v12, 3  ;;  %2583 = vst [vmem:[#allocation1] ss:$9 sm:$0xff] %v2281_v12  ;;  %v2517_v34 = vpop.permute.xlu2 %2516 }
 0xc89   :  { %v2554_v35 = vrot.slane %v2281_v12, 4  ;;  %3282 = vmatpush.msk.msra.mxu0 %vm918_vm3, %v2517_v34 }
 0xc8a   :  { %2585 = vst [vmem:[#allocation1 + $0x1] ss:$9 sm:$0xff] %v2551_v15  ;;  %3283 = vmatmul.msk.f32.vlgmr.msra.gmra.mxu0 %vm914_vm4, %v2246_v30 }
 0xc8b   :  { %v3471_v36 = vpop.eup %3470  ;;  %2587 = vst [vmem:[#allocation1 + $0x2] ss:$9 sm:$0xff] %v2552_v32  ;;  %2752 = vmatpush.bf16.msrb.mxu0 %v2743_v24 }
 0xc8c   :  { %2589 = vst [vmem:[#allocation1 + $0x3] ss:$9 sm:$0xff] %v2553_v33  ;;  %v2245_v37 = vmul.f32 %v3471_v36, %v3459_v6 }
 0xc8d   :  { %2591 = vst [vmem:[#allocation1 + $0x4] ss:$9 sm:$0xff] %v2554_v35 }
 0xc8e   :  { %3281 = vmatmul.msk.f32.vlgmr.msrb.gmra.mxu3 %vm914_vm4, %v2245_v37 }
 0xc94   :  { %v2598_v39 = vld [vmem:[#allocation1] sm:$0xff] }
 0xc95   :  { %2599 = vst [vmem:[#allocation1] ss:$9 sm:$0xff] %v2557_v38  ;;  %v2646_v40 = vpack.c.bf16 %v2598_v39, %v2598_v39 }
 0xc96   :  { %2600 = vst [vmem:[#allocation1 + $0x1] ss:$9 sm:$0xff] %v2558_v21 }
 0xc97   :  { %v2661_v43 = vunpack.c.l.b16 %v2646_v40 }
 0xc9d   :  { %v2601_v41 = vld [vmem:[#allocation1] sm:$0xff] }
 0xc9e   :  { %v2647_v42 = vpack.c.bf16 %v2601_v41, %v2601_v41 }
 0xca0   :  { %v2662_v45 = vunpack.c.l.b16 %v2647_v42 }
 0xca2   :  { %v2663_v46 = vpack.c.b16 %v2662_v45, %v2661_v43 }
 0xca4   :  { %3288 = vmatmul.msk.bf16.vlgmr.msrb.gmra.mxu1 %vm466_vm15, %v2663_v46 }
 0xcc6   :  { %v2355_v49 = vpop.f32.mrf.mxu3 }
 0xcc7   :  { %v2559_v50 = vrot.slane %v2355_v49, 1  ;;  %v2560_v51 = vrot.slane %v2355_v49, 2  ;;  %v2561_v52 = vrot.slane %v2355_v49, 3  ;;  %2602 = vst [vmem:[#allocation1] ss:$9 sm:$0xff] %v2355_v49  ;;  %v2562_v53 = vrot.slane %v2355_v49, 4 }
 0xcc8   :  { %v2392_v54 = vpop.f32.mrf.mxu0 }
 0xcc9   :  { %2603 = vst [vmem:[#allocation1 + $0x1] ss:$9 sm:$0xff] %v2559_v50  ;;  %v2563_v55 = vrot.slane %v2392_v54, 1  ;;  %v2564_v57 = vrot.slane %v2392_v54, 2  ;;  %v2565_v58 = vrot.slane %v2392_v54, 3  ;;  %v2566_v60 = vrot.slane %v2392_v54, 4 }
 0xcca   :  { %2604 = vst [vmem:[#allocation1 + $0x2] ss:$9 sm:$0xff] %v2560_v51  ;;  %v4611_v50 = vld [vmem:[%s4714_s10 + $0x2] sm:$0x3] }
 0xccb   :  { %2605 = vst [vmem:[#allocation1 + $0x3] ss:$9 sm:$0xff] %v2561_v52 }
 0xccc   :  { %2606 = vst [vmem:[#allocation1 + $0x4] ss:$9 sm:$0xff] %v2562_v53 }
 0xccd   :  { %2607 = vst [vmem:[#allocation1 + $0x5] ss:$9 sm:$0xff] %v2392_v54 }
 0xcce   :  { %2608 = vst [vmem:[#allocation1 + $0x6] ss:$9 sm:$0xff] %v2563_v55 }
 0xccf   :  { %2609 = vst [vmem:[#allocation1 + $0x7] ss:$9 sm:$0xff] %v2564_v57 }
 0xcd6   :  { %v2610_v61 = vld [vmem:[#allocation1] sm:$0xff] }
 0xcd7   :  { %2611 = vst [vmem:[#allocation1] ss:$9 sm:$0xff] %v2565_v58  ;;  %v2648_v0 = vpack.c.bf16 %v2610_v61, %v2610_v61 }
 0xcd8   :  { %2612 = vst [vmem:[#allocation1 + $0x1] ss:$9 sm:$0xff] %v2566_v60  ;;  %v2429_v56 = vpop.f32.mrf.mxu1  ;;  %v2775_v60 = vperm.slane %v4611_v50, 0 }
 0xcd9   :  { %v2567_v62 = vrot.slane %v2429_v56, 1  ;;  %v2568_v63 = vrot.slane %v2429_v56, 2  ;;  %v2569_v6 = vrot.slane %v2429_v56, 3  ;;  %v2570_v2 = vrot.slane %v2429_v56, 4 }
 0xcda   :  { %v2686_v4 = vunpack.c.l.b16 %v2648_v0 }
 0xcdf   :  { %v2613_v23 = vld [vmem:[#allocation1] sm:$0xff] }
 0xce0   :  { %v2649_v3 = vpack.c.bf16 %v2613_v23, %v2613_v23  ;;  %2614 = vst [vmem:[#allocation1] ss:$9 sm:$0xff] %v2429_v56 }
 0xce1   :  { %2615 = vst [vmem:[#allocation1 + $0x1] ss:$9 sm:$0xff] %v2567_v62 }
 0xce2   :  { %v2687_v5 = vunpack.c.l.b16 %v2649_v3  ;;  %2616 = vst [vmem:[#allocation1 + $0x2] ss:$9 sm:$0xff] %v2568_v63 }
 0xce3   :  { %2617 = vst [vmem:[#allocation1 + $0x3] ss:$9 sm:$0xff] %v2569_v6  ;;  %v2466_v8 = vpop.f32.mrf.mxu2 }
 0xce4   :  { %v2688_v7 = vpack.c.b16 %v2687_v5, %v2686_v4  ;;  %2618 = vst [vmem:[#allocation1 + $0x4] ss:$9 sm:$0xff] %v2570_v2  ;;  %v2571_v9 = vrot.slane %v2466_v8, 1  ;;  %v2572_v31 = vrot.slane %v2466_v8, 2  ;;  %v2573_v13 = vrot.slane %v2466_v8, 3 }
 0xce5   :  { %2619 = vst [vmem:[#allocation1 + $0x5] ss:$9 sm:$0xff] %v2466_v8  ;;  %v2574_v14 = vrot.slane %v2466_v8, 4 }
 0xce6   :  { %3289 = vmatmul.msk.bf16.vlgmr.msra.gmra.mxu2 %vm466_vm15, %v2688_v7  ;;  %2620 = vst [vmem:[#allocation1 + $0x6] ss:$9 sm:$0xff] %v2571_v9 }
 0xce7   :  { %2621 = vst [vmem:[#allocation1 + $0x7] ss:$9 sm:$0xff] %v2572_v31 }
 0xcee   :  { %v2622_v16 = vld [vmem:[#allocation1] sm:$0xff] }
 0xcef   :  { %2623 = vst [vmem:[#allocation1] ss:$9 sm:$0xff] %v2573_v13  ;;  %v2650_v18 = vpack.c.bf16 %v2622_v16, %v2622_v16 }
 0xcf0   :  { %2624 = vst [vmem:[#allocation1 + $0x1] ss:$9 sm:$0xff] %v2574_v14 }
 0xcf1   :  { %v2711_v27 = vunpack.c.l.b16 %v2650_v18 }
 0xcf7   :  { %v2625_v22 = vld [vmem:[#allocation1] sm:$0xff] }
 0xcf8   :  { %v2651_v26 = vpack.c.bf16 %v2625_v22, %v2625_v22  ;;  %v3361_v22 = vld [vmem:[%s4712_s8 + $0x10] sm:$0xff] }
 0xcf9   :  { %2865 = vmatpush.bf16.msra.mxu1 %v3361_v22 }
 0xcfa   :  { %v2712_v28 = vunpack.c.l.b16 %v2651_v26 }
 0xcfc   :  { %v2713_v29 = vpack.c.b16 %v2712_v28, %v2711_v27 }
 0xcfe   :  { %3290 = vmatmul.msk.bf16.vlgmr.msra.gmra.mxu3 %vm466_vm15, %v2713_v29 }
 0xd07   :  { %v2540_v17 = vpop.f32.mrf.mxu0 }
 0xd08   :  { %v2579_v20 = vrot.slane %v2540_v17, 1  ;;  %v2580_v25 = vrot.slane %v2540_v17, 2  ;;  %2631 = vst [vmem:[#allocation1 + $0x5] ss:$9 sm:$0xff] %v2540_v17  ;;  %v2581_v34 = vrot.slane %v2540_v17, 3  ;;  %v2582_v35 = vrot.slane %v2540_v17, 4 }
 0xd0a   :  { %2632 = vst [vmem:[#allocation1 + $0x6] ss:$9 sm:$0xff] %v2579_v20 }
 0xd0b   :  { %2633 = vst [vmem:[#allocation1 + $0x7] ss:$9 sm:$0xff] %v2580_v25 }
 0xd11   :  { %v2503_v12 = vpop.f32.mrf.mxu3 }
 0xd12   :  { %v2575_v30 = vrot.slane %v2503_v12, 1  ;;  %v2576_v15 = vrot.slane %v2503_v12, 2  ;;  %v2577_v32 = vrot.slane %v2503_v12, 3  ;;  %2626 = vst [vmem:[#allocation1] ss:$9 sm:$0xff] %v2503_v12  ;;  %v2578_v33 = vrot.slane %v2503_v12, 4 }
 0xd14   :  { %2627 = vst [vmem:[#allocation1 + $0x1] ss:$9 sm:$0xff] %v2575_v30 }
 0xd15   :  { %2628 = vst [vmem:[#allocation1 + $0x2] ss:$9 sm:$0xff] %v2576_v15 }
 0xd16   :  { %2629 = vst [vmem:[#allocation1 + $0x3] ss:$9 sm:$0xff] %v2577_v32 }
 0xd17   :  { %2630 = vst [vmem:[#allocation1 + $0x4] ss:$9 sm:$0xff] %v2578_v33 }
 0xd1e   :  { %v2634_v36 = vld [vmem:[#allocation1] sm:$0xff] }
 0xd1f   :  { %2635 = vst [vmem:[#allocation1] ss:$9 sm:$0xff] %v2581_v34  ;;  %v2652_v37 = vpack.c.bf16 %v2634_v36, %v2634_v36 }
 0xd20   :  { %2636 = vst [vmem:[#allocation1 + $0x1] ss:$9 sm:$0xff] %v2582_v35 }
 0xd21   :  { %v2736_v39 = vunpack.c.l.b16 %v2652_v37  ;;  %v2679_v43 = vpop.f32.mrf.mxu1 }
 0xd22   :  { %v2759_v47 = vsel %vm217_vm0, %v2679_v43, 0.0 }
 0xd27   :  { %v2637_v38 = vld [vmem:[#allocation1] sm:$0xff] }
 0xd28   :  { %v2653_v21 = vpack.c.bf16 %v2637_v38, %v2637_v38 }
 0xd29   :  { %v2681_v55 = vpop.f32.mrf.mxu1 }
 0xd2a   :  { %v2737_v40 = vunpack.c.l.b16 %v2653_v21  ;;  %v2766_v62 = vsel %vm221_vm1, %v2681_v55, 0.0 }
 0xd2c   :  { %v2738_v41 = vpack.c.b16 %v2737_v40, %v2736_v39 }
 0xd2e   :  { %3291 = vmatmul.msk.bf16.vlgmr.msrb.gmra.mxu0 %vm466_vm15, %v2738_v41 }
 0xd69   :  { %v2704_v42 = vpop.f32.mrf.mxu2 }
 0xd6a   :  { %v2760_v46 = vsel %vm217_vm0, %v2704_v42, 0.0  ;;  %v3487_v42 = vld [vmem:[%s4708_s4 + $0x4] sm:$0xf] }
 0xd6b   :  { %v2761_v49 = vadd.f32 %v2760_v46, %v2759_v47  ;;  %v2826_v43 = vperm.slane %v3487_v42, 2 }
 0xd71   :  { %v2706_v51 = vpop.f32.mrf.mxu2 }
 0xd72   :  { %v2767_v61 = vsel %vm221_vm1, %v2706_v51, 0.0 }
 0xd73   :  { %v2768_v0 = vadd.f32 %v2767_v61, %v2766_v62 }
 0xd81   :  { %v2729_v45 = vpop.f32.mrf.mxu3 }
 0xd82   :  { %v2762_v48 = vsel %vm217_vm0, %v2729_v45, 0.0 }
 0xd83   :  { %v2763_v52 = vadd.f32 %v2762_v48, %v2761_v49 }
 0xd89   :  { %v2731_v57 = vpop.f32.mrf.mxu3 }
 0xd8a   :  { %v2769_v63 = vsel %vm221_vm1, %v2731_v57, 0.0 }
 0xd8b   :  { %v2770_v23 = vadd.f32 %v2769_v63, %v2768_v0 }
 0xdab   :  { %v2754_v53 = vpop.f32.mrf.mxu0 }
 0xdac   :  { %v2764_v54 = vsel %vm217_vm0, %v2754_v53, 0.0 }
 0xdad   :  { %v2765_v58 = vadd.f32 %v2764_v54, %v2763_v52  ;;  %v2829_v52 = vperm.slane %v3487_v42, 3 }
 0xdaf   :  { %v2773_v56 = vadd.f32 %v2765_v58, %v4176_v59  ;;  %v3379_v58 = vld [vmem:[%s4715_s11 + $0x1] ss:$0 sm:$0xff] }
 0xdb1   :  { %v4619_v6 = vadd.f32 %v2775_v60, %v2773_v56 }
 0xdb3   :  { %v2756_v2 = vpop.f32.mrf.mxu0  ;;  %v2778_v3 = vsel %vm217_vm0, %v4619_v6, 0.0  ;;  %v2786_v4 = vmul.f32 %v4619_v6, %v4619_v6 }
 0xdb4   :  { %v2771_v5 = vsel %vm221_vm1, %v2756_v2, 0.0  ;;  %2779 = vadd.xlane.f32.xlu0 %v2778_v3  ;;  %v3366_v2 = vld [vmem:[%s4713_s9 + $0x38] sm:$0xff] }
 0xdb5   :  { %v2772_v7 = vadd.f32 %v2771_v5, %v2770_v23  ;;  %v2788_v59 = vsel %vm217_vm0, %v2786_v4, 0.0  ;;  %2956 = vmatpush.bf16.msrb.mxu2 %v3366_v2  ;;  %v3365_v5 = vld [vmem:[%s4713_s9 + $0x30] sm:$0xff] }
 0xdb6   :  { %2789 = vadd.xlane.f32.xlu1 %v2788_v59  ;;  %v3364_v59 = vld [vmem:[%s4713_s9 + $0x28] sm:$0xff] }
 0xdb7   :  { %v2774_v8 = vadd.f32 %v2772_v7, %v4184_v1 }
 0xdb9   :  { %v4628_v9 = vadd.f32 %v2775_v60, %v2774_v8  ;;  %2957 = vmatpush.bf16.msrb.mxu2 %v3365_v5  ;;  %v3380_v5 = vld [vmem:[%s4707_s3 + $0x2] ss:$0 sm:$0xff] }
 0xdbb   :  { %v2781_v31 = vsel %vm221_vm1, %v4628_v9, 0.0  ;;  %v2787_v10 = vmul.f32 %v4628_v9, %v4628_v9 }
 0xdbc   :  { %2782 = vadd.xlane.f32.xlu2 %v2781_v31  ;;  %v3363_v31 = vld [vmem:[%s4713_s9 + $0x20] sm:$0xff] }
 0xdbd   :  { %v2791_v11 = vsel %vm221_vm1, %v2787_v10, 0.0  ;;  %2958 = vmatpush.bf16.msrb.mxu2 %v3364_v59 }
 0xdbe   :  { %2792 = vadd.xlane.f32.xlu1 %v2791_v11 }
 0xdc1   :  { %2959 = vmatpush.bf16.msrb.mxu2 %v3363_v31 }
 0xe27   :  { %v2780_v13 = vpop.xlane.xlu0 %2779 }
 0xe28   :  { %v2784_v14 = vmul.f32 %v2780_v13, %v3661_v44 }
 0xe29   :  { %v2790_v16 = vpop.xlane.xlu1 %2789 }
 0xe2a   :  { %v2796_v17 = vmul.f32 %v2784_v14, %v2784_v14  ;;  %v2794_v18 = vmul.f32 %v2790_v16, %v3661_v44  ;;  %v2800_v40 = vsub.f32 %v4619_v6, %v2784_v14 }
 0xe2c   :  { %v2798_v1 = vsub.f32 %v2794_v18, %v2796_v17 }
 0xe2e   :  { %v2802_v20 = vadd.f32 1e-05, %v2798_v1 }
 0xe2f   :  { %v2783_v24 = vpop.xlane.xlu2 %2782 }
 0xe30   :  { %3472 = vrsqrt.f32 %v2802_v20  ;;  %v2785_v25 = vmul.f32 %v2783_v24, %v3661_v44  ;;  %vm2810_vm2 = vweird.f32 %v2802_v20 }
 0xe31   :  { %v2793_v26 = vpop.xlane.xlu1 %2792 }
 0xe32   :  { %v2797_v27 = vmul.f32 %v2785_v25, %v2785_v25  ;;  %v2795_v28 = vmul.f32 %v2793_v26, %v3661_v44  ;;  %v2801_v47 = vsub.f32 %v4628_v9, %v2785_v25 }
 0xe34   :  { %v2799_v29 = vsub.f32 %v2795_v28, %v2797_v27 }
 0xe36   :  { %v3473_v12 = vpop.eup %3472  ;;  %v2803_v30 = vadd.f32 1e-05, %v2799_v29 }
 0xe37   :  { %v2805_v15 = vmul.f32 %v3473_v12, %v2802_v20  ;;  %vm2811_vm15 = vweird.f32 %v3473_v12 }
 0xe38   :  { %3474 = vrsqrt.f32 %v2803_v30  ;;  %vm2812_vm3 = vmor %vm2810_vm2, %vm2811_vm15  ;;  %vm2820_vm5 = vweird.f32 %v2803_v30 }
 0xe39   :  { %v2806_v32 = vmul.f32 %v3473_v12, %v2805_v15 }
 0xe3b   :  { %v2807_v33 = vmul.f32 0.5, %v2806_v32 }
 0xe3d   :  { %v2808_v34 = vsub.f32 1.5, %v2807_v33 }
 0xe3e   :  { %v3475_v35 = vpop.eup %3474 }
 0xe3f   :  { %v2809_v36 = vmul.f32 %v3473_v12, %v2808_v34  ;;  %v2815_v37 = vmul.f32 %v3475_v35, %v2803_v30  ;;  %vm2821_vm4 = vweird.f32 %v3475_v35 }
 0xe40   :  { %vm2822_vm9 = vmor %vm2820_vm5, %vm2821_vm4 }
 0xe41   :  { %v2816_v38 = vmul.f32 %v3475_v35, %v2815_v37  ;;  %v2813_v21 = vsel %vm2812_vm3, %v3473_v12, %v2809_v36  ;;  %v2924_v36 = vperm.slane %v4611_v50, 1 }
 0xe42   :  { %v2824_v45 = vmul.f32 %v2813_v21, %v2800_v40 }
 0xe43   :  { %v2817_v39 = vmul.f32 0.5, %v2816_v38 }
 0xe44   :  { %v2827_v49 = vmul.f32 %v2826_v43, %v2824_v45 }
 0xe45   :  { %v2818_v41 = vsub.f32 1.5, %v2817_v39 }
 0xe46   :  { %v2830_v54 = vadd.f32 %v2829_v52, %v2827_v49 }
 0xe47   :  { %v2819_v46 = vmul.f32 %v3475_v35, %v2818_v41 }
 0xe49   :  { %v2823_v48 = vsel %vm2822_vm9, %v3475_v35, %v2819_v46 }
 0xe4a   :  { %v2825_v51 = vmul.f32 %v2823_v48, %v2801_v47 }
 0xe4c   :  { %v2828_v53 = vmul.f32 %v2826_v43, %v2825_v51 }
 0xe4e   :  { %v2831_v55 = vadd.f32 %v2829_v52, %v2828_v53 }
 0xe50   :  { %v2832_v57 = vpack.c.bf16 %v2831_v55, %v2830_v54 }
 0xe52   :  { %3305 = vmatmul.msk.bf16.vlgmr.msra.gmra.mxu1 %vm217_vm0, %v2832_v57 }
 0xecf   :  { %v2867_v60 = vpop.f32.mrf.mxu1 }
 0xed0   :  { %v2868_v61 = vadd.f32 %v3379_v58, %v2867_v60 }
 0xed2   :  { %v3306_v56 = vmul.f32 -1.702, %v2868_v61 }
 0xed4   :  { %v2876_v62 = vmul.f32 1.442695, %v3306_v56 }
 0xed6   :  { %3476 = vpow2.f32 %v2876_v62 }
 0xed7   :  { %v2869_v63 = vpop.f32.mrf.mxu1 }
 0xed8   :  { %v2870_v0 = vadd.f32 %v3379_v58, %v2869_v63 }
 0xeda   :  { %v3307_v23 = vmul.f32 -1.702, %v2870_v0 }
 0xedc   :  { %v3477_v3 = vpop.eup %3476  ;;  %v2878_v4 = vmul.f32 1.442695, %v3307_v23 }
 0xedd   :  { %v2880_v7 = vadd.f32 1.0, %v3477_v3 }
 0xede   :  { %3478 = vpow2.f32 %v2878_v4 }
 0xedf   :  { %3480 = vrcp.f32 %v2880_v7  ;;  %v2893_v19 = vand.u32 2147483648, %v2880_v7  ;;  %vm2887_vm10 = vweird.f32 %v2880_v7  ;;  %v2891_v20 = vand.u32 2147483647, %v2880_v7 }
 0xee1   :  { %v2894_v28 = vor.u32 1.1754944e-38, %v2893_v19  ;;  %vm2892_vm14 = vcmp.eq.f32.partialorder %v2891_v20, 8.507059e+37 }
 0xee4   :  { %v3479_v8 = vpop.eup %3478 }
 0xee5   :  { %v3481_v10 = vpop.eup %3480  ;;  %v2881_v11 = vadd.f32 1.0, %v3479_v8 }
 0xee6   :  { %v2883_v13 = vmul.f32 %v3481_v10, %v2880_v7  ;;  %vm2888_vm0 = vweird.f32 %v3481_v10 }
 0xee7   :  { %3482 = vrcp.f32 %v2881_v11  ;;  %vm2889_vm12 = vmor %vm2887_vm10, %vm2888_vm0  ;;  %v2908_v24 = vand.u32 2147483648, %v2881_v11  ;;  %v2906_v27 = vand.u32 2147483647, %v2881_v11  ;;  %vm2902_vm6 = vweird.f32 %v2881_v11 }
 0xee8   :  { %v2884_v14 = vsub.f32 1.0, %v2883_v13 }
 0xee9   :  { %v2909_v30 = vor.u32 1.1754944e-38, %v2908_v24  ;;  %vm2907_vm8 = vcmp.eq.f32.partialorder %v2906_v27, 8.507059e+37 }
 0xeea   :  { %v2885_v16 = vmul.f32 %v3481_v10, %v2884_v14 }
 0xeec   :  { %v2886_v18 = vadd.f32 %v3481_v10, %v2885_v16 }
 0xeed   :  { %v3483_v17 = vpop.eup %3482 }
 0xeee   :  { %v2898_v1 = vmul.f32 %v3483_v17, %v2881_v11  ;;  %v2890_v25 = vsel %vm2889_vm12, %v3481_v10, %v2886_v18  ;;  %vm2903_vm13 = vweird.f32 %v3483_v17  ;;  %v3053_v10 = vrot.slane %v3380_v5, 1 }
 0xeef   :  { %v2895_v12 = vsel %vm2892_vm14, %v2894_v28, %v2890_v25  ;;  %vm2904_vm7 = vmor %vm2902_vm6, %vm2903_vm13 }
 0xef0   :  { %v2899_v22 = vsub.f32 1.0, %v2898_v1  ;;  %v2912_v33 = vmul.f32 %v2895_v12, %v2868_v61 }
 0xef2   :  { %v2900_v26 = vmul.f32 %v3483_v17, %v2899_v22 }
 0xef4   :  { %v2901_v29 = vadd.f32 %v3483_v17, %v2900_v26 }
 0xef6   :  { %v2905_v15 = vsel %vm2904_vm7, %v3483_v17, %v2901_v29 }
 0xef7   :  { %v2910_v32 = vsel %vm2907_vm8, %v2909_v30, %v2905_v15 }
 0xef8   :  { %v2913_v34 = vmul.f32 %v2910_v32, %v2870_v0 }
 0xefa   :  { %v2914_v35 = vpack.c.bf16 %v2913_v34, %v2912_v33 }
 0xefc   :  { %3332 = vmatmul.msk.bf16.vlgmr.msrb.gmra.mxu2 %vm1603_vm11, %v2914_v35  ;;  %vm2997_vm11 = vcmask 258048  }
 0xf7f   :  { %v2961_v37 = vpop.f32.mrf.mxu2 }
 0xf80   :  { %v2962_v38 = vadd.f32 %v2961_v37, %v2924_v36 }
 0xf82   :  { %v4669_v21 = vadd.f32 %v2962_v38, %v4619_v6 }
 0xf84   :  { %v2970_v39 = vrot.slane %v4669_v21, 1  ;;  %v2971_v40 = vrot.slane %v4669_v21, 2  ;;  %v2972_v41 = vrot.slane %v4669_v21, 3  ;;  %2979 = vst [vmem:[#allocation1] ss:$9 sm:$0xff] %v4669_v21  ;;  %v2973_v42 = vrot.slane %v4669_v21, 4 }
 0xf85   :  { %v2974_v6 = vrot.slane %v4669_v21, 5  ;;  %v2975_v46 = vrot.slane %v4669_v21, 6  ;;  %v2976_v48 = vrot.slane %v4669_v21, 7 }
 0xf86   :  { %2981 = vst [vmem:[#allocation1 + $0x1] ss:$9 sm:$0xff] %v2970_v39 }
 0xf87   :  { %2983 = vst [vmem:[#allocation1 + $0x2] ss:$9 sm:$0xff] %v2971_v40  ;;  %v2963_v43 = vpop.f32.mrf.mxu2  ;;  %v3012_v52 = vmul.f32 %v2974_v6, %v2974_v6 }
 0xf88   :  { %2985 = vst [vmem:[#allocation1 + $0x3] ss:$9 sm:$0xff] %v2972_v41  ;;  %v2964_v50 = vadd.f32 %v2963_v43, %v2924_v36 }
 0xf89   :  { %2987 = vst [vmem:[#allocation1 + $0x4] ss:$9 sm:$0xff] %v2973_v42 }
 0xf8a   :  { %v2967_v45 = vadd.f32 %v2964_v50, %v4628_v9  ;;  %v3011_v9 = vmul.f32 %v4669_v21, %v4669_v21 }
 0xf8c   :  { %v2977_v49 = vrot.slane %v2967_v45, 1 }
 0xf90   :  { %v2988_v47 = vld [vmem:[#allocation1] sm:$0xff] }
 0xf91   :  { %2989 = vst [vmem:[#allocation1] ss:$9 sm:$0xff] %v2974_v6 }
 0xf92   :  { %2990 = vst [vmem:[#allocation1 + $0x1] ss:$9 sm:$0xff] %v2975_v46 }
 0xf93   :  { %2991 = vst [vmem:[#allocation1 + $0x2] ss:$9 sm:$0xff] %v2976_v48 }
 0xf94   :  { %2992 = vst [vmem:[#allocation1 + $0x3] ss:$9 sm:$0xff] %v2967_v45 }
 0xf95   :  { %2993 = vst [vmem:[#allocation1 + $0x4] ss:$9 sm:$0xff] %v2977_v49 }
 0xf96   :  { %2998 = vst.msk [vmem:[%s4716_s12] sm:$0x1f] %vm2997_vm11, %v2988_v47 }
 0xf9c   :  { %v2994_v51 = vld [vmem:[#allocation1] sm:$0xff] }
 0xf9d   :  { %3002 = vst [vmem:[#allocation1] ss:$9 sm:$0xff] %v4669_v21 }
 0xf9e   :  { %3004 = vst [vmem:[#allocation1 + $0x1] ss:$9 sm:$0xff] %v2974_v6 }
 0xf9f   :  { %2999 = vst.msk [vmem:[%s4716_s12 + $0x8] sm:$0x1f] %vm2997_vm11, %v2994_v51 }
 0xfa5   :  { %v3005_v53 = vld [vmem:[#allocation1] sm:$0xff] }
 0xfa6   :  { %v3007_v54 = vsel %vm221_vm1, %v3005_v53, 0.0  ;;  %3015 = vst [vmem:[#allocation1] ss:$9 sm:$0xff] %v3011_v9 }
 0xfa7   :  { %3008 = vadd.xlane.f32.xlu1 %v3007_v54  ;;  %3017 = vst [vmem:[#allocation1 + $0x1] ss:$9 sm:$0xff] %v3012_v52 }
 0xfae   :  { %v3018_v55 = vld [vmem:[#allocation1] sm:$0xff] }
 0xfaf   :  { %v3020_v57 = vsel %vm221_vm1, %v3018_v55, 0.0 }
 0xfb0   :  { %3021 = vadd.xlane.f32.xlu1 %v3020_v57 }
0x101a   :  { %v3009_v58 = vpop.xlane.xlu1 %3008 }
0x101b   :  { %v3010_v60 = vmul.f32 %v3009_v58, %v3661_v44 }
0x101d   :  { %v3024_v56 = vmul.f32 %v3010_v60, %v3010_v60  ;;  %v3027_v59 = vperm.slane %v3010_v60, 0  ;;  %v3028_v8 = vperm.slane %v3010_v60, 1 }
0x101f   :  { %v3031_v13 = vsub.f32 %v4669_v21, %v3027_v59  ;;  %v3032_v14 = vsub.f32 %v2974_v6, %v3028_v8 }
0x1023   :  { %v3022_v61 = vpop.xlane.xlu1 %3021 }
0x1024   :  { %v3023_v62 = vmul.f32 %v3022_v61, %v3661_v44  ;;  %v3381_v44 = vld [vmem:[%s4707_s3 + $0x3] ss:$0 sm:$0xff] }
0x1025   :  { %v3059_v18 = vrot.slane %v3381_v44, 1 }
0x1026   :  { %v3025_v63 = vsub.f32 %v3023_v62, %v3024_v56 }
0x1028   :  { %v3033_v0 = vadd.f32 1e-05, %v3025_v63 }
0x102a   :  { %3484 = vrsqrt.f32 %v3033_v0  ;;  %vm3040_vm2 = vweird.f32 %v3033_v0 }
0x1030   :  { %v3485_v23 = vpop.eup %3484 }
0x1031   :  { %v3035_v2 = vmul.f32 %v3485_v23, %v3033_v0  ;;  %vm3041_vm15 = vweird.f32 %v3485_v23 }
0x1032   :  { %vm3042_vm3 = vmor %vm3040_vm2, %vm3041_vm15 }
0x1033   :  { %v3036_v3 = vmul.f32 %v3485_v23, %v3035_v2 }
0x1035   :  { %v3037_v4 = vmul.f32 0.5, %v3036_v3 }
0x1037   :  { %v3038_v7 = vsub.f32 1.5, %v3037_v4 }
0x1039   :  { %v3039_v31 = vmul.f32 %v3485_v23, %v3038_v7 }
0x103b   :  { %v3043_v11 = vsel %vm3042_vm3, %v3485_v23, %v3039_v31 }
0x103c   :  { %v3045_v16 = vperm.slane %v3043_v11, 0  ;;  %v3046_v17 = vperm.slane %v3043_v11, 1 }
0x103e   :  { %v3049_v1 = vmul.f32 %v3045_v16, %v3031_v13  ;;  %v3050_v19 = vmul.f32 %v3046_v17, %v3032_v14 }
0x1040   :  { %v3055_v20 = vmul.f32 %v3380_v5, %v3049_v1  ;;  %v3056_v22 = vmul.f32 %v3053_v10, %v3050_v19 }
0x1042   :  { %v3061_v24 = vadd.f32 %v3381_v44, %v3055_v20  ;;  %v3062_v25 = vadd.f32 %v3059_v18, %v3056_v22 }
0x1044   :  { %3065 = vst [vmem:[#allocation1] ss:$9 sm:$0xff] %v3061_v24 }
0x1045   :  { %3067 = vst [vmem:[#allocation1 + $0x1] ss:$9 sm:$0xff] %v3062_v25 }
0x104c   :  { %v3068_v26 = vld [vmem:[#allocation1] sm:$0xff] }
0x104d   :  { %3070 = vst.msk [vmem:[#allocation2] sm:$0x3] %vm221_vm1, %v3068_v26 }
0x104e   :  { %3083 = dma.vmem_to_hbm [thread:$0]  %s3079_s2, 32, %s3081_s7, [#allocation3]  }
0x104f   :  { %3512 = dma.done.wait [#allocation3], 32  }
0x1050   :  { %3513 = vsyncadd [#allocation3], 4294967264 }
0x1051   :  { %3090 = vsyncpa [#allocation3], 1 }

</bundles_post_ra>
